<compile_context>
chip_gen: v7x
topology: tpu7x:2x2x1
jax: 0.10.0
libtpu: 0.0.40
codegen_flags: <defaults>
</compile_context>

<pallas_src>
import functools

import jax
import jax.numpy as jnp
from jax.experimental import pallas as pl
from jax.experimental.pallas import tpu as pltpu


def _round_up(x, m):
    return (x + m - 1) // m * m


# ----------------------------------------------------------------------------
# Fused GEMM(+GEMM) + bias + (residual) + (ReLU) Pallas kernel (channels-first)
# ----------------------------------------------------------------------------
def _fused_gemm_kernel(*refs, n_src, has_res, relu):
    # refs = w_0, p_0, [w_1, p_1, ...], bias, [residual], out, [acc_scratch]
    n_in = 2 * n_src + 1 + int(has_res)
    out_ref = refs[n_in]
    if n_src > 1:
        acc_ref = refs[n_in + 1]                       # VMEM f32 accumulator
        acc_ref[...] = jnp.dot(refs[0][...], refs[1][...],
                               preferred_element_type=jnp.float32)
        for i in range(1, n_src):
            acc_ref[...] += jnp.dot(refs[2 * i][...], refs[2 * i + 1][...],
                                    preferred_element_type=jnp.float32)
        acc = acc_ref[...]
    else:
        acc = jnp.dot(refs[0][...], refs[1][...],
                      preferred_element_type=jnp.float32)
    acc = acc + refs[2 * n_src][...]                   # bias (Cout, 1), f32
    if has_res:
        acc = acc + refs[2 * n_src + 1][...].astype(jnp.float32)   # add in f32
    if relu:
        acc = jnp.maximum(acc, 0.0)
    out_ref[...] = acc.astype(out_ref.dtype)


def fused_matmul_bias_act(pairs, bias, residual=None, relu=False,
                          out_dtype=jnp.bfloat16, tm=512):
    """pairs: [(w (Cout,K_i) bf16 scale-folded, p (K_i,M) bf16)], bias (Cout,1) f32.
    out (Cout, M) = relu?( sum_i w_i @ p_i + bias [+ residual] ), f32 accumulation.
    M is the lane dim of every block -> lane-dense loads/stores for small Cout."""
    Cout = pairs[0][0].shape[0]
    M = pairs[0][1].shape[1]
    if M < 128:
        bm = M                                          # full-dim block (tiny case)
    else:
        # multiple of 128; aim for >= 2 grid blocks (v7x has 2 TensorCores)
        bm = min(tm, max(128, _round_up((M + 1) // 2, 128)))
    grid = (pl.cdiv(M, bm),)

    in_specs, args = [], []
    for (w, p) in pairs:
        K = w.shape[1]
        in_specs.append(pl.BlockSpec((Cout, K), lambda j: (0, 0)))
        in_specs.append(pl.BlockSpec((K, bm), lambda j: (0, j)))
        args.append(w.astype(jnp.bfloat16))
        args.append(p.astype(jnp.bfloat16))
    in_specs.append(pl.BlockSpec((Cout, 1), lambda j: (0, 0)))
    args.append(bias.astype(jnp.float32).reshape(Cout, 1))

    has_res = residual is not None
    if has_res:
        in_specs.append(pl.BlockSpec((Cout, bm), lambda j: (0, j)))
        args.append(residual)                           # native dtype; f32 add in-kernel

    n_src = len(pairs)
    scratch = [pltpu.VMEM((Cout, bm), jnp.float32)] if n_src > 1 else []
    kernel = functools.partial(_fused_gemm_kernel, n_src=n_src,
                               has_res=has_res, relu=relu)
    return pl.pallas_call(
        kernel,
        out_shape=jax.ShapeDtypeStruct((Cout, M), out_dtype),
        grid=grid,
        in_specs=in_specs,
        out_specs=pl.BlockSpec((Cout, bm), lambda j: (0, j)),
        scratch_shapes=scratch,
        compiler_params=pltpu.CompilerParams(
            dimension_semantics=("parallel",),
            vmem_limit_bytes=48 * 1024 * 1024),          # safe on v7x's 64 MiB too
    )(*args)


# ----------------------------------------------------------------------------
# Conv3d via channels-first im2col (XLA glue) + fused Pallas GEMM
# ----------------------------------------------------------------------------
_SAME = ((1, 1), (1, 1), (1, 1))


def _im2col_cf(x, kdims, stride, pads):
    """x: (C,N,D,H,W) -> patches (C*kd*kh*kw, N*Do*Ho*Wo); K order = (cin, kd, kh, kw)."""
    kd, kh, kw = kdims
    sd, sh, sw = stride
    (pd0, pd1), (ph0, ph1), (pw0, pw1) = pads
    C, N, D, H, W = x.shape
    Do = (D + pd0 + pd1 - kd) // sd + 1
    Ho = (H + ph0 + ph1 - kh) // sh + 1
    Wo = (W + pw0 + pw1 - kw) // sw + 1
    xp = x
    if any(v for pair in pads for v in pair):
        xp = jnp.pad(x, ((0, 0), (0, 0), (pd0, pd1), (ph0, ph1), (pw0, pw1)))
    cols = []
    for a in range(kd):
        for b in range(kh):
            for c in range(kw):
                cols.append(xp[:, :, a:a + (Do - 1) * sd + 1:sd,
                               b:b + (Ho - 1) * sh + 1:sh,
                               c:c + (Wo - 1) * sw + 1:sw])
    pat = cols[0][:, None] if len(cols) == 1 else jnp.stack(cols, axis=1)
    return pat.reshape(C * kd * kh * kw, N * Do * Ho * Wo), (N, Do, Ho, Wo)


def conv3d_fused(sources, bias, *, residual=None, relu=False):
    """sources: [(x (C,N,D,H,W), w2d (Cout,K), kdims, stride, pads)]; all sources
    share the output geometry (used to fuse concat+conv as two GEMM sources)."""
    pairs, geom = [], None
    for (x, w2d, kdims, stride, pads) in sources:
        p, g = _im2col_cf(x, kdims, stride, pads)
        geom = g if geom is None else geom
        pairs.append((w2d, p))
    Cout = pairs[0][0].shape[0]
    res2d = None if residual is None else residual.reshape(Cout, -1)
    out = fused_matmul_bias_act(pairs, bias, residual=res2d, relu=relu)
    N, Do, Ho, Wo = geom
    return out.reshape(Cout, N, Do, Ho, Wo)


def conv_layer(x, layer, *, stride=(1, 1, 1), residual=None, relu=False):
    return conv3d_fused([(x, layer["w"], (3, 3, 3), stride, _SAME)],
                        layer["bias"], residual=residual, relu=relu)


def convtr_redir_fused(x, layer, redir_src, relu=True):
    """relu( BN(ConvTranspose3d(k=3, stride=(1,2,2), pad=1, out_pad=(0,1,1)))(x)
           + BN(Conv3d 1x1x1)(redir_src) )  in ONE pallas_call.
    The 4 sub-pixel phases are merged: common (3,2,2)-tap im2col, phase weights
    stacked along the output rows (4*cout), redir fused as a block-diagonal
    second GEMM source over the phase-sliced redir input."""
    Cin, N, D, H, W = x.shape
    cout = layer["w"].shape[0] // 4
    patches, _ = _im2col_cf(x, (3, 2, 2), (1, 1, 1), ((1, 1), (0, 1), (0, 1)))
    # phase-stack the redir source (it lives at the upsampled output geometry)
    cr = redir_src.shape[0]
    parts = [redir_src[:, :, :, ph::2, pw::2] for ph in range(2) for pw in range(2)]
    red = jnp.concatenate(parts, axis=0).reshape(4 * cr, -1)
    out = fused_matmul_bias_act(
        [(layer["w"], patches), (layer["w_redir"], red)],
        layer["bias"], relu=relu)                      # (4*cout, N*D*H*W)
    out = out.reshape(2, 2, cout, N, D, H, W)           # (ph, pw, c, n, d, h, w)
    out = jnp.transpose(out, (2, 3, 4, 5, 0, 6, 1)).reshape(cout, N, D, 2 * H, 2 * W)
    return out


def avgpool_hw(x, k):
    C, N, D, H, W = x.shape
    return x.reshape(C, N, D, H // k, k, W // k, k).mean(axis=(4, 6))


# ----------------------------------------------------------------------------
# Parameters: GEMM-layout weights with BN scale folded in; BN bias kept separate.
# ----------------------------------------------------------------------------
def _bn_affine(key, cout):
    k1, k2, k3, k4 = jax.random.split(key, 4)
    gamma = 1.0 + 0.1 * jax.random.normal(k1, (cout,), jnp.float32)
    beta = 0.1 * jax.random.normal(k2, (cout,), jnp.float32)
    mean = 0.1 * jax.random.normal(k3, (cout,), jnp.float32)
    var = 1.0 + 0.1 * jax.random.uniform(k4, (cout,), jnp.float32)
    scale = gamma / jnp.sqrt(var + 1e-5)
    bias = beta - mean * scale
    return scale, bias                                  # (cout,), (cout,)


def _convbn(key, cin, cout, k=3, bn=True):
    kw, kb = jax.random.split(key)
    w = 0.05 * jax.random.normal(kw, (cout, cin, k, k, k), jnp.float32)
    if bn:
        scale, bias = _bn_affine(kb, cout)
    else:
        scale = jnp.ones((cout,), jnp.float32)
        bias = jnp.zeros((cout,), jnp.float32)
    w2d = (w.reshape(cout, -1) * scale[:, None]).astype(jnp.bfloat16)
    return {"w": w2d, "bias": bias.reshape(cout, 1)}


def _convbn_split(key, cin_a, cin_b, cout):
    """combine layer: conv over cat([A, B], channel) == conv_a(A) + conv_b(B)."""
    kw, kb = jax.random.split(key)
    w = 0.05 * jax.random.normal(kw, (cout, cin_a + cin_b, 3, 3, 3), jnp.float32)
    scale, bias = _bn_affine(kb, cout)
    wa = (w[:, :cin_a].reshape(cout, -1) * scale[:, None]).astype(jnp.bfloat16)
    wb = (w[:, cin_a:].reshape(cout, -1) * scale[:, None]).astype(jnp.bfloat16)
    return {"w_a": wa, "w_b": wb, "bias": bias.reshape(cout, 1)}


def _convtr_redir_params(key, cin, cout, cr):
    """ConvTranspose3d weight (cin,cout,3,3,3) + BN, fused with a redir 1x1x1
    conv (cr->cout) + BN.  Emits: merged 4-phase GEMM weight (4*cout, cin*12)
    [BN scale folded], block-diag redir weight (4*cout, 4*cr), stacked bias."""
    k1, k2, k3, k4 = jax.random.split(key, 4)
    w_t = 0.05 * jax.random.normal(k1, (cin, cout, 3, 3, 3), jnp.float32)
    s_m, b_m = _bn_affine(k2, cout)
    w_r = 0.05 * jax.random.normal(k3, (cout, cr, 1, 1, 1), jnp.float32)
    s_r, b_r = _bn_affine(k4, cout)

    # (cout, cin, kd, kh, kw), depth taps flipped (transposed-conv -> conv).
    wd = jnp.transpose(w_t, (1, 0, 2, 3, 4))[:, :, ::-1, :, :]

    def h_taps(wx, ph):   # window offsets b in {0,1} -> input rows h, h+1
        z = jnp.zeros_like(wx[:, :, :, :1, :])
        if ph == 0:       # even output rows: only the center tap (kh=1)
            return jnp.concatenate([wx[:, :, :, 1:2, :], z], axis=3)
        # odd output rows: x[h]*w[kh=2] + x[h+1]*w[kh=0]
        return jnp.concatenate([wx[:, :, :, 2:3, :], wx[:, :, :, 0:1, :]], axis=3)

    def w_taps(wx, pw):
        z = jnp.zeros_like(wx[:, :, :, :, :1])
        if pw == 0:
            return jnp.concatenate([wx[:, :, :, :, 1:2], z], axis=4)
        return jnp.concatenate([wx[:, :, :, :, 2:3], wx[:, :, :, :, 0:1]], axis=4)

    rows = []
    for ph in range(2):
        for pw in range(2):
            wp = w_taps(h_taps(wd, ph), pw)              # (cout, cin, 3, 2, 2)
            rows.append(wp.reshape(cout, -1) * s_m[:, None])
    w_main = jnp.concatenate(rows, axis=0).astype(jnp.bfloat16)      # (4*cout, cin*12)

    w_r2d = w_r.reshape(cout, cr) * s_r[:, None]
    w_redir = jnp.kron(jnp.eye(4, dtype=jnp.float32), w_r2d).astype(jnp.bfloat16)
    bias = jnp.tile(b_m + b_r, 4).reshape(4 * cout, 1)
    return {"w": w_main, "w_redir": w_redir, "bias": bias}


def init_params(key, C):
    keys = iter(jax.random.split(key, 24))
    p = {}
    p["dres8_0"] = [_convbn(next(keys), C, C), _convbn(next(keys), C, C)]
    p["dres8_1"] = [_convbn(next(keys), C, C), _convbn(next(keys), C, C)]
    p["dres16_0"] = [_convbn(next(keys), C, 2 * C), _convbn(next(keys), 2 * C, 2 * C)]
    p["dres16_1"] = [_convbn(next(keys), 2 * C, 2 * C), _convbn(next(keys), 2 * C, 2 * C)]
    p["dres32_0"] = [_convbn(next(keys), C, 2 * C), _convbn(next(keys), 2 * C, 2 * C)]
    p["dres32_1"] = [_convbn(next(keys), 2 * C, 2 * C), _convbn(next(keys), 2 * C, 2 * C)]
    p["conv1"] = _convbn(next(keys), C, 2 * C, bn=False)        # plain Conv3d
    p["conv2"] = _convbn(next(keys), 2 * C, 2 * C)
    p["conv3"] = _convbn(next(keys), 2 * C, 4 * C, bn=False)    # plain Conv3d
    p["conv4"] = _convbn(next(keys), 4 * C, 4 * C)
    p["conv8"] = _convtr_redir_params(next(keys), 4 * C, 2 * C, 2 * C)  # + redir2 fused
    p["conv9"] = _convtr_redir_params(next(keys), 2 * C, C, C)          # + redir1 fused
    p["combine1"] = _convbn_split(next(keys), 2 * C, 2 * C, 2 * C)
    p["combine2"] = _convbn_split(next(keys), 4 * C, 2 * C, 4 * C)
    # redir3 exists in __init__ but is unused in forward -> not instantiated.
    return p


# ----------------------------------------------------------------------------
# hourglassup forward
# ----------------------------------------------------------------------------
def hourglassup_forward(x_ncdhw, params):
    x = jnp.transpose(x_ncdhw, (1, 0, 2, 3, 4)).astype(jnp.float32)  # (C,N,D,H,W)

    x_32 = avgpool_hw(x, 8).astype(jnp.bfloat16)
    x_16 = avgpool_hw(x, 4).astype(jnp.bfloat16)
    x_8 = avgpool_hw(x, 2).astype(jnp.bfloat16)

    def dres(inp, p0, p1):
        t = conv_layer(inp, p0[0], relu=True)
        res = conv_layer(t, p0[1], relu=True)            # dres*_0 output
        t = conv_layer(res, p1[0], relu=True)
        return conv_layer(t, p1[1], relu=False, residual=res)   # + res, no relu

    x_8n = dres(x_8, params["dres8_0"], params["dres8_1"])
    x_16n = dres(x_16, params["dres16_0"], params["dres16_1"])
    x_32n = dres(x_32, params["dres32_0"], params["dres32_1"])

    conv1 = conv_layer(x_8n, params["conv1"], stride=(1, 2, 2))
    comb1 = params["combine1"]
    conv1 = conv3d_fused(                                  # fused cat + combine1
        [(conv1, comb1["w_a"], (3, 3, 3), (1, 1, 1), _SAME),
         (x_16n, comb1["w_b"], (3, 3, 3), (1, 1, 1), _SAME)],
        comb1["bias"], relu=True)
    conv2 = conv_layer(conv1, params["conv2"], relu=True)

    conv3 = conv_layer(conv2, params["conv3"], stride=(1, 2, 2))
    comb2 = params["combine2"]
    conv3 = conv3d_fused(                                  # fused cat + combine2
        [(conv3, comb2["w_a"], (3, 3, 3), (1, 1, 1), _SAME),
         (x_32n, comb2["w_b"], (3, 3, 3), (1, 1, 1), _SAME)],
        comb2["bias"], relu=True)
    conv4 = conv_layer(conv3, params["conv4"], relu=True)

    conv8 = convtr_redir_fused(conv4, params["conv8"], conv2)   # + redir2(conv2), relu
    conv9 = convtr_redir_fused(conv8, params["conv9"], x_8n)    # + redir1(x_8),  relu

    return jnp.transpose(conv9, (1, 0, 2, 3, 4)).astype(jnp.float32)  # NCDHW


# ----------------------------------------------------------------------------
if __name__ == "__main__":
    key = jax.random.PRNGKey(0)
    k_x, k_p = jax.random.split(key)

    N, C, D, H, W = 2, 4, 4, 16, 16            # in_channels = 4
    x = jax.random.normal(k_x, (N, C, D, H, W), jnp.float32)
    params = init_params(k_p, C)

    fwd = jax.jit(hourglassup_forward)
    out = jax.block_until_ready(fwd(x, params))

    assert out.shape == (N, C, D, H // 2, W // 2), out.shape
    assert bool(jnp.all(jnp.isfinite(out)))
    print("KERNEL_OK")
</pallas_src>

<mosaic_0001>
module attributes {stable_mosaic.version = 11 : i64} {
  func.func @_fused_gemm_kernel(%arg0: i32, %arg1: memref<8x108xbf16, #tpu.memory_space<vmem>>, %arg2: memref<108x32xbf16, #tpu.memory_space<vmem>>, %arg3: memref<8x1xf32, #tpu.memory_space<vmem>>, %arg4: memref<8x32xbf16, #tpu.memory_space<vmem>>) attributes {dimension_semantics = [#tpu.dimension_semantics<parallel>], iteration_bounds = array<i64: 1>, scalar_prefetch = 0 : i64, scratch_operands = 0 : i64, tpu.core_type = #tpu.core_type<tc>, window_params = [{pipeline_mode = #tpu.pipeline_mode<synchronous>, transform_indices = @transform_0, window_bounds = array<i64: 8, 108>}, {transform_indices = @transform_1, window_bounds = array<i64: 108, 32>}, {pipeline_mode = #tpu.pipeline_mode<synchronous>, transform_indices = @transform_2, window_bounds = array<i64: 8, 1>}, {transform_indices = @transform_3, window_bounds = array<i64: 8, 32>}]} {
    %c0 = arith.constant 0 : index
    %c0_0 = arith.constant 0 : index
    %0 = vector.load %arg1[%c0, %c0_0] : memref<8x108xbf16, #tpu.memory_space<vmem>>, vector<8x108xbf16>
    %c0_1 = arith.constant 0 : index
    %c0_2 = arith.constant 0 : index
    %1 = vector.load %arg2[%c0_1, %c0_2] : memref<108x32xbf16, #tpu.memory_space<vmem>>, vector<108x32xbf16>
    %cst = arith.constant dense<0.000000e+00> : vector<8x32xf32>
    %2 = tpu.matmul %0, %1, %cst {dimension_numbers = #tpu.dot_dimension_numbers<[1], [0], [0], [1], [0, 0, 1, 1], [], []>} : vector<8x108xbf16>, vector<108x32xbf16>, vector<8x32xf32> -> vector<8x32xf32>
    %c0_3 = arith.constant 0 : index
    %c0_4 = arith.constant 0 : index
    %3 = vector.load %arg3[%c0_3, %c0_4] : memref<8x1xf32, #tpu.memory_space<vmem>>, vector<8x1xf32>
    %4 = vector.broadcast %3 : vector<8x1xf32> to vector<8x32xf32>
    %5 = arith.addf %2, %4 : vector<8x32xf32>
    %cst_5 = arith.constant 0.000000e+00 : f32
    %6 = vector.broadcast %cst_5 : f32 to vector<8x32xf32>
    %7 = arith.maximumf %5, %6 : vector<8x32xf32>
    %8 = arith.truncf %7 : vector<8x32xf32> to vector<8x32xbf16>
    %c0_6 = arith.constant 0 : index
    %c0_7 = arith.constant 0 : index
    %9 = vector.load %arg4[%c0_6, %c0_7] : memref<8x32xbf16, #tpu.memory_space<vmem>>, vector<8x32xbf16>
    tpu.vector_store %arg4[%c0_6, %c0_7], %8 {strides = array<i32>} : memref<8x32xbf16, #tpu.memory_space<vmem>>, vector<8x32xbf16>,
    return
  }
  func.func @transform_0(%arg0: i32) -> (i32, i32) {
    %c0_i32 = arith.constant 0 : i32
    %c0_i32_0 = arith.constant 0 : i32
    %c0_i32_1 = arith.constant 0 : i32
    return %c0_i32, %c0_i32_0 : i32, i32
  }
  func.func @transform_1(%arg0: i32) -> (i32, i32) {
    %c0_i32 = arith.constant 0 : i32
    %c0_i32_0 = arith.constant 0 : i32
    return %c0_i32, %arg0 : i32, i32
  }
  func.func @transform_2(%arg0: i32) -> (i32, i32) {
    %c0_i32 = arith.constant 0 : i32
    %c0_i32_0 = arith.constant 0 : i32
    %c0_i32_1 = arith.constant 0 : i32
    return %c0_i32, %c0_i32_0 : i32, i32
  }
  func.func @transform_3(%arg0: i32) -> (i32, i32) {
    %c0_i32 = arith.constant 0 : i32
    %c0_i32_0 = arith.constant 0 : i32
    return %c0_i32, %arg0 : i32, i32
  }
}

module attributes {stable_mosaic.version = 11 : i64} {
  func.func @_fused_gemm_kernel(%arg0: i32, %arg1: memref<8x216xbf16, #tpu.memory_space<vmem>>, %arg2: memref<216x32xbf16, #tpu.memory_space<vmem>>, %arg3: memref<8x1xf32, #tpu.memory_space<vmem>>, %arg4: memref<8x32xbf16, #tpu.memory_space<vmem>>) attributes {dimension_semantics = [#tpu.dimension_semantics<parallel>], iteration_bounds = array<i64: 1>, scalar_prefetch = 0 : i64, scratch_operands = 0 : i64, tpu.core_type = #tpu.core_type<tc>, window_params = [{pipeline_mode = #tpu.pipeline_mode<synchronous>, transform_indices = @transform_0, window_bounds = array<i64: 8, 216>}, {transform_indices = @transform_1, window_bounds = array<i64: 216, 32>}, {pipeline_mode = #tpu.pipeline_mode<synchronous>, transform_indices = @transform_2, window_bounds = array<i64: 8, 1>}, {transform_indices = @transform_3, window_bounds = array<i64: 8, 32>}]} {
    %c0 = arith.constant 0 : index
    %c0_0 = arith.constant 0 : index
    %0 = vector.load %arg1[%c0, %c0_0] : memref<8x216xbf16, #tpu.memory_space<vmem>>, vector<8x216xbf16>
    %c0_1 = arith.constant 0 : index
    %c0_2 = arith.constant 0 : index
    %1 = vector.load %arg2[%c0_1, %c0_2] : memref<216x32xbf16, #tpu.memory_space<vmem>>, vector<216x32xbf16>
    %cst = arith.constant dense<0.000000e+00> : vector<8x32xf32>
    %2 = tpu.matmul %0, %1, %cst {dimension_numbers = #tpu.dot_dimension_numbers<[1], [0], [0], [1], [0, 0, 1, 1], [], []>} : vector<8x216xbf16>, vector<216x32xbf16>, vector<8x32xf32> -> vector<8x32xf32>
    %c0_3 = arith.constant 0 : index
    %c0_4 = arith.constant 0 : index
    %3 = vector.load %arg3[%c0_3, %c0_4] : memref<8x1xf32, #tpu.memory_space<vmem>>, vector<8x1xf32>
    %4 = vector.broadcast %3 : vector<8x1xf32> to vector<8x32xf32>
    %5 = arith.addf %2, %4 : vector<8x32xf32>
    %cst_5 = arith.constant 0.000000e+00 : f32
    %6 = vector.broadcast %cst_5 : f32 to vector<8x32xf32>
    %7 = arith.maximumf %5, %6 : vector<8x32xf32>
    %8 = arith.truncf %7 : vector<8x32xf32> to vector<8x32xbf16>
    %c0_6 = arith.constant 0 : index
    %c0_7 = arith.constant 0 : index
    %9 = vector.load %arg4[%c0_6, %c0_7] : memref<8x32xbf16, #tpu.memory_space<vmem>>, vector<8x32xbf16>
    tpu.vector_store %arg4[%c0_6, %c0_7], %8 {strides = array<i32>} : memref<8x32xbf16, #tpu.memory_space<vmem>>, vector<8x32xbf16>,
    return
  }
  func.func @transform_0(%arg0: i32) -> (i32, i32) {
    %c0_i32 = arith.constant 0 : i32
    %c0_i32_0 = arith.constant 0 : i32
    %c0_i32_1 = arith.constant 0 : i32
    return %c0_i32, %c0_i32_0 : i32, i32
  }
  func.func @transform_1(%arg0: i32) -> (i32, i32) {
    %c0_i32 = arith.constant 0 : i32
    %c0_i32_0 = arith.constant 0 : i32
    return %c0_i32, %arg0 : i32, i32
  }
  func.func @transform_2(%arg0: i32) -> (i32, i32) {
    %c0_i32 = arith.constant 0 : i32
    %c0_i32_0 = arith.constant 0 : i32
    %c0_i32_1 = arith.constant 0 : i32
    return %c0_i32, %c0_i32_0 : i32, i32
  }
  func.func @transform_3(%arg0: i32) -> (i32, i32) {
    %c0_i32 = arith.constant 0 : i32
    %c0_i32_0 = arith.constant 0 : i32
    return %c0_i32, %arg0 : i32, i32
  }
}

module attributes {stable_mosaic.version = 11 : i64} {
  func.func @_fused_gemm_kernel(%arg0: i32, %arg1: memref<8x216xbf16, #tpu.memory_space<vmem>>, %arg2: memref<216x32xbf16, #tpu.memory_space<vmem>>, %arg3: memref<8x1xf32, #tpu.memory_space<vmem>>, %arg4: memref<8x32xbf16, #tpu.memory_space<vmem>>, %arg5: memref<8x32xbf16, #tpu.memory_space<vmem>>) attributes {dimension_semantics = [#tpu.dimension_semantics<parallel>], iteration_bounds = array<i64: 1>, scalar_prefetch = 0 : i64, scratch_operands = 0 : i64, tpu.core_type = #tpu.core_type<tc>, window_params = [{pipeline_mode = #tpu.pipeline_mode<synchronous>, transform_indices = @transform_0, window_bounds = array<i64: 8, 216>}, {transform_indices = @transform_1, window_bounds = array<i64: 216, 32>}, {pipeline_mode = #tpu.pipeline_mode<synchronous>, transform_indices = @transform_2, window_bounds = array<i64: 8, 1>}, {transform_indices = @transform_3, window_bounds = array<i64: 8, 32>}, {transform_indices = @transform_4, window_bounds = array<i64: 8, 32>}]} {
    %c0 = arith.constant 0 : index
    %c0_0 = arith.constant 0 : index
    %0 = vector.load %arg1[%c0, %c0_0] : memref<8x216xbf16, #tpu.memory_space<vmem>>, vector<8x216xbf16>
    %c0_1 = arith.constant 0 : index
    %c0_2 = arith.constant 0 : index
    %1 = vector.load %arg2[%c0_1, %c0_2] : memref<216x32xbf16, #tpu.memory_space<vmem>>, vector<216x32xbf16>
    %cst = arith.constant dense<0.000000e+00> : vector<8x32xf32>
    %2 = tpu.matmul %0, %1, %cst {dimension_numbers = #tpu.dot_dimension_numbers<[1], [0], [0], [1], [0, 0, 1, 1], [], []>} : vector<8x216xbf16>, vector<216x32xbf16>, vector<8x32xf32> -> vector<8x32xf32>
    %c0_3 = arith.constant 0 : index
    %c0_4 = arith.constant 0 : index
    %3 = vector.load %arg3[%c0_3, %c0_4] : memref<8x1xf32, #tpu.memory_space<vmem>>, vector<8x1xf32>
    %4 = vector.broadcast %3 : vector<8x1xf32> to vector<8x32xf32>
    %5 = arith.addf %2, %4 : vector<8x32xf32>
    %c0_5 = arith.constant 0 : index
    %c0_6 = arith.constant 0 : index
    %6 = vector.load %arg4[%c0_5, %c0_6] : memref<8x32xbf16, #tpu.memory_space<vmem>>, vector<8x32xbf16>
    %7 = arith.extf %6 : vector<8x32xbf16> to vector<8x32xf32>
    %8 = arith.addf %5, %7 : vector<8x32xf32>
    %9 = arith.truncf %8 : vector<8x32xf32> to vector<8x32xbf16>
    %c0_7 = arith.constant 0 : index
    %c0_8 = arith.constant 0 : index
    %10 = vector.load %arg5[%c0_7, %c0_8] : memref<8x32xbf16, #tpu.memory_space<vmem>>, vector<8x32xbf16>
    tpu.vector_store %arg5[%c0_7, %c0_8], %9 {strides = array<i32>} : memref<8x32xbf16, #tpu.memory_space<vmem>>, vector<8x32xbf16>,
    return
  }
  func.func @transform_0(%arg0: i32) -> (i32, i32) {
    %c0_i32 = arith.constant 0 : i32
    %c0_i32_0 = arith.constant 0 : i32
    %c0_i32_1 = arith.constant 0 : i32
    return %c0_i32, %c0_i32_0 : i32, i32
  }
  func.func @transform_1(%arg0: i32) -> (i32, i32) {
    %c0_i32 = arith.constant 0 : i32
    %c0_i32_0 = arith.constant 0 : i32
    return %c0_i32, %arg0 : i32, i32
  }
  func.func @transform_2(%arg0: i32) -> (i32, i32) {
    %c0_i32 = arith.constant 0 : i32
    %c0_i32_0 = arith.constant 0 : i32
    %c0_i32_1 = arith.constant 0 : i32
    return %c0_i32, %c0_i32_0 : i32, i32
  }
  func.func @transform_3(%arg0: i32) -> (i32, i32) {
    %c0_i32 = arith.constant 0 : i32
    %c0_i32_0 = arith.constant 0 : i32
    return %c0_i32, %arg0 : i32, i32
  }
  func.func @transform_4(%arg0: i32) -> (i32, i32) {
    %c0_i32 = arith.constant 0 : i32
    %c0_i32_0 = arith.constant 0 : i32
    return %c0_i32, %arg0 : i32, i32
  }
}

module attributes {stable_mosaic.version = 11 : i64} {
  func.func @_fused_gemm_kernel(%arg0: i32, %arg1: memref<8x108xbf16, #tpu.memory_space<vmem>>, %arg2: memref<108x128xbf16, #tpu.memory_space<vmem>>, %arg3: memref<8x1xf32, #tpu.memory_space<vmem>>, %arg4: memref<8x128xbf16, #tpu.memory_space<vmem>>) attributes {dimension_semantics = [#tpu.dimension_semantics<parallel>], iteration_bounds = array<i64: 1>, scalar_prefetch = 0 : i64, scratch_operands = 0 : i64, tpu.core_type = #tpu.core_type<tc>, window_params = [{pipeline_mode = #tpu.pipeline_mode<synchronous>, transform_indices = @transform_0, window_bounds = array<i64: 8, 108>}, {transform_indices = @transform_1, window_bounds = array<i64: 108, 128>}, {pipeline_mode = #tpu.pipeline_mode<synchronous>, transform_indices = @transform_2, window_bounds = array<i64: 8, 1>}, {transform_indices = @transform_3, window_bounds = array<i64: 8, 128>}]} {
    %c0 = arith.constant 0 : index
    %c0_0 = arith.constant 0 : index
    %0 = vector.load %arg1[%c0, %c0_0] : memref<8x108xbf16, #tpu.memory_space<vmem>>, vector<8x108xbf16>
    %c0_1 = arith.constant 0 : index
    %c0_2 = arith.constant 0 : index
    %1 = vector.load %arg2[%c0_1, %c0_2] : memref<108x128xbf16, #tpu.memory_space<vmem>>, vector<108x128xbf16>
    %cst = arith.constant dense<0.000000e+00> : vector<8x128xf32>
    %2 = tpu.matmul %0, %1, %cst {dimension_numbers = #tpu.dot_dimension_numbers<[1], [0], [0], [1], [0, 0, 1, 1], [], []>} : vector<8x108xbf16>, vector<108x128xbf16>, vector<8x128xf32> -> vector<8x128xf32>
    %c0_3 = arith.constant 0 : index
    %c0_4 = arith.constant 0 : index
    %3 = vector.load %arg3[%c0_3, %c0_4] : memref<8x1xf32, #tpu.memory_space<vmem>>, vector<8x1xf32>
    %4 = vector.broadcast %3 : vector<8x1xf32> to vector<8x128xf32>
    %5 = arith.addf %2, %4 : vector<8x128xf32>
    %cst_5 = arith.constant 0.000000e+00 : f32
    %6 = vector.broadcast %cst_5 : f32 to vector<8x128xf32>
    %7 = arith.maximumf %5, %6 : vector<8x128xf32>
    %8 = arith.truncf %7 : vector<8x128xf32> to vector<8x128xbf16>
    %c0_6 = arith.constant 0 : index
    %c0_7 = arith.constant 0 : index
    %9 = vector.load %arg4[%c0_6, %c0_7] : memref<8x128xbf16, #tpu.memory_space<vmem>>, vector<8x128xbf16>
    tpu.vector_store %arg4[%c0_6, %c0_7], %8 {strides = array<i32>} : memref<8x128xbf16, #tpu.memory_space<vmem>>, vector<8x128xbf16>,
    return
  }
  func.func @transform_0(%arg0: i32) -> (i32, i32) {
    %c0_i32 = arith.constant 0 : i32
    %c0_i32_0 = arith.constant 0 : i32
    %c0_i32_1 = arith.constant 0 : i32
    return %c0_i32, %c0_i32_0 : i32, i32
  }
  func.func @transform_1(%arg0: i32) -> (i32, i32) {
    %c0_i32 = arith.constant 0 : i32
    %c0_i32_0 = arith.constant 0 : i32
    return %c0_i32, %arg0 : i32, i32
  }
  func.func @transform_2(%arg0: i32) -> (i32, i32) {
    %c0_i32 = arith.constant 0 : i32
    %c0_i32_0 = arith.constant 0 : i32
    %c0_i32_1 = arith.constant 0 : i32
    return %c0_i32, %c0_i32_0 : i32, i32
  }
  func.func @transform_3(%arg0: i32) -> (i32, i32) {
    %c0_i32 = arith.constant 0 : i32
    %c0_i32_0 = arith.constant 0 : i32
    return %c0_i32, %arg0 : i32, i32
  }
}

module attributes {stable_mosaic.version = 11 : i64} {
  func.func @_fused_gemm_kernel(%arg0: i32, %arg1: memref<8x216xbf16, #tpu.memory_space<vmem>>, %arg2: memref<216x128xbf16, #tpu.memory_space<vmem>>, %arg3: memref<8x1xf32, #tpu.memory_space<vmem>>, %arg4: memref<8x128xbf16, #tpu.memory_space<vmem>>) attributes {dimension_semantics = [#tpu.dimension_semantics<parallel>], iteration_bounds = array<i64: 1>, scalar_prefetch = 0 : i64, scratch_operands = 0 : i64, tpu.core_type = #tpu.core_type<tc>, window_params = [{pipeline_mode = #tpu.pipeline_mode<synchronous>, transform_indices = @transform_0, window_bounds = array<i64: 8, 216>}, {transform_indices = @transform_1, window_bounds = array<i64: 216, 128>}, {pipeline_mode = #tpu.pipeline_mode<synchronous>, transform_indices = @transform_2, window_bounds = array<i64: 8, 1>}, {transform_indices = @transform_3, window_bounds = array<i64: 8, 128>}]} {
    %c0 = arith.constant 0 : index
    %c0_0 = arith.constant 0 : index
    %0 = vector.load %arg1[%c0, %c0_0] : memref<8x216xbf16, #tpu.memory_space<vmem>>, vector<8x216xbf16>
    %c0_1 = arith.constant 0 : index
    %c0_2 = arith.constant 0 : index
    %1 = vector.load %arg2[%c0_1, %c0_2] : memref<216x128xbf16, #tpu.memory_space<vmem>>, vector<216x128xbf16>
    %cst = arith.constant dense<0.000000e+00> : vector<8x128xf32>
    %2 = tpu.matmul %0, %1, %cst {dimension_numbers = #tpu.dot_dimension_numbers<[1], [0], [0], [1], [0, 0, 1, 1], [], []>} : vector<8x216xbf16>, vector<216x128xbf16>, vector<8x128xf32> -> vector<8x128xf32>
    %c0_3 = arith.constant 0 : index
    %c0_4 = arith.constant 0 : index
    %3 = vector.load %arg3[%c0_3, %c0_4] : memref<8x1xf32, #tpu.memory_space<vmem>>, vector<8x1xf32>
    %4 = vector.broadcast %3 : vector<8x1xf32> to vector<8x128xf32>
    %5 = arith.addf %2, %4 : vector<8x128xf32>
    %cst_5 = arith.constant 0.000000e+00 : f32
    %6 = vector.broadcast %cst_5 : f32 to vector<8x128xf32>
    %7 = arith.maximumf %5, %6 : vector<8x128xf32>
    %8 = arith.truncf %7 : vector<8x128xf32> to vector<8x128xbf16>
    %c0_6 = arith.constant 0 : index
    %c0_7 = arith.constant 0 : index
    %9 = vector.load %arg4[%c0_6, %c0_7] : memref<8x128xbf16, #tpu.memory_space<vmem>>, vector<8x128xbf16>
    tpu.vector_store %arg4[%c0_6, %c0_7], %8 {strides = array<i32>} : memref<8x128xbf16, #tpu.memory_space<vmem>>, vector<8x128xbf16>,
    return
  }
  func.func @transform_0(%arg0: i32) -> (i32, i32) {
    %c0_i32 = arith.constant 0 : i32
    %c0_i32_0 = arith.constant 0 : i32
    %c0_i32_1 = arith.constant 0 : i32
    return %c0_i32, %c0_i32_0 : i32, i32
  }
  func.func @transform_1(%arg0: i32) -> (i32, i32) {
    %c0_i32 = arith.constant 0 : i32
    %c0_i32_0 = arith.constant 0 : i32
    return %c0_i32, %arg0 : i32, i32
  }
  func.func @transform_2(%arg0: i32) -> (i32, i32) {
    %c0_i32 = arith.constant 0 : i32
    %c0_i32_0 = arith.constant 0 : i32
    %c0_i32_1 = arith.constant 0 : i32
    return %c0_i32, %c0_i32_0 : i32, i32
  }
  func.func @transform_3(%arg0: i32) -> (i32, i32) {
    %c0_i32 = arith.constant 0 : i32
    %c0_i32_0 = arith.constant 0 : i32
    return %c0_i32, %arg0 : i32, i32
  }
}

module attributes {stable_mosaic.version = 11 : i64} {
  func.func @_fused_gemm_kernel(%arg0: i32, %arg1: memref<8x216xbf16, #tpu.memory_space<vmem>>, %arg2: memref<216x128xbf16, #tpu.memory_space<vmem>>, %arg3: memref<8x1xf32, #tpu.memory_space<vmem>>, %arg4: memref<8x128xbf16, #tpu.memory_space<vmem>>, %arg5: memref<8x128xbf16, #tpu.memory_space<vmem>>) attributes {dimension_semantics = [#tpu.dimension_semantics<parallel>], iteration_bounds = array<i64: 1>, scalar_prefetch = 0 : i64, scratch_operands = 0 : i64, tpu.core_type = #tpu.core_type<tc>, window_params = [{pipeline_mode = #tpu.pipeline_mode<synchronous>, transform_indices = @transform_0, window_bounds = array<i64: 8, 216>}, {transform_indices = @transform_1, window_bounds = array<i64: 216, 128>}, {pipeline_mode = #tpu.pipeline_mode<synchronous>, transform_indices = @transform_2, window_bounds = array<i64: 8, 1>}, {transform_indices = @transform_3, window_bounds = array<i64: 8, 128>}, {transform_indices = @transform_4, window_bounds = array<i64: 8, 128>}]} {
    %c0 = arith.constant 0 : index
    %c0_0 = arith.constant 0 : index
    %0 = vector.load %arg1[%c0, %c0_0] : memref<8x216xbf16, #tpu.memory_space<vmem>>, vector<8x216xbf16>
    %c0_1 = arith.constant 0 : index
    %c0_2 = arith.constant 0 : index
    %1 = vector.load %arg2[%c0_1, %c0_2] : memref<216x128xbf16, #tpu.memory_space<vmem>>, vector<216x128xbf16>
    %cst = arith.constant dense<0.000000e+00> : vector<8x128xf32>
    %2 = tpu.matmul %0, %1, %cst {dimension_numbers = #tpu.dot_dimension_numbers<[1], [0], [0], [1], [0, 0, 1, 1], [], []>} : vector<8x216xbf16>, vector<216x128xbf16>, vector<8x128xf32> -> vector<8x128xf32>
    %c0_3 = arith.constant 0 : index
    %c0_4 = arith.constant 0 : index
    %3 = vector.load %arg3[%c0_3, %c0_4] : memref<8x1xf32, #tpu.memory_space<vmem>>, vector<8x1xf32>
    %4 = vector.broadcast %3 : vector<8x1xf32> to vector<8x128xf32>
    %5 = arith.addf %2, %4 : vector<8x128xf32>
    %c0_5 = arith.constant 0 : index
    %c0_6 = arith.constant 0 : index
    %6 = vector.load %arg4[%c0_5, %c0_6] : memref<8x128xbf16, #tpu.memory_space<vmem>>, vector<8x128xbf16>
    %7 = arith.extf %6 : vector<8x128xbf16> to vector<8x128xf32>
    %8 = arith.addf %5, %7 : vector<8x128xf32>
    %9 = arith.truncf %8 : vector<8x128xf32> to vector<8x128xbf16>
    %c0_7 = arith.constant 0 : index
    %c0_8 = arith.constant 0 : index
    %10 = vector.load %arg5[%c0_7, %c0_8] : memref<8x128xbf16, #tpu.memory_space<vmem>>, vector<8x128xbf16>
    tpu.vector_store %arg5[%c0_7, %c0_8], %9 {strides = array<i32>} : memref<8x128xbf16, #tpu.memory_space<vmem>>, vector<8x128xbf16>,
    return
  }
  func.func @transform_0(%arg0: i32) -> (i32, i32) {
    %c0_i32 = arith.constant 0 : i32
    %c0_i32_0 = arith.constant 0 : i32
    %c0_i32_1 = arith.constant 0 : i32
    return %c0_i32, %c0_i32_0 : i32, i32
  }
  func.func @transform_1(%arg0: i32) -> (i32, i32) {
    %c0_i32 = arith.constant 0 : i32
    %c0_i32_0 = arith.constant 0 : i32
    return %c0_i32, %arg0 : i32, i32
  }
  func.func @transform_2(%arg0: i32) -> (i32, i32) {
    %c0_i32 = arith.constant 0 : i32
    %c0_i32_0 = arith.constant 0 : i32
    %c0_i32_1 = arith.constant 0 : i32
    return %c0_i32, %c0_i32_0 : i32, i32
  }
  func.func @transform_3(%arg0: i32) -> (i32, i32) {
    %c0_i32 = arith.constant 0 : i32
    %c0_i32_0 = arith.constant 0 : i32
    return %c0_i32, %arg0 : i32, i32
  }
  func.func @transform_4(%arg0: i32) -> (i32, i32) {
    %c0_i32 = arith.constant 0 : i32
    %c0_i32_0 = arith.constant 0 : i32
    return %c0_i32, %arg0 : i32, i32
  }
}

module attributes {stable_mosaic.version = 11 : i64} {
  func.func @_fused_gemm_kernel(%arg0: i32, %arg1: memref<4x108xbf16, #tpu.memory_space<vmem>>, %arg2: memref<108x256xbf16, #tpu.memory_space<vmem>>, %arg3: memref<4x1xf32, #tpu.memory_space<vmem>>, %arg4: memref<4x256xbf16, #tpu.memory_space<vmem>>) attributes {dimension_semantics = [#tpu.dimension_semantics<parallel>], iteration_bounds = array<i64: 2>, scalar_prefetch = 0 : i64, scratch_operands = 0 : i64, tpu.core_type = #tpu.core_type<tc>, window_params = [{pipeline_mode = #tpu.pipeline_mode<synchronous>, transform_indices = @transform_0, window_bounds = array<i64: 4, 108>}, {transform_indices = @transform_1, window_bounds = array<i64: 108, 256>}, {pipeline_mode = #tpu.pipeline_mode<synchronous>, transform_indices = @transform_2, window_bounds = array<i64: 4, 1>}, {transform_indices = @transform_3, window_bounds = array<i64: 4, 256>}]} {
    %c0 = arith.constant 0 : index
    %c0_0 = arith.constant 0 : index
    %0 = vector.load %arg1[%c0, %c0_0] : memref<4x108xbf16, #tpu.memory_space<vmem>>, vector<4x108xbf16>
    %c0_1 = arith.constant 0 : index
    %c0_2 = arith.constant 0 : index
    %1 = vector.load %arg2[%c0_1, %c0_2] : memref<108x256xbf16, #tpu.memory_space<vmem>>, vector<108x256xbf16>
    %cst = arith.constant dense<0.000000e+00> : vector<4x256xf32>
    %2 = tpu.matmul %0, %1, %cst {dimension_numbers = #tpu.dot_dimension_numbers<[1], [0], [0], [1], [0, 0, 1, 1], [], []>} : vector<4x108xbf16>, vector<108x256xbf16>, vector<4x256xf32> -> vector<4x256xf32>
    %c0_3 = arith.constant 0 : index
    %c0_4 = arith.constant 0 : index
    %3 = vector.load %arg3[%c0_3, %c0_4] : memref<4x1xf32, #tpu.memory_space<vmem>>, vector<4x1xf32>
    %4 = vector.broadcast %3 : vector<4x1xf32> to vector<4x256xf32>
    %5 = arith.addf %2, %4 : vector<4x256xf32>
    %cst_5 = arith.constant 0.000000e+00 : f32
    %6 = vector.broadcast %cst_5 : f32 to vector<4x256xf32>
    %7 = arith.maximumf %5, %6 : vector<4x256xf32>
    %8 = arith.truncf %7 : vector<4x256xf32> to vector<4x256xbf16>
    %c0_6 = arith.constant 0 : index
    %c0_7 = arith.constant 0 : index
    %9 = vector.load %arg4[%c0_6, %c0_7] : memref<4x256xbf16, #tpu.memory_space<vmem>>, vector<4x256xbf16>
    tpu.vector_store %arg4[%c0_6, %c0_7], %8 {strides = array<i32>} : memref<4x256xbf16, #tpu.memory_space<vmem>>, vector<4x256xbf16>,
    return
  }
  func.func @transform_0(%arg0: i32) -> (i32, i32) {
    %c0_i32 = arith.constant 0 : i32
    %c0_i32_0 = arith.constant 0 : i32
    %c0_i32_1 = arith.constant 0 : i32
    return %c0_i32, %c0_i32_0 : i32, i32
  }
  func.func @transform_1(%arg0: i32) -> (i32, i32) {
    %c0_i32 = arith.constant 0 : i32
    %c0_i32_0 = arith.constant 0 : i32
    return %c0_i32, %arg0 : i32, i32
  }
  func.func @transform_2(%arg0: i32) -> (i32, i32) {
    %c0_i32 = arith.constant 0 : i32
    %c0_i32_0 = arith.constant 0 : i32
    %c0_i32_1 = arith.constant 0 : i32
    return %c0_i32, %c0_i32_0 : i32, i32
  }
  func.func @transform_3(%arg0: i32) -> (i32, i32) {
    %c0_i32 = arith.constant 0 : i32
    %c0_i32_0 = arith.constant 0 : i32
    return %c0_i32, %arg0 : i32, i32
  }
}

module attributes {stable_mosaic.version = 11 : i64} {
  func.func @_fused_gemm_kernel(%arg0: i32, %arg1: memref<4x108xbf16, #tpu.memory_space<vmem>>, %arg2: memref<108x256xbf16, #tpu.memory_space<vmem>>, %arg3: memref<4x1xf32, #tpu.memory_space<vmem>>, %arg4: memref<4x256xbf16, #tpu.memory_space<vmem>>, %arg5: memref<4x256xbf16, #tpu.memory_space<vmem>>) attributes {dimension_semantics = [#tpu.dimension_semantics<parallel>], iteration_bounds = array<i64: 2>, scalar_prefetch = 0 : i64, scratch_operands = 0 : i64, tpu.core_type = #tpu.core_type<tc>, window_params = [{pipeline_mode = #tpu.pipeline_mode<synchronous>, transform_indices = @transform_0, window_bounds = array<i64: 4, 108>}, {transform_indices = @transform_1, window_bounds = array<i64: 108, 256>}, {pipeline_mode = #tpu.pipeline_mode<synchronous>, transform_indices = @transform_2, window_bounds = array<i64: 4, 1>}, {transform_indices = @transform_3, window_bounds = array<i64: 4, 256>}, {transform_indices = @transform_4, window_bounds = array<i64: 4, 256>}]} {
    %c0 = arith.constant 0 : index
    %c0_0 = arith.constant 0 : index
    %0 = vector.load %arg1[%c0, %c0_0] : memref<4x108xbf16, #tpu.memory_space<vmem>>, vector<4x108xbf16>
    %c0_1 = arith.constant 0 : index
    %c0_2 = arith.constant 0 : index
    %1 = vector.load %arg2[%c0_1, %c0_2] : memref<108x256xbf16, #tpu.memory_space<vmem>>, vector<108x256xbf16>
    %cst = arith.constant dense<0.000000e+00> : vector<4x256xf32>
    %2 = tpu.matmul %0, %1, %cst {dimension_numbers = #tpu.dot_dimension_numbers<[1], [0], [0], [1], [0, 0, 1, 1], [], []>} : vector<4x108xbf16>, vector<108x256xbf16>, vector<4x256xf32> -> vector<4x256xf32>
    %c0_3 = arith.constant 0 : index
    %c0_4 = arith.constant 0 : index
    %3 = vector.load %arg3[%c0_3, %c0_4] : memref<4x1xf32, #tpu.memory_space<vmem>>, vector<4x1xf32>
    %4 = vector.broadcast %3 : vector<4x1xf32> to vector<4x256xf32>
    %5 = arith.addf %2, %4 : vector<4x256xf32>
    %c0_5 = arith.constant 0 : index
    %c0_6 = arith.constant 0 : index
    %6 = vector.load %arg4[%c0_5, %c0_6] : memref<4x256xbf16, #tpu.memory_space<vmem>>, vector<4x256xbf16>
    %7 = arith.extf %6 : vector<4x256xbf16> to vector<4x256xf32>
    %8 = arith.addf %5, %7 : vector<4x256xf32>
    %9 = arith.truncf %8 : vector<4x256xf32> to vector<4x256xbf16>
    %c0_7 = arith.constant 0 : index
    %c0_8 = arith.constant 0 : index
    %10 = vector.load %arg5[%c0_7, %c0_8] : memref<4x256xbf16, #tpu.memory_space<vmem>>, vector<4x256xbf16>
    tpu.vector_store %arg5[%c0_7, %c0_8], %9 {strides = array<i32>} : memref<4x256xbf16, #tpu.memory_space<vmem>>, vector<4x256xbf16>,
    return
  }
  func.func @transform_0(%arg0: i32) -> (i32, i32) {
    %c0_i32 = arith.constant 0 : i32
    %c0_i32_0 = arith.constant 0 : i32
    %c0_i32_1 = arith.constant 0 : i32
    return %c0_i32, %c0_i32_0 : i32, i32
  }
  func.func @transform_1(%arg0: i32) -> (i32, i32) {
    %c0_i32 = arith.constant 0 : i32
    %c0_i32_0 = arith.constant 0 : i32
    return %c0_i32, %arg0 : i32, i32
  }
  func.func @transform_2(%arg0: i32) -> (i32, i32) {
    %c0_i32 = arith.constant 0 : i32
    %c0_i32_0 = arith.constant 0 : i32
    %c0_i32_1 = arith.constant 0 : i32
    return %c0_i32, %c0_i32_0 : i32, i32
  }
  func.func @transform_3(%arg0: i32) -> (i32, i32) {
    %c0_i32 = arith.constant 0 : i32
    %c0_i32_0 = arith.constant 0 : i32
    return %c0_i32, %arg0 : i32, i32
  }
  func.func @transform_4(%arg0: i32) -> (i32, i32) {
    %c0_i32 = arith.constant 0 : i32
    %c0_i32_0 = arith.constant 0 : i32
    return %c0_i32, %arg0 : i32, i32
  }
}

module attributes {stable_mosaic.version = 11 : i64} {
  func.func @_fused_gemm_kernel(%arg0: i32, %arg1: memref<8x108xbf16, #tpu.memory_space<vmem>>, %arg2: memref<108x128xbf16, #tpu.memory_space<vmem>>, %arg3: memref<8x1xf32, #tpu.memory_space<vmem>>, %arg4: memref<8x128xbf16, #tpu.memory_space<vmem>>) attributes {dimension_semantics = [#tpu.dimension_semantics<parallel>], iteration_bounds = array<i64: 1>, scalar_prefetch = 0 : i64, scratch_operands = 0 : i64, tpu.core_type = #tpu.core_type<tc>, window_params = [{pipeline_mode = #tpu.pipeline_mode<synchronous>, transform_indices = @transform_0, window_bounds = array<i64: 8, 108>}, {transform_indices = @transform_1, window_bounds = array<i64: 108, 128>}, {pipeline_mode = #tpu.pipeline_mode<synchronous>, transform_indices = @transform_2, window_bounds = array<i64: 8, 1>}, {transform_indices = @transform_3, window_bounds = array<i64: 8, 128>}]} {
    %c0 = arith.constant 0 : index
    %c0_0 = arith.constant 0 : index
    %0 = vector.load %arg1[%c0, %c0_0] : memref<8x108xbf16, #tpu.memory_space<vmem>>, vector<8x108xbf16>
    %c0_1 = arith.constant 0 : index
    %c0_2 = arith.constant 0 : index
    %1 = vector.load %arg2[%c0_1, %c0_2] : memref<108x128xbf16, #tpu.memory_space<vmem>>, vector<108x128xbf16>
    %cst = arith.constant dense<0.000000e+00> : vector<8x128xf32>
    %2 = tpu.matmul %0, %1, %cst {dimension_numbers = #tpu.dot_dimension_numbers<[1], [0], [0], [1], [0, 0, 1, 1], [], []>} : vector<8x108xbf16>, vector<108x128xbf16>, vector<8x128xf32> -> vector<8x128xf32>
    %c0_3 = arith.constant 0 : index
    %c0_4 = arith.constant 0 : index
    %3 = vector.load %arg3[%c0_3, %c0_4] : memref<8x1xf32, #tpu.memory_space<vmem>>, vector<8x1xf32>
    %4 = vector.broadcast %3 : vector<8x1xf32> to vector<8x128xf32>
    %5 = arith.addf %2, %4 : vector<8x128xf32>
    %6 = arith.truncf %5 : vector<8x128xf32> to vector<8x128xbf16>
    %c0_5 = arith.constant 0 : index
    %c0_6 = arith.constant 0 : index
    %7 = vector.load %arg4[%c0_5, %c0_6] : memref<8x128xbf16, #tpu.memory_space<vmem>>, vector<8x128xbf16>
    tpu.vector_store %arg4[%c0_5, %c0_6], %6 {strides = array<i32>} : memref<8x128xbf16, #tpu.memory_space<vmem>>, vector<8x128xbf16>,
    return
  }
  func.func @transform_0(%arg0: i32) -> (i32, i32) {
    %c0_i32 = arith.constant 0 : i32
    %c0_i32_0 = arith.constant 0 : i32
    %c0_i32_1 = arith.constant 0 : i32
    return %c0_i32, %c0_i32_0 : i32, i32
  }
  func.func @transform_1(%arg0: i32) -> (i32, i32) {
    %c0_i32 = arith.constant 0 : i32
    %c0_i32_0 = arith.constant 0 : i32
    return %c0_i32, %arg0 : i32, i32
  }
  func.func @transform_2(%arg0: i32) -> (i32, i32) {
    %c0_i32 = arith.constant 0 : i32
    %c0_i32_0 = arith.constant 0 : i32
    %c0_i32_1 = arith.constant 0 : i32
    return %c0_i32, %c0_i32_0 : i32, i32
  }
  func.func @transform_3(%arg0: i32) -> (i32, i32) {
    %c0_i32 = arith.constant 0 : i32
    %c0_i32_0 = arith.constant 0 : i32
    return %c0_i32, %arg0 : i32, i32
  }
}

module attributes {stable_mosaic.version = 11 : i64} {
  func.func @_fused_gemm_kernel(%arg0: i32, %arg1: memref<8x216xbf16, #tpu.memory_space<vmem>>, %arg2: memref<216x128xbf16, #tpu.memory_space<vmem>>, %arg3: memref<8x216xbf16, #tpu.memory_space<vmem>>, %arg4: memref<216x128xbf16, #tpu.memory_space<vmem>>, %arg5: memref<8x1xf32, #tpu.memory_space<vmem>>, %arg6: memref<8x128xbf16, #tpu.memory_space<vmem>>, %arg7: memref<8x128xf32, #tpu.memory_space<vmem>>) attributes {dimension_semantics = [#tpu.dimension_semantics<parallel>], iteration_bounds = array<i64: 1>, scalar_prefetch = 0 : i64, scratch_operands = 1 : i64, tpu.core_type = #tpu.core_type<tc>, window_params = [{pipeline_mode = #tpu.pipeline_mode<synchronous>, transform_indices = @transform_0, window_bounds = array<i64: 8, 216>}, {transform_indices = @transform_1, window_bounds = array<i64: 216, 128>}, {pipeline_mode = #tpu.pipeline_mode<synchronous>, transform_indices = @transform_2, window_bounds = array<i64: 8, 216>}, {transform_indices = @transform_3, window_bounds = array<i64: 216, 128>}, {pipeline_mode = #tpu.pipeline_mode<synchronous>, transform_indices = @transform_4, window_bounds = array<i64: 8, 1>}, {transform_indices = @transform_5, window_bounds = array<i64: 8, 128>}]} {
    %c0 = arith.constant 0 : index
    %c0_0 = arith.constant 0 : index
    %0 = vector.load %arg1[%c0, %c0_0] : memref<8x216xbf16, #tpu.memory_space<vmem>>, vector<8x216xbf16>
    %c0_1 = arith.constant 0 : index
    %c0_2 = arith.constant 0 : index
    %1 = vector.load %arg2[%c0_1, %c0_2] : memref<216x128xbf16, #tpu.memory_space<vmem>>, vector<216x128xbf16>
    %cst = arith.constant dense<0.000000e+00> : vector<8x128xf32>
    %2 = tpu.matmul %0, %1, %cst {dimension_numbers = #tpu.dot_dimension_numbers<[1], [0], [0], [1], [0, 0, 1, 1], [], []>} : vector<8x216xbf16>, vector<216x128xbf16>, vector<8x128xf32> -> vector<8x128xf32>
    %c0_3 = arith.constant 0 : index
    %c0_4 = arith.constant 0 : index
    %3 = vector.load %arg7[%c0_3, %c0_4] : memref<8x128xf32, #tpu.memory_space<vmem>>, vector<8x128xf32>
    tpu.vector_store %arg7[%c0_3, %c0_4], %2 {strides = array<i32>} : memref<8x128xf32, #tpu.memory_space<vmem>>, vector<8x128xf32>,
    %c0_5 = arith.constant 0 : index
    %c0_6 = arith.constant 0 : index
    %4 = vector.load %arg7[%c0_5, %c0_6] : memref<8x128xf32, #tpu.memory_space<vmem>>, vector<8x128xf32>
    %c0_7 = arith.constant 0 : index
    %c0_8 = arith.constant 0 : index
    %5 = vector.load %arg3[%c0_7, %c0_8] : memref<8x216xbf16, #tpu.memory_space<vmem>>, vector<8x216xbf16>
    %c0_9 = arith.constant 0 : index
    %c0_10 = arith.constant 0 : index
    %6 = vector.load %arg4[%c0_9, %c0_10] : memref<216x128xbf16, #tpu.memory_space<vmem>>, vector<216x128xbf16>
    %cst_11 = arith.constant dense<0.000000e+00> : vector<8x128xf32>
    %7 = tpu.matmul %5, %6, %cst_11 {dimension_numbers = #tpu.dot_dimension_numbers<[1], [0], [0], [1], [0, 0, 1, 1], [], []>} : vector<8x216xbf16>, vector<216x128xbf16>, vector<8x128xf32> -> vector<8x128xf32>
    %8 = arith.addf %4, %7 : vector<8x128xf32>
    %c0_12 = arith.constant 0 : index
    %c0_13 = arith.constant 0 : index
    %9 = vector.load %arg7[%c0_12, %c0_13] : memref<8x128xf32, #tpu.memory_space<vmem>>, vector<8x128xf32>
    tpu.vector_store %arg7[%c0_12, %c0_13], %8 {strides = array<i32>} : memref<8x128xf32, #tpu.memory_space<vmem>>, vector<8x128xf32>,
    %c0_14 = arith.constant 0 : index
    %c0_15 = arith.constant 0 : index
    %10 = vector.load %arg7[%c0_14, %c0_15] : memref<8x128xf32, #tpu.memory_space<vmem>>, vector<8x128xf32>
    %c0_16 = arith.constant 0 : index
    %c0_17 = arith.constant 0 : index
    %11 = vector.load %arg5[%c0_16, %c0_17] : memref<8x1xf32, #tpu.memory_space<vmem>>, vector<8x1xf32>
    %12 = vector.broadcast %11 : vector<8x1xf32> to vector<8x128xf32>
    %13 = arith.addf %10, %12 : vector<8x128xf32>
    %cst_18 = arith.constant 0.000000e+00 : f32
    %14 = vector.broadcast %cst_18 : f32 to vector<8x128xf32>
    %15 = arith.maximumf %13, %14 : vector<8x128xf32>
    %16 = arith.truncf %15 : vector<8x128xf32> to vector<8x128xbf16>
    %c0_19 = arith.constant 0 : index
    %c0_20 = arith.constant 0 : index
    %17 = vector.load %arg6[%c0_19, %c0_20] : memref<8x128xbf16, #tpu.memory_space<vmem>>, vector<8x128xbf16>
    tpu.vector_store %arg6[%c0_19, %c0_20], %16 {strides = array<i32>} : memref<8x128xbf16, #tpu.memory_space<vmem>>, vector<8x128xbf16>,
    return
  }
  func.func @transform_0(%arg0: i32) -> (i32, i32) {
    %c0_i32 = arith.constant 0 : i32
    %c0_i32_0 = arith.constant 0 : i32
    %c0_i32_1 = arith.constant 0 : i32
    return %c0_i32, %c0_i32_0 : i32, i32
  }
  func.func @transform_1(%arg0: i32) -> (i32, i32) {
    %c0_i32 = arith.constant 0 : i32
    %c0_i32_0 = arith.constant 0 : i32
    return %c0_i32, %arg0 : i32, i32
  }
  func.func @transform_2(%arg0: i32) -> (i32, i32) {
    %c0_i32 = arith.constant 0 : i32
    %c0_i32_0 = arith.constant 0 : i32
    %c0_i32_1 = arith.constant 0 : i32
    return %c0_i32, %c0_i32_0 : i32, i32
  }
  func.func @transform_3(%arg0: i32) -> (i32, i32) {
    %c0_i32 = arith.constant 0 : i32
    %c0_i32_0 = arith.constant 0 : i32
    return %c0_i32, %arg0 : i32, i32
  }
  func.func @transform_4(%arg0: i32) -> (i32, i32) {
    %c0_i32 = arith.constant 0 : i32
    %c0_i32_0 = arith.constant 0 : i32
    %c0_i32_1 = arith.constant 0 : i32
    return %c0_i32, %c0_i32_0 : i32, i32
  }
  func.func @transform_5(%arg0: i32) -> (i32, i32) {
    %c0_i32 = arith.constant 0 : i32
    %c0_i32_0 = arith.constant 0 : i32
    return %c0_i32, %arg0 : i32, i32
  }
}

module attributes {stable_mosaic.version = 11 : i64} {
  func.func @_fused_gemm_kernel(%arg0: i32, %arg1: memref<16x216xbf16, #tpu.memory_space<vmem>>, %arg2: memref<216x32xbf16, #tpu.memory_space<vmem>>, %arg3: memref<16x1xf32, #tpu.memory_space<vmem>>, %arg4: memref<16x32xbf16, #tpu.memory_space<vmem>>) attributes {dimension_semantics = [#tpu.dimension_semantics<parallel>], iteration_bounds = array<i64: 1>, scalar_prefetch = 0 : i64, scratch_operands = 0 : i64, tpu.core_type = #tpu.core_type<tc>, window_params = [{pipeline_mode = #tpu.pipeline_mode<synchronous>, transform_indices = @transform_0, window_bounds = array<i64: 16, 216>}, {transform_indices = @transform_1, window_bounds = array<i64: 216, 32>}, {pipeline_mode = #tpu.pipeline_mode<synchronous>, transform_indices = @transform_2, window_bounds = array<i64: 16, 1>}, {transform_indices = @transform_3, window_bounds = array<i64: 16, 32>}]} {
    %c0 = arith.constant 0 : index
    %c0_0 = arith.constant 0 : index
    %0 = vector.load %arg1[%c0, %c0_0] : memref<16x216xbf16, #tpu.memory_space<vmem>>, vector<16x216xbf16>
    %c0_1 = arith.constant 0 : index
    %c0_2 = arith.constant 0 : index
    %1 = vector.load %arg2[%c0_1, %c0_2] : memref<216x32xbf16, #tpu.memory_space<vmem>>, vector<216x32xbf16>
    %cst = arith.constant dense<0.000000e+00> : vector<16x32xf32>
    %2 = tpu.matmul %0, %1, %cst {dimension_numbers = #tpu.dot_dimension_numbers<[1], [0], [0], [1], [0, 0, 1, 1], [], []>} : vector<16x216xbf16>, vector<216x32xbf16>, vector<16x32xf32> -> vector<16x32xf32>
    %c0_3 = arith.constant 0 : index
    %c0_4 = arith.constant 0 : index
    %3 = vector.load %arg3[%c0_3, %c0_4] : memref<16x1xf32, #tpu.memory_space<vmem>>, vector<16x1xf32>
    %4 = vector.broadcast %3 : vector<16x1xf32> to vector<16x32xf32>
    %5 = arith.addf %2, %4 : vector<16x32xf32>
    %6 = arith.truncf %5 : vector<16x32xf32> to vector<16x32xbf16>
    %c0_5 = arith.constant 0 : index
    %c0_6 = arith.constant 0 : index
    %7 = vector.load %arg4[%c0_5, %c0_6] : memref<16x32xbf16, #tpu.memory_space<vmem>>, vector<16x32xbf16>
    tpu.vector_store %arg4[%c0_5, %c0_6], %6 {strides = array<i32>} : memref<16x32xbf16, #tpu.memory_space<vmem>>, vector<16x32xbf16>,
    return
  }
  func.func @transform_0(%arg0: i32) -> (i32, i32) {
    %c0_i32 = arith.constant 0 : i32
    %c0_i32_0 = arith.constant 0 : i32
    %c0_i32_1 = arith.constant 0 : i32
    return %c0_i32, %c0_i32_0 : i32, i32
  }
  func.func @transform_1(%arg0: i32) -> (i32, i32) {
    %c0_i32 = arith.constant 0 : i32
    %c0_i32_0 = arith.constant 0 : i32
    return %c0_i32, %arg0 : i32, i32
  }
  func.func @transform_2(%arg0: i32) -> (i32, i32) {
    %c0_i32 = arith.constant 0 : i32
    %c0_i32_0 = arith.constant 0 : i32
    %c0_i32_1 = arith.constant 0 : i32
    return %c0_i32, %c0_i32_0 : i32, i32
  }
  func.func @transform_3(%arg0: i32) -> (i32, i32) {
    %c0_i32 = arith.constant 0 : i32
    %c0_i32_0 = arith.constant 0 : i32
    return %c0_i32, %arg0 : i32, i32
  }
}

module attributes {stable_mosaic.version = 11 : i64} {
  func.func @_fused_gemm_kernel(%arg0: i32, %arg1: memref<16x432xbf16, #tpu.memory_space<vmem>>, %arg2: memref<432x32xbf16, #tpu.memory_space<vmem>>, %arg3: memref<16x216xbf16, #tpu.memory_space<vmem>>, %arg4: memref<216x32xbf16, #tpu.memory_space<vmem>>, %arg5: memref<16x1xf32, #tpu.memory_space<vmem>>, %arg6: memref<16x32xbf16, #tpu.memory_space<vmem>>, %arg7: memref<16x32xf32, #tpu.memory_space<vmem>>) attributes {dimension_semantics = [#tpu.dimension_semantics<parallel>], iteration_bounds = array<i64: 1>, scalar_prefetch = 0 : i64, scratch_operands = 1 : i64, tpu.core_type = #tpu.core_type<tc>, window_params = [{pipeline_mode = #tpu.pipeline_mode<synchronous>, transform_indices = @transform_0, window_bounds = array<i64: 16, 432>}, {transform_indices = @transform_1, window_bounds = array<i64: 432, 32>}, {pipeline_mode = #tpu.pipeline_mode<synchronous>, transform_indices = @transform_2, window_bounds = array<i64: 16, 216>}, {transform_indices = @transform_3, window_bounds = array<i64: 216, 32>}, {pipeline_mode = #tpu.pipeline_mode<synchronous>, transform_indices = @transform_4, window_bounds = array<i64: 16, 1>}, {transform_indices = @transform_5, window_bounds = array<i64: 16, 32>}]} {
    %c0 = arith.constant 0 : index
    %c0_0 = arith.constant 0 : index
    %0 = vector.load %arg1[%c0, %c0_0] : memref<16x432xbf16, #tpu.memory_space<vmem>>, vector<16x432xbf16>
    %c0_1 = arith.constant 0 : index
    %c0_2 = arith.constant 0 : index
    %1 = vector.load %arg2[%c0_1, %c0_2] : memref<432x32xbf16, #tpu.memory_space<vmem>>, vector<432x32xbf16>
    %cst = arith.constant dense<0.000000e+00> : vector<16x32xf32>
    %2 = tpu.matmul %0, %1, %cst {dimension_numbers = #tpu.dot_dimension_numbers<[1], [0], [0], [1], [0, 0, 1, 1], [], []>} : vector<16x432xbf16>, vector<432x32xbf16>, vector<16x32xf32> -> vector<16x32xf32>
    %c0_3 = arith.constant 0 : index
    %c0_4 = arith.constant 0 : index
    %3 = vector.load %arg7[%c0_3, %c0_4] : memref<16x32xf32, #tpu.memory_space<vmem>>, vector<16x32xf32>
    tpu.vector_store %arg7[%c0_3, %c0_4], %2 {strides = array<i32>} : memref<16x32xf32, #tpu.memory_space<vmem>>, vector<16x32xf32>,
    %c0_5 = arith.constant 0 : index
    %c0_6 = arith.constant 0 : index
    %4 = vector.load %arg7[%c0_5, %c0_6] : memref<16x32xf32, #tpu.memory_space<vmem>>, vector<16x32xf32>
    %c0_7 = arith.constant 0 : index
    %c0_8 = arith.constant 0 : index
    %5 = vector.load %arg3[%c0_7, %c0_8] : memref<16x216xbf16, #tpu.memory_space<vmem>>, vector<16x216xbf16>
    %c0_9 = arith.constant 0 : index
    %c0_10 = arith.constant 0 : index
    %6 = vector.load %arg4[%c0_9, %c0_10] : memref<216x32xbf16, #tpu.memory_space<vmem>>, vector<216x32xbf16>
    %cst_11 = arith.constant dense<0.000000e+00> : vector<16x32xf32>
    %7 = tpu.matmul %5, %6, %cst_11 {dimension_numbers = #tpu.dot_dimension_numbers<[1], [0], [0], [1], [0, 0, 1, 1], [], []>} : vector<16x216xbf16>, vector<216x32xbf16>, vector<16x32xf32> -> vector<16x32xf32>
    %8 = arith.addf %4, %7 : vector<16x32xf32>
    %c0_12 = arith.constant 0 : index
    %c0_13 = arith.constant 0 : index
    %9 = vector.load %arg7[%c0_12, %c0_13] : memref<16x32xf32, #tpu.memory_space<vmem>>, vector<16x32xf32>
    tpu.vector_store %arg7[%c0_12, %c0_13], %8 {strides = array<i32>} : memref<16x32xf32, #tpu.memory_space<vmem>>, vector<16x32xf32>,
    %c0_14 = arith.constant 0 : index
    %c0_15 = arith.constant 0 : index
    %10 = vector.load %arg7[%c0_14, %c0_15] : memref<16x32xf32, #tpu.memory_space<vmem>>, vector<16x32xf32>
    %c0_16 = arith.constant 0 : index
    %c0_17 = arith.constant 0 : index
    %11 = vector.load %arg5[%c0_16, %c0_17] : memref<16x1xf32, #tpu.memory_space<vmem>>, vector<16x1xf32>
    %12 = vector.broadcast %11 : vector<16x1xf32> to vector<16x32xf32>
    %13 = arith.addf %10, %12 : vector<16x32xf32>
    %cst_18 = arith.constant 0.000000e+00 : f32
    %14 = vector.broadcast %cst_18 : f32 to vector<16x32xf32>
    %15 = arith.maximumf %13, %14 : vector<16x32xf32>
    %16 = arith.truncf %15 : vector<16x32xf32> to vector<16x32xbf16>
    %c0_19 = arith.constant 0 : index
    %c0_20 = arith.constant 0 : index
    %17 = vector.load %arg6[%c0_19, %c0_20] : memref<16x32xbf16, #tpu.memory_space<vmem>>, vector<16x32xbf16>
    tpu.vector_store %arg6[%c0_19, %c0_20], %16 {strides = array<i32>} : memref<16x32xbf16, #tpu.memory_space<vmem>>, vector<16x32xbf16>,
    return
  }
  func.func @transform_0(%arg0: i32) -> (i32, i32) {
    %c0_i32 = arith.constant 0 : i32
    %c0_i32_0 = arith.constant 0 : i32
    %c0_i32_1 = arith.constant 0 : i32
    return %c0_i32, %c0_i32_0 : i32, i32
  }
  func.func @transform_1(%arg0: i32) -> (i32, i32) {
    %c0_i32 = arith.constant 0 : i32
    %c0_i32_0 = arith.constant 0 : i32
    return %c0_i32, %arg0 : i32, i32
  }
  func.func @transform_2(%arg0: i32) -> (i32, i32) {
    %c0_i32 = arith.constant 0 : i32
    %c0_i32_0 = arith.constant 0 : i32
    %c0_i32_1 = arith.constant 0 : i32
    return %c0_i32, %c0_i32_0 : i32, i32
  }
  func.func @transform_3(%arg0: i32) -> (i32, i32) {
    %c0_i32 = arith.constant 0 : i32
    %c0_i32_0 = arith.constant 0 : i32
    return %c0_i32, %arg0 : i32, i32
  }
  func.func @transform_4(%arg0: i32) -> (i32, i32) {
    %c0_i32 = arith.constant 0 : i32
    %c0_i32_0 = arith.constant 0 : i32
    %c0_i32_1 = arith.constant 0 : i32
    return %c0_i32, %c0_i32_0 : i32, i32
  }
  func.func @transform_5(%arg0: i32) -> (i32, i32) {
    %c0_i32 = arith.constant 0 : i32
    %c0_i32_0 = arith.constant 0 : i32
    return %c0_i32, %arg0 : i32, i32
  }
}

module attributes {stable_mosaic.version = 11 : i64} {
  func.func @_fused_gemm_kernel(%arg0: i32, %arg1: memref<16x432xbf16, #tpu.memory_space<vmem>>, %arg2: memref<432x32xbf16, #tpu.memory_space<vmem>>, %arg3: memref<16x1xf32, #tpu.memory_space<vmem>>, %arg4: memref<16x32xbf16, #tpu.memory_space<vmem>>) attributes {dimension_semantics = [#tpu.dimension_semantics<parallel>], iteration_bounds = array<i64: 1>, scalar_prefetch = 0 : i64, scratch_operands = 0 : i64, tpu.core_type = #tpu.core_type<tc>, window_params = [{pipeline_mode = #tpu.pipeline_mode<synchronous>, transform_indices = @transform_0, window_bounds = array<i64: 16, 432>}, {transform_indices = @transform_1, window_bounds = array<i64: 432, 32>}, {pipeline_mode = #tpu.pipeline_mode<synchronous>, transform_indices = @transform_2, window_bounds = array<i64: 16, 1>}, {transform_indices = @transform_3, window_bounds = array<i64: 16, 32>}]} {
    %c0 = arith.constant 0 : index
    %c0_0 = arith.constant 0 : index
    %0 = vector.load %arg1[%c0, %c0_0] : memref<16x432xbf16, #tpu.memory_space<vmem>>, vector<16x432xbf16>
    %c0_1 = arith.constant 0 : index
    %c0_2 = arith.constant 0 : index
    %1 = vector.load %arg2[%c0_1, %c0_2] : memref<432x32xbf16, #tpu.memory_space<vmem>>, vector<432x32xbf16>
    %cst = arith.constant dense<0.000000e+00> : vector<16x32xf32>
    %2 = tpu.matmul %0, %1, %cst {dimension_numbers = #tpu.dot_dimension_numbers<[1], [0], [0], [1], [0, 0, 1, 1], [], []>} : vector<16x432xbf16>, vector<432x32xbf16>, vector<16x32xf32> -> vector<16x32xf32>
    %c0_3 = arith.constant 0 : index
    %c0_4 = arith.constant 0 : index
    %3 = vector.load %arg3[%c0_3, %c0_4] : memref<16x1xf32, #tpu.memory_space<vmem>>, vector<16x1xf32>
    %4 = vector.broadcast %3 : vector<16x1xf32> to vector<16x32xf32>
    %5 = arith.addf %2, %4 : vector<16x32xf32>
    %cst_5 = arith.constant 0.000000e+00 : f32
    %6 = vector.broadcast %cst_5 : f32 to vector<16x32xf32>
    %7 = arith.maximumf %5, %6 : vector<16x32xf32>
    %8 = arith.truncf %7 : vector<16x32xf32> to vector<16x32xbf16>
    %c0_6 = arith.constant 0 : index
    %c0_7 = arith.constant 0 : index
    %9 = vector.load %arg4[%c0_6, %c0_7] : memref<16x32xbf16, #tpu.memory_space<vmem>>, vector<16x32xbf16>
    tpu.vector_store %arg4[%c0_6, %c0_7], %8 {strides = array<i32>} : memref<16x32xbf16, #tpu.memory_space<vmem>>, vector<16x32xbf16>,
    return
  }
  func.func @transform_0(%arg0: i32) -> (i32, i32) {
    %c0_i32 = arith.constant 0 : i32
    %c0_i32_0 = arith.constant 0 : i32
    %c0_i32_1 = arith.constant 0 : i32
    return %c0_i32, %c0_i32_0 : i32, i32
  }
  func.func @transform_1(%arg0: i32) -> (i32, i32) {
    %c0_i32 = arith.constant 0 : i32
    %c0_i32_0 = arith.constant 0 : i32
    return %c0_i32, %arg0 : i32, i32
  }
  func.func @transform_2(%arg0: i32) -> (i32, i32) {
    %c0_i32 = arith.constant 0 : i32
    %c0_i32_0 = arith.constant 0 : i32
    %c0_i32_1 = arith.constant 0 : i32
    return %c0_i32, %c0_i32_0 : i32, i32
  }
  func.func @transform_3(%arg0: i32) -> (i32, i32) {
    %c0_i32 = arith.constant 0 : i32
    %c0_i32_0 = arith.constant 0 : i32
    return %c0_i32, %arg0 : i32, i32
  }
}

module attributes {stable_mosaic.version = 11 : i64} {
  func.func @_fused_gemm_kernel(%arg0: i32, %arg1: memref<32x192xbf16, #tpu.memory_space<vmem>>, %arg2: memref<192x32xbf16, #tpu.memory_space<vmem>>, %arg3: memref<32x32xbf16, #tpu.memory_space<vmem>>, %arg4: memref<32x32xbf16, #tpu.memory_space<vmem>>, %arg5: memref<32x1xf32, #tpu.memory_space<vmem>>, %arg6: memref<32x32xbf16, #tpu.memory_space<vmem>>, %arg7: memref<32x32xf32, #tpu.memory_space<vmem>>) attributes {dimension_semantics = [#tpu.dimension_semantics<parallel>], iteration_bounds = array<i64: 1>, scalar_prefetch = 0 : i64, scratch_operands = 1 : i64, tpu.core_type = #tpu.core_type<tc>, window_params = [{pipeline_mode = #tpu.pipeline_mode<synchronous>, transform_indices = @transform_0, window_bounds = array<i64: 32, 192>}, {transform_indices = @transform_1, window_bounds = array<i64: 192, 32>}, {pipeline_mode = #tpu.pipeline_mode<synchronous>, transform_indices = @transform_2, window_bounds = array<i64: 32, 32>}, {transform_indices = @transform_3, window_bounds = array<i64: 32, 32>}, {pipeline_mode = #tpu.pipeline_mode<synchronous>, transform_indices = @transform_4, window_bounds = array<i64: 32, 1>}, {transform_indices = @transform_5, window_bounds = array<i64: 32, 32>}]} {
    %c0 = arith.constant 0 : index
    %c0_0 = arith.constant 0 : index
    %0 = vector.load %arg1[%c0, %c0_0] : memref<32x192xbf16, #tpu.memory_space<vmem>>, vector<32x192xbf16>
    %c0_1 = arith.constant 0 : index
    %c0_2 = arith.constant 0 : index
    %1 = vector.load %arg2[%c0_1, %c0_2] : memref<192x32xbf16, #tpu.memory_space<vmem>>, vector<192x32xbf16>
    %cst = arith.constant dense<0.000000e+00> : vector<32x32xf32>
    %2 = tpu.matmul %0, %1, %cst {dimension_numbers = #tpu.dot_dimension_numbers<[1], [0], [0], [1], [0, 0, 1, 1], [], []>} : vector<32x192xbf16>, vector<192x32xbf16>, vector<32x32xf32> -> vector<32x32xf32>
    %c0_3 = arith.constant 0 : index
    %c0_4 = arith.constant 0 : index
    %3 = vector.load %arg7[%c0_3, %c0_4] : memref<32x32xf32, #tpu.memory_space<vmem>>, vector<32x32xf32>
    tpu.vector_store %arg7[%c0_3, %c0_4], %2 {strides = array<i32>} : memref<32x32xf32, #tpu.memory_space<vmem>>, vector<32x32xf32>,
    %c0_5 = arith.constant 0 : index
    %c0_6 = arith.constant 0 : index
    %4 = vector.load %arg7[%c0_5, %c0_6] : memref<32x32xf32, #tpu.memory_space<vmem>>, vector<32x32xf32>
    %c0_7 = arith.constant 0 : index
    %c0_8 = arith.constant 0 : index
    %5 = vector.load %arg3[%c0_7, %c0_8] : memref<32x32xbf16, #tpu.memory_space<vmem>>, vector<32x32xbf16>
    %c0_9 = arith.constant 0 : index
    %c0_10 = arith.constant 0 : index
    %6 = vector.load %arg4[%c0_9, %c0_10] : memref<32x32xbf16, #tpu.memory_space<vmem>>, vector<32x32xbf16>
    %cst_11 = arith.constant dense<0.000000e+00> : vector<32x32xf32>
    %7 = tpu.matmul %5, %6, %cst_11 {dimension_numbers = #tpu.dot_dimension_numbers<[1], [0], [0], [1], [0, 0, 1, 1], [], []>} : vector<32x32xbf16>, vector<32x32xbf16>, vector<32x32xf32> -> vector<32x32xf32>
    %8 = arith.addf %4, %7 : vector<32x32xf32>
    %c0_12 = arith.constant 0 : index
    %c0_13 = arith.constant 0 : index
    %9 = vector.load %arg7[%c0_12, %c0_13] : memref<32x32xf32, #tpu.memory_space<vmem>>, vector<32x32xf32>
    tpu.vector_store %arg7[%c0_12, %c0_13], %8 {strides = array<i32>} : memref<32x32xf32, #tpu.memory_space<vmem>>, vector<32x32xf32>,
    %c0_14 = arith.constant 0 : index
    %c0_15 = arith.constant 0 : index
    %10 = vector.load %arg7[%c0_14, %c0_15] : memref<32x32xf32, #tpu.memory_space<vmem>>, vector<32x32xf32>
    %c0_16 = arith.constant 0 : index
    %c0_17 = arith.constant 0 : index
    %11 = vector.load %arg5[%c0_16, %c0_17] : memref<32x1xf32, #tpu.memory_space<vmem>>, vector<32x1xf32>
    %12 = vector.broadcast %11 : vector<32x1xf32> to vector<32x32xf32>
    %13 = arith.addf %10, %12 : vector<32x32xf32>
    %cst_18 = arith.constant 0.000000e+00 : f32
    %14 = vector.broadcast %cst_18 : f32 to vector<32x32xf32>
    %15 = arith.maximumf %13, %14 : vector<32x32xf32>
    %16 = arith.truncf %15 : vector<32x32xf32> to vector<32x32xbf16>
    %c0_19 = arith.constant 0 : index
    %c0_20 = arith.constant 0 : index
    %17 = vector.load %arg6[%c0_19, %c0_20] : memref<32x32xbf16, #tpu.memory_space<vmem>>, vector<32x32xbf16>
    tpu.vector_store %arg6[%c0_19, %c0_20], %16 {strides = array<i32>} : memref<32x32xbf16, #tpu.memory_space<vmem>>, vector<32x32xbf16>,
    return
  }
  func.func @transform_0(%arg0: i32) -> (i32, i32) {
    %c0_i32 = arith.constant 0 : i32
    %c0_i32_0 = arith.constant 0 : i32
    %c0_i32_1 = arith.constant 0 : i32
    return %c0_i32, %c0_i32_0 : i32, i32
  }
  func.func @transform_1(%arg0: i32) -> (i32, i32) {
    %c0_i32 = arith.constant 0 : i32
    %c0_i32_0 = arith.constant 0 : i32
    return %c0_i32, %arg0 : i32, i32
  }
  func.func @transform_2(%arg0: i32) -> (i32, i32) {
    %c0_i32 = arith.constant 0 : i32
    %c0_i32_0 = arith.constant 0 : i32
    %c0_i32_1 = arith.constant 0 : i32
    return %c0_i32, %c0_i32_0 : i32, i32
  }
  func.func @transform_3(%arg0: i32) -> (i32, i32) {
    %c0_i32 = arith.constant 0 : i32
    %c0_i32_0 = arith.constant 0 : i32
    return %c0_i32, %arg0 : i32, i32
  }
  func.func @transform_4(%arg0: i32) -> (i32, i32) {
    %c0_i32 = arith.constant 0 : i32
    %c0_i32_0 = arith.constant 0 : i32
    %c0_i32_1 = arith.constant 0 : i32
    return %c0_i32, %c0_i32_0 : i32, i32
  }
  func.func @transform_5(%arg0: i32) -> (i32, i32) {
    %c0_i32 = arith.constant 0 : i32
    %c0_i32_0 = arith.constant 0 : i32
    return %c0_i32, %arg0 : i32, i32
  }
}

module attributes {stable_mosaic.version = 11 : i64} {
  func.func @_fused_gemm_kernel(%arg0: i32, %arg1: memref<16x96xbf16, #tpu.memory_space<vmem>>, %arg2: memref<96x128xbf16, #tpu.memory_space<vmem>>, %arg3: memref<16x16xbf16, #tpu.memory_space<vmem>>, %arg4: memref<16x128xbf16, #tpu.memory_space<vmem>>, %arg5: memref<16x1xf32, #tpu.memory_space<vmem>>, %arg6: memref<16x128xbf16, #tpu.memory_space<vmem>>, %arg7: memref<16x128xf32, #tpu.memory_space<vmem>>) attributes {dimension_semantics = [#tpu.dimension_semantics<parallel>], iteration_bounds = array<i64: 1>, scalar_prefetch = 0 : i64, scratch_operands = 1 : i64, tpu.core_type = #tpu.core_type<tc>, window_params = [{pipeline_mode = #tpu.pipeline_mode<synchronous>, transform_indices = @transform_0, window_bounds = array<i64: 16, 96>}, {transform_indices = @transform_1, window_bounds = array<i64: 96, 128>}, {pipeline_mode = #tpu.pipeline_mode<synchronous>, transform_indices = @transform_2, window_bounds = array<i64: 16, 16>}, {transform_indices = @transform_3, window_bounds = array<i64: 16, 128>}, {pipeline_mode = #tpu.pipeline_mode<synchronous>, transform_indices = @transform_4, window_bounds = array<i64: 16, 1>}, {transform_indices = @transform_5, window_bounds = array<i64: 16, 128>}]} {
    %c0 = arith.constant 0 : index
    %c0_0 = arith.constant 0 : index
    %0 = vector.load %arg1[%c0, %c0_0] : memref<16x96xbf16, #tpu.memory_space<vmem>>, vector<16x96xbf16>
    %c0_1 = arith.constant 0 : index
    %c0_2 = arith.constant 0 : index
    %1 = vector.load %arg2[%c0_1, %c0_2] : memref<96x128xbf16, #tpu.memory_space<vmem>>, vector<96x128xbf16>
    %cst = arith.constant dense<0.000000e+00> : vector<16x128xf32>
    %2 = tpu.matmul %0, %1, %cst {dimension_numbers = #tpu.dot_dimension_numbers<[1], [0], [0], [1], [0, 0, 1, 1], [], []>} : vector<16x96xbf16>, vector<96x128xbf16>, vector<16x128xf32> -> vector<16x128xf32>
    %c0_3 = arith.constant 0 : index
    %c0_4 = arith.constant 0 : index
    %3 = vector.load %arg7[%c0_3, %c0_4] : memref<16x128xf32, #tpu.memory_space<vmem>>, vector<16x128xf32>
    tpu.vector_store %arg7[%c0_3, %c0_4], %2 {strides = array<i32>} : memref<16x128xf32, #tpu.memory_space<vmem>>, vector<16x128xf32>,
    %c0_5 = arith.constant 0 : index
    %c0_6 = arith.constant 0 : index
    %4 = vector.load %arg7[%c0_5, %c0_6] : memref<16x128xf32, #tpu.memory_space<vmem>>, vector<16x128xf32>
    %c0_7 = arith.constant 0 : index
    %c0_8 = arith.constant 0 : index
    %5 = vector.load %arg3[%c0_7, %c0_8] : memref<16x16xbf16, #tpu.memory_space<vmem>>, vector<16x16xbf16>
    %c0_9 = arith.constant 0 : index
    %c0_10 = arith.constant 0 : index
    %6 = vector.load %arg4[%c0_9, %c0_10] : memref<16x128xbf16, #tpu.memory_space<vmem>>, vector<16x128xbf16>
    %cst_11 = arith.constant dense<0.000000e+00> : vector<16x128xf32>
    %7 = tpu.matmul %5, %6, %cst_11 {dimension_numbers = #tpu.dot_dimension_numbers<[1], [0], [0], [1], [0, 0, 1, 1], [], []>} : vector<16x16xbf16>, vector<16x128xbf16>, vector<16x128xf32> -> vector<16x128xf32>
    %8 = arith.addf %4, %7 : vector<16x128xf32>
    %c0_12 = arith.constant 0 : index
    %c0_13 = arith.constant 0 : index
    %9 = vector.load %arg7[%c0_12, %c0_13] : memref<16x128xf32, #tpu.memory_space<vmem>>, vector<16x128xf32>
    tpu.vector_store %arg7[%c0_12, %c0_13], %8 {strides = array<i32>} : memref<16x128xf32, #tpu.memory_space<vmem>>, vector<16x128xf32>,
    %c0_14 = arith.constant 0 : index
    %c0_15 = arith.constant 0 : index
    %10 = vector.load %arg7[%c0_14, %c0_15] : memref<16x128xf32, #tpu.memory_space<vmem>>, vector<16x128xf32>
    %c0_16 = arith.constant 0 : index
    %c0_17 = arith.constant 0 : index
    %11 = vector.load %arg5[%c0_16, %c0_17] : memref<16x1xf32, #tpu.memory_space<vmem>>, vector<16x1xf32>
    %12 = vector.broadcast %11 : vector<16x1xf32> to vector<16x128xf32>
    %13 = arith.addf %10, %12 : vector<16x128xf32>
    %cst_18 = arith.constant 0.000000e+00 : f32
    %14 = vector.broadcast %cst_18 : f32 to vector<16x128xf32>
    %15 = arith.maximumf %13, %14 : vector<16x128xf32>
    %16 = arith.truncf %15 : vector<16x128xf32> to vector<16x128xbf16>
    %c0_19 = arith.constant 0 : index
    %c0_20 = arith.constant 0 : index
    %17 = vector.load %arg6[%c0_19, %c0_20] : memref<16x128xbf16, #tpu.memory_space<vmem>>, vector<16x128xbf16>
    tpu.vector_store %arg6[%c0_19, %c0_20], %16 {strides = array<i32>} : memref<16x128xbf16, #tpu.memory_space<vmem>>, vector<16x128xbf16>,
    return
  }
  func.func @transform_0(%arg0: i32) -> (i32, i32) {
    %c0_i32 = arith.constant 0 : i32
    %c0_i32_0 = arith.constant 0 : i32
    %c0_i32_1 = arith.constant 0 : i32
    return %c0_i32, %c0_i32_0 : i32, i32
  }
  func.func @transform_1(%arg0: i32) -> (i32, i32) {
    %c0_i32 = arith.constant 0 : i32
    %c0_i32_0 = arith.constant 0 : i32
    return %c0_i32, %arg0 : i32, i32
  }
  func.func @transform_2(%arg0: i32) -> (i32, i32) {
    %c0_i32 = arith.constant 0 : i32
    %c0_i32_0 = arith.constant 0 : i32
    %c0_i32_1 = arith.constant 0 : i32
    return %c0_i32, %c0_i32_0 : i32, i32
  }
  func.func @transform_3(%arg0: i32) -> (i32, i32) {
    %c0_i32 = arith.constant 0 : i32
    %c0_i32_0 = arith.constant 0 : i32
    return %c0_i32, %arg0 : i32, i32
  }
  func.func @transform_4(%arg0: i32) -> (i32, i32) {
    %c0_i32 = arith.constant 0 : i32
    %c0_i32_0 = arith.constant 0 : i32
    %c0_i32_1 = arith.constant 0 : i32
    return %c0_i32, %c0_i32_0 : i32, i32
  }
  func.func @transform_5(%arg0: i32) -> (i32, i32) {
    %c0_i32 = arith.constant 0 : i32
    %c0_i32_0 = arith.constant 0 : i32
    return %c0_i32, %arg0 : i32, i32
  }
}

</mosaic_0001>

<bundles_post_ra>
// kernel: hourglassup_forward.28
= control target key start
LH: loop header
LB: loop body
LE: loop exit
PB: predicated region body
PF: predicated region fallthrough
CT: control target
= control target key end

     0   :  { %v178_v0 = vmov 0.0   ;;  %vm179_vm0 = vmmov 0   ;;  %v180_v2 = vmov 0   ;;  %vm81_vm1 = vcmask 1045504   ;;  %s231_s1 = inlined_call_operand.vmem [shape: bf16[108,32], index: 1, kind: input, shape index: {}]   ;;  %s232_s2 = inlined_call_operand.vmem [shape: f32[8,1], index: 2, kind: input, shape index: {}]   ;;  %s233_s0 = inlined_call_operand.vmem [shape: bf16[8,108], index: 0, kind: input, shape index: {}]   ;;  %s234_s3 = inlined_call_operand.vmem [shape: bf16[8,32], index: 3, kind: output, shape index: {}]  }
   0x1   :  { %149 = vmatprep.subr.bf16.mxu0 %v178_v0  ;;  %v171_v1 = vld [vmem:[%s231_s1] sm:$0xff]   ;;  %163 = vmatprep.mubr.msk.bf16.mxu0 %vm179_vm0, %v178_v0  ;;  %v172_v3 = vld [vmem:[%s231_s1 + $0x8] sm:$0xff]   ;;  %v173_v4 = vld [vmem:[%s231_s1 + $0x10] sm:$0xff]   ;;  %vm77_vm2 = vcmask 883712   ;;  %vm127_vm3 = vcmask 257024  }
   0x2   :  { %170 = vset.pattern.permute.xlu0 %v180_v2  ;;  %150 = vmatpush3.bf16.msra.mxu0 %v171_v1  ;;  %v30_v5 = vld [vmem:[%s232_s2] sm:$0xff]  ;;  %v174_v6 = vld [vmem:[%s231_s1 + $0x18] sm:$0xff]   ;;  %v176_v8 = vld [vmem:[%s231_s1 + $0x28] sm:$0xff]  }
   0x3   :  { %151 = vmatprep.subr.bf16.mxu0 %v178_v0  ;;  %33 = vperm.xlu0 %170, %v30_v5   ;;  %v175_v7 = vld [vmem:[%s231_s1 + $0x20] sm:$0xff]   ;;  %v177_v9 = vld [vmem:[%s231_s1 + $0x30] sm:$0x3f]  }
   0x4   :  { %v83_v10 = vsel %vm81_vm1, %v177_v9, 0  ;;  %v15_v11 = vld [vmem:[%s233_s0] sm:$0xf] }
   0x6   :  { %152 = vmatpush3.bf16.msra.mxu0 %v172_v3 }
   0x7   :  { %153 = vmatprep.subr.bf16.mxu0 %v178_v0 }
   0xa   :  { %154 = vmatpush3.bf16.msra.mxu0 %v173_v4 }
   0xb   :  { %155 = vmatprep.subr.bf16.mxu0 %v178_v0 }
   0xe   :  { %156 = vmatpush3.bf16.msra.mxu0 %v174_v6 }
   0xf   :  { %157 = vmatprep.subr.bf16.mxu0 %v178_v0 }
  0x12   :  { %158 = vmatpush3.bf16.msra.mxu0 %v175_v7 }
  0x13   :  { %159 = vmatprep.subr.bf16.mxu0 %v178_v0 }
  0x16   :  { %160 = vmatpush3.bf16.msra.mxu0 %v176_v8 }
  0x17   :  { %161 = vmatprep.subr.bf16.mxu0 %v178_v0 }
  0x1a   :  { %162 = vmatpush3.bf16.msra.mxu0 %v83_v10 }
  0x1d   :  { %164 = vmatmul.mubr.msk.bf16.vlgmr.msra.gmra.mrb[0].mxu0 %vm77_vm2, %v15_v11 }
  0x82   :  { %v34_v12 = vpop.permute.xlu0 %33 }
  0xf0   :  { %v119_v13 = vpop.f32.mrb[0].mxu0 }
  0xf1   :  { %v120_v14 = vadd.f32 %v119_v13, %v34_v12  ;;  %v165_v15 = vpop.f32.mrb[1].mxu0 }
  0xf2   :  { %v122_v16 = vpop.f32.mrb[2].mxu0 }
  0xf3   :  { %v125_v17 = vmax.f32 %v120_v14, 0.0  ;;  %v166_v18 = vpop.f32.mrb[3].mxu0 }
  0xf5   :  { %v126_v19 = vpack.c.bf16 %v125_v17, %v125_v17 }
  0xf7   :  { %128 = vst.msk [vmem:[%s234_s3] sm:$0xf] %vm127_vm3, %v126_v19 }

// kernel: hourglassup_forward.29
= control target key start
LH: loop header
LB: loop body
LE: loop exit
PB: predicated region body
PF: predicated region fallthrough
CT: control target
= control target key end

     0   :  { %v227_v0 = vmov 0   ;;  %vm136_vm0 = vcmask 719872   ;;  %vm140_vm1 = vcmask 1043456   ;;  %vm186_vm2 = vcmask 257024   ;;  %s299_s1 = inlined_call_operand.vmem [shape: bf16[216,32], index: 1, kind: input, shape index: {}]   ;;  %s300_s0 = inlined_call_operand.vmem [shape: bf16[8,216], index: 0, kind: input, shape index: {}]   ;;  %s301_s2 = inlined_call_operand.vmem [shape: f32[8,1], index: 2, kind: input, shape index: {}]   ;;  %s302_s3 = inlined_call_operand.vmem [shape: bf16[8,32], index: 3, kind: output, shape index: {}]  }
   0x1   :  { %144 = vmatprep.subr.bf16.mxu0 %v227_v0  ;;  %v211_v1 = vld [vmem:[%s299_s1] sm:$0xff]   ;;  %210 = vset.pattern.permute.xlu0 %v227_v0  ;;  %v212_v2 = vld [vmem:[%s299_s1 + $0x8] sm:$0xff]   ;;  %v213_v3 = vld [vmem:[%s299_s1 + $0x10] sm:$0xff]  }
   0x2   :  { %145 = vmatpush1.bf16.msra.mxu0 %v211_v1  ;;  %v214_v4 = vld [vmem:[%s299_s1 + $0x18] sm:$0xff]   ;;  %v15_v5 = vld [vmem:[%s300_s0] sm:$0xff]  ;;  %v216_v9 = vld [vmem:[%s299_s1 + $0x28] sm:$0xff]  }
   0x3   :  { %146 = vmatprep.subr.bf16.mxu0 %v227_v0  ;;  %v215_v6 = vld [vmem:[%s299_s1 + $0x20] sm:$0xff]   ;;  %v193_v7 = vcombine.high %v15_v5, %v15_v5  ;;  %v217_v10 = vld [vmem:[%s299_s1 + $0x30] sm:$0xff]   ;;  %v218_v11 = vld [vmem:[%s299_s1 + $0x38] sm:$0xff]   ;;  %v192_v19 = vcombine.low %v15_v5, %v15_v5 }
   0x4   :  { %v43_v8 = vld [vmem:[%s301_s2] sm:$0xff]  ;;  %v220_v13 = vld [vmem:[%s299_s1 + $0x48] sm:$0xff]   ;;  %v221_v14 = vld [vmem:[%s299_s1 + $0x50] sm:$0xff]  }
   0x5   :  { %46 = vperm.xlu0 %210, %v43_v8   ;;  %208 = vmatprep.mubr.msk.bf16.mxu0 %vm136_vm0, %v193_v7  ;;  %v219_v12 = vld [vmem:[%s299_s1 + $0x40] sm:$0xff]   ;;  %v222_v15 = vld [vmem:[%s299_s1 + $0x58] sm:$0xff]   ;;  %v224_v17 = vld [vmem:[%s299_s1 + $0x68] ss:$0 sps:$4 sm:$0xff]  }
   0x6   :  { %147 = vmatpush1.bf16.msra.mxu0 %v212_v2  ;;  %v223_v16 = vld [vmem:[%s299_s1 + $0x60] sm:$0xff]   ;;  %v142_v18 = vsel %vm140_vm1, %v224_v17, 0 }
   0x7   :  { %148 = vmatprep.subr.bf16.mxu0 %v227_v0 }
   0xa   :  { %149 = vmatpush1.bf16.msra.mxu0 %v213_v3 }
   0xb   :  { %150 = vmatprep.subr.bf16.mxu0 %v227_v0 }
   0xe   :  { %151 = vmatpush1.bf16.msra.mxu0 %v214_v4 }
   0xf   :  { %152 = vmatprep.subr.bf16.mxu0 %v227_v0 }
  0x12   :  { %153 = vmatpush1.bf16.msra.mxu0 %v215_v6 }
  0x13   :  { %154 = vmatprep.subr.bf16.mxu0 %v227_v0 }
  0x16   :  { %155 = vmatpush1.bf16.msra.mxu0 %v216_v9 }
  0x17   :  { %156 = vmatprep.subr.bf16.mxu0 %v227_v0 }
  0x1a   :  { %157 = vmatpush1.bf16.msra.mxu0 %v217_v10 }
  0x1b   :  { %158 = vmatprep.subr.bf16.mxu0 %v227_v0 }
  0x1e   :  { %159 = vmatpush1.bf16.msra.mxu0 %v218_v11 }
  0x1f   :  { %160 = vmatprep.subr.bf16.mxu0 %v227_v0 }
  0x22   :  { %161 = vmatpush1.bf16.msra.mxu0 %v219_v12 }
  0x23   :  { %162 = vmatprep.subr.bf16.mxu0 %v227_v0 }
  0x26   :  { %163 = vmatpush1.bf16.msra.mxu0 %v220_v13 }
  0x27   :  { %164 = vmatprep.subr.bf16.mxu0 %v227_v0 }
  0x2a   :  { %165 = vmatpush1.bf16.msra.mxu0 %v221_v14 }
  0x2b   :  { %166 = vmatprep.subr.bf16.mxu0 %v227_v0 }
  0x2e   :  { %167 = vmatpush1.bf16.msra.mxu0 %v222_v15 }
  0x2f   :  { %168 = vmatprep.subr.bf16.mxu0 %v227_v0 }
  0x32   :  { %169 = vmatpush1.bf16.msra.mxu0 %v223_v16 }
  0x33   :  { %170 = vmatprep.subr.bf16.mxu0 %v227_v0 }
  0x36   :  { %171 = vmatpush1.bf16.msra.mxu0 %v142_v18 }
  0x39   :  { %177 = vmatmul.mubr.bf16.vlgmr.msra.gmra.mrb[0].mxu0 %v192_v19 }
  0x84   :  { %v47_v20 = vpop.permute.xlu0 %46 }
 0x10c   :  { %v178_v21 = vpop.f32.mrb[0].mxu0 }
 0x10d   :  { %v179_v22 = vadd.f32 %v178_v21, %v47_v20  ;;  %v180_v23 = vpop.f32.mrb[1].mxu0 }
 0x10e   :  { %v181_v24 = vpop.f32.mrb[2].mxu0 }
 0x10f   :  { %v184_v25 = vmax.f32 %v179_v22, 0.0  ;;  %v182_v26 = vpop.f32.mrb[3].mxu0 }
 0x111   :  { %v185_v27 = vpack.c.bf16 %v184_v25, %v184_v25 }
 0x113   :  { %187 = vst.msk [vmem:[%s302_s3] sm:$0xf] %vm186_vm2, %v185_v27 }

// kernel: hourglassup_forward.31
= control target key start
LH: loop header
LB: loop body
LE: loop exit
PB: predicated region body
PF: predicated region fallthrough
CT: control target
= control target key end

     0   :  { %v232_v0 = vmov 0   ;;  %vm139_vm0 = vcmask 719872   ;;  %vm143_vm1 = vcmask 1043456   ;;  %vm191_vm2 = vcmask 257024   ;;  %s312_s1 = inlined_call_operand.vmem [shape: bf16[216,32], index: 1, kind: input, shape index: {}]   ;;  %s313_s0 = inlined_call_operand.vmem [shape: bf16[8,216], index: 0, kind: input, shape index: {}]   ;;  %s314_s2 = inlined_call_operand.vmem [shape: f32[8,1], index: 2, kind: input, shape index: {}]   ;;  %s315_s3 = inlined_call_operand.vmem [shape: bf16[8,32], index: 3, kind: input, shape index: {}]   ;;  %s316_s4 = inlined_call_operand.vmem [shape: bf16[8,32], index: 4, kind: output, shape index: {}]  }
   0x1   :  { %147 = vmatprep.subr.bf16.mxu0 %v232_v0  ;;  %v216_v1 = vld [vmem:[%s312_s1] sm:$0xff]   ;;  %215 = vset.pattern.permute.xlu0 %v232_v0  ;;  %v217_v2 = vld [vmem:[%s312_s1 + $0x8] sm:$0xff]   ;;  %v218_v3 = vld [vmem:[%s312_s1 + $0x10] sm:$0xff]  }
   0x2   :  { %148 = vmatpush1.bf16.msra.mxu0 %v216_v1  ;;  %v219_v4 = vld [vmem:[%s312_s1 + $0x18] sm:$0xff]   ;;  %v18_v5 = vld [vmem:[%s313_s0] sm:$0xff]  ;;  %v221_v9 = vld [vmem:[%s312_s1 + $0x28] sm:$0xff]  }
   0x3   :  { %149 = vmatprep.subr.bf16.mxu0 %v232_v0  ;;  %v220_v6 = vld [vmem:[%s312_s1 + $0x20] sm:$0xff]   ;;  %v198_v7 = vcombine.high %v18_v5, %v18_v5  ;;  %v222_v10 = vld [vmem:[%s312_s1 + $0x30] sm:$0xff]   ;;  %v223_v11 = vld [vmem:[%s312_s1 + $0x38] sm:$0xff]   ;;  %v197_v19 = vcombine.low %v18_v5, %v18_v5 }
   0x4   :  { %v46_v8 = vld [vmem:[%s314_s2] sm:$0xff]  ;;  %v225_v13 = vld [vmem:[%s312_s1 + $0x48] sm:$0xff]   ;;  %v226_v14 = vld [vmem:[%s312_s1 + $0x50] sm:$0xff]  }
   0x5   :  { %49 = vperm.xlu0 %215, %v46_v8   ;;  %213 = vmatprep.mubr.msk.bf16.mxu0 %vm139_vm0, %v198_v7  ;;  %v224_v12 = vld [vmem:[%s312_s1 + $0x40] sm:$0xff]   ;;  %v227_v15 = vld [vmem:[%s312_s1 + $0x58] sm:$0xff]   ;;  %v229_v17 = vld [vmem:[%s312_s1 + $0x68] ss:$0 sps:$4 sm:$0xff]  }
   0x6   :  { %150 = vmatpush1.bf16.msra.mxu0 %v217_v2  ;;  %v228_v16 = vld [vmem:[%s312_s1 + $0x60] sm:$0xff]   ;;  %v145_v18 = vsel %vm143_vm1, %v229_v17, 0 }
   0x7   :  { %151 = vmatprep.subr.bf16.mxu0 %v232_v0  ;;  %v187_v20 = vld [vmem:[%s315_s3] sm:$0xf] }
   0x8   :  { %v188_v22 = vunpack.c.l.bf16 %v187_v20 }
   0xa   :  { %152 = vmatpush1.bf16.msra.mxu0 %v218_v3 }
   0xb   :  { %153 = vmatprep.subr.bf16.mxu0 %v232_v0 }
   0xe   :  { %154 = vmatpush1.bf16.msra.mxu0 %v219_v4 }
   0xf   :  { %155 = vmatprep.subr.bf16.mxu0 %v232_v0 }
  0x12   :  { %156 = vmatpush1.bf16.msra.mxu0 %v220_v6 }
  0x13   :  { %157 = vmatprep.subr.bf16.mxu0 %v232_v0 }
  0x16   :  { %158 = vmatpush1.bf16.msra.mxu0 %v221_v9 }
  0x17   :  { %159 = vmatprep.subr.bf16.mxu0 %v232_v0 }
  0x1a   :  { %160 = vmatpush1.bf16.msra.mxu0 %v222_v10 }
  0x1b   :  { %161 = vmatprep.subr.bf16.mxu0 %v232_v0 }
  0x1e   :  { %162 = vmatpush1.bf16.msra.mxu0 %v223_v11 }
  0x1f   :  { %163 = vmatprep.subr.bf16.mxu0 %v232_v0 }
  0x22   :  { %164 = vmatpush1.bf16.msra.mxu0 %v224_v12 }
  0x23   :  { %165 = vmatprep.subr.bf16.mxu0 %v232_v0 }
  0x26   :  { %166 = vmatpush1.bf16.msra.mxu0 %v225_v13 }
  0x27   :  { %167 = vmatprep.subr.bf16.mxu0 %v232_v0 }
  0x2a   :  { %168 = vmatpush1.bf16.msra.mxu0 %v226_v14 }
  0x2b   :  { %169 = vmatprep.subr.bf16.mxu0 %v232_v0 }
  0x2e   :  { %170 = vmatpush1.bf16.msra.mxu0 %v227_v15 }
  0x2f   :  { %171 = vmatprep.subr.bf16.mxu0 %v232_v0 }
  0x32   :  { %172 = vmatpush1.bf16.msra.mxu0 %v228_v16 }
  0x33   :  { %173 = vmatprep.subr.bf16.mxu0 %v232_v0 }
  0x36   :  { %174 = vmatpush1.bf16.msra.mxu0 %v145_v18 }
  0x39   :  { %180 = vmatmul.mubr.bf16.vlgmr.msra.gmra.mrb[0].mxu0 %v197_v19 }
  0x84   :  { %v50_v21 = vpop.permute.xlu0 %49 }
 0x10c   :  { %v181_v23 = vpop.f32.mrb[0].mxu0 }
 0x10d   :  { %v182_v24 = vadd.f32 %v181_v23, %v50_v21  ;;  %v183_v25 = vpop.f32.mrb[1].mxu0 }
 0x10e   :  { %v184_v26 = vpop.f32.mrb[2].mxu0 }
 0x10f   :  { %v189_v27 = vadd.f32 %v188_v22, %v182_v24  ;;  %v185_v28 = vpop.f32.mrb[3].mxu0 }
 0x111   :  { %v190_v29 = vpack.c.bf16 %v189_v27, %v189_v27 }
 0x113   :  { %192 = vst.msk [vmem:[%s316_s4] sm:$0xf] %vm191_vm2, %v190_v29 }

// kernel: hourglassup_forward.24
= control target key start
LH: loop header
LB: loop body
LE: loop exit
PB: predicated region body
PF: predicated region fallthrough
CT: control target
= control target key end

     0   :  { %v177_v0 = vmov 0.0   ;;  %vm178_vm0 = vmmov 0   ;;  %v179_v2 = vmov 0   ;;  %vm81_vm1 = vcmask 1045504   ;;  %s230_s1 = inlined_call_operand.vmem [shape: bf16[108,128], index: 1, kind: input, shape index: {}]   ;;  %s231_s2 = inlined_call_operand.vmem [shape: f32[8,1], index: 2, kind: input, shape index: {}]   ;;  %s232_s0 = inlined_call_operand.vmem [shape: bf16[8,108], index: 0, kind: input, shape index: {}]   ;;  %s233_s3 = inlined_call_operand.vmem [shape: bf16[8,128], index: 3, kind: output, shape index: {}]  }
   0x1   :  { %148 = vmatprep.subr.bf16.mxu0 %v177_v0  ;;  %v170_v1 = vld [vmem:[%s230_s1] sm:$0xff]   ;;  %162 = vmatprep.mubr.msk.bf16.mxu0 %vm178_vm0, %v177_v0  ;;  %v171_v3 = vld [vmem:[%s230_s1 + $0x8] sm:$0xff]   ;;  %v172_v4 = vld [vmem:[%s230_s1 + $0x10] sm:$0xff]   ;;  %vm77_vm2 = vcmask 883712  }
   0x2   :  { %169 = vset.pattern.permute.xlu0 %v179_v2  ;;  %149 = vmatpush3.bf16.msra.mxu0 %v170_v1  ;;  %v30_v5 = vld [vmem:[%s231_s2] sm:$0xff]  ;;  %v173_v6 = vld [vmem:[%s230_s1 + $0x18] sm:$0xff]   ;;  %v175_v8 = vld [vmem:[%s230_s1 + $0x28] sm:$0xff]  }
   0x3   :  { %150 = vmatprep.subr.bf16.mxu0 %v177_v0  ;;  %33 = vperm.xlu0 %169, %v30_v5   ;;  %v174_v7 = vld [vmem:[%s230_s1 + $0x20] sm:$0xff]   ;;  %v176_v9 = vld [vmem:[%s230_s1 + $0x30] sm:$0x3f]  }
   0x4   :  { %v83_v10 = vsel %vm81_vm1, %v176_v9, 0  ;;  %v15_v11 = vld [vmem:[%s232_s0] sm:$0xf] }
   0x6   :  { %151 = vmatpush3.bf16.msra.mxu0 %v171_v3 }
   0x7   :  { %152 = vmatprep.subr.bf16.mxu0 %v177_v0 }
   0xa   :  { %153 = vmatpush3.bf16.msra.mxu0 %v172_v4 }
   0xb   :  { %154 = vmatprep.subr.bf16.mxu0 %v177_v0 }
   0xe   :  { %155 = vmatpush3.bf16.msra.mxu0 %v173_v6 }
   0xf   :  { %156 = vmatprep.subr.bf16.mxu0 %v177_v0 }
  0x12   :  { %157 = vmatpush3.bf16.msra.mxu0 %v174_v7 }
  0x13   :  { %158 = vmatprep.subr.bf16.mxu0 %v177_v0 }
  0x16   :  { %159 = vmatpush3.bf16.msra.mxu0 %v175_v8 }
  0x17   :  { %160 = vmatprep.subr.bf16.mxu0 %v177_v0 }
  0x1a   :  { %161 = vmatpush3.bf16.msra.mxu0 %v83_v10 }
  0x1d   :  { %163 = vmatmul.mubr.msk.bf16.vlgmr.msra.gmra.mrb[0].mxu0 %vm77_vm2, %v15_v11 }
  0x82   :  { %v34_v12 = vpop.permute.xlu0 %33 }
  0xf0   :  { %v119_v13 = vpop.f32.mrb[0].mxu0 }
  0xf1   :  { %v120_v14 = vadd.f32 %v119_v13, %v34_v12  ;;  %v164_v15 = vpop.f32.mrb[1].mxu0 }
  0xf2   :  { %v122_v16 = vpop.f32.mrb[2].mxu0 }
  0xf3   :  { %v125_v17 = vmax.f32 %v120_v14, 0.0  ;;  %v165_v18 = vpop.f32.mrb[3].mxu0 }
  0xf5   :  { %v126_v19 = vpack.c.bf16 %v125_v17, %v125_v17 }
  0xf7   :  { %127 = vst [vmem:[%s233_s3] sm:$0xf] %v126_v19 }

// kernel: hourglassup_forward.25
= control target key start
LH: loop header
LB: loop body
LE: loop exit
PB: predicated region body
PF: predicated region fallthrough
CT: control target
= control target key end

     0   :  { %v226_v0 = vmov 0   ;;  %vm136_vm0 = vcmask 719872   ;;  %vm140_vm1 = vcmask 1043456   ;;  %s298_s1 = inlined_call_operand.vmem [shape: bf16[216,128], index: 1, kind: input, shape index: {}]   ;;  %s299_s0 = inlined_call_operand.vmem [shape: bf16[8,216], index: 0, kind: input, shape index: {}]   ;;  %s300_s2 = inlined_call_operand.vmem [shape: f32[8,1], index: 2, kind: input, shape index: {}]   ;;  %s301_s3 = inlined_call_operand.vmem [shape: bf16[8,128], index: 3, kind: output, shape index: {}]  }
   0x1   :  { %144 = vmatprep.subr.bf16.mxu0 %v226_v0  ;;  %v210_v1 = vld [vmem:[%s298_s1] sm:$0xff]   ;;  %209 = vset.pattern.permute.xlu0 %v226_v0  ;;  %v211_v2 = vld [vmem:[%s298_s1 + $0x8] sm:$0xff]   ;;  %v212_v3 = vld [vmem:[%s298_s1 + $0x10] sm:$0xff]  }
   0x2   :  { %145 = vmatpush1.bf16.msra.mxu0 %v210_v1  ;;  %v213_v4 = vld [vmem:[%s298_s1 + $0x18] sm:$0xff]   ;;  %v15_v5 = vld [vmem:[%s299_s0] sm:$0xff]  ;;  %v215_v9 = vld [vmem:[%s298_s1 + $0x28] sm:$0xff]  }
   0x3   :  { %146 = vmatprep.subr.bf16.mxu0 %v226_v0  ;;  %v214_v6 = vld [vmem:[%s298_s1 + $0x20] sm:$0xff]   ;;  %v192_v7 = vcombine.high %v15_v5, %v15_v5  ;;  %v216_v10 = vld [vmem:[%s298_s1 + $0x30] sm:$0xff]   ;;  %v217_v11 = vld [vmem:[%s298_s1 + $0x38] sm:$0xff]   ;;  %v191_v19 = vcombine.low %v15_v5, %v15_v5 }
   0x4   :  { %v43_v8 = vld [vmem:[%s300_s2] sm:$0xff]  ;;  %v219_v13 = vld [vmem:[%s298_s1 + $0x48] sm:$0xff]   ;;  %v220_v14 = vld [vmem:[%s298_s1 + $0x50] sm:$0xff]  }
   0x5   :  { %46 = vperm.xlu0 %209, %v43_v8   ;;  %207 = vmatprep.mubr.msk.bf16.mxu0 %vm136_vm0, %v192_v7  ;;  %v218_v12 = vld [vmem:[%s298_s1 + $0x40] sm:$0xff]   ;;  %v221_v15 = vld [vmem:[%s298_s1 + $0x58] sm:$0xff]   ;;  %v223_v17 = vld [vmem:[%s298_s1 + $0x68] ss:$0 sps:$4 sm:$0xff]  }
   0x6   :  { %147 = vmatpush1.bf16.msra.mxu0 %v211_v2  ;;  %v222_v16 = vld [vmem:[%s298_s1 + $0x60] sm:$0xff]   ;;  %v142_v18 = vsel %vm140_vm1, %v223_v17, 0 }
   0x7   :  { %148 = vmatprep.subr.bf16.mxu0 %v226_v0 }
   0xa   :  { %149 = vmatpush1.bf16.msra.mxu0 %v212_v3 }
   0xb   :  { %150 = vmatprep.subr.bf16.mxu0 %v226_v0 }
   0xe   :  { %151 = vmatpush1.bf16.msra.mxu0 %v213_v4 }
   0xf   :  { %152 = vmatprep.subr.bf16.mxu0 %v226_v0 }
  0x12   :  { %153 = vmatpush1.bf16.msra.mxu0 %v214_v6 }
  0x13   :  { %154 = vmatprep.subr.bf16.mxu0 %v226_v0 }
  0x16   :  { %155 = vmatpush1.bf16.msra.mxu0 %v215_v9 }
  0x17   :  { %156 = vmatprep.subr.bf16.mxu0 %v226_v0 }
  0x1a   :  { %157 = vmatpush1.bf16.msra.mxu0 %v216_v10 }
  0x1b   :  { %158 = vmatprep.subr.bf16.mxu0 %v226_v0 }
  0x1e   :  { %159 = vmatpush1.bf16.msra.mxu0 %v217_v11 }
  0x1f   :  { %160 = vmatprep.subr.bf16.mxu0 %v226_v0 }
  0x22   :  { %161 = vmatpush1.bf16.msra.mxu0 %v218_v12 }
  0x23   :  { %162 = vmatprep.subr.bf16.mxu0 %v226_v0 }
  0x26   :  { %163 = vmatpush1.bf16.msra.mxu0 %v219_v13 }
  0x27   :  { %164 = vmatprep.subr.bf16.mxu0 %v226_v0 }
  0x2a   :  { %165 = vmatpush1.bf16.msra.mxu0 %v220_v14 }
  0x2b   :  { %166 = vmatprep.subr.bf16.mxu0 %v226_v0 }
  0x2e   :  { %167 = vmatpush1.bf16.msra.mxu0 %v221_v15 }
  0x2f   :  { %168 = vmatprep.subr.bf16.mxu0 %v226_v0 }
  0x32   :  { %169 = vmatpush1.bf16.msra.mxu0 %v222_v16 }
  0x33   :  { %170 = vmatprep.subr.bf16.mxu0 %v226_v0 }
  0x36   :  { %171 = vmatpush1.bf16.msra.mxu0 %v142_v18 }
  0x39   :  { %177 = vmatmul.mubr.bf16.vlgmr.msra.gmra.mrb[0].mxu0 %v191_v19 }
  0x84   :  { %v47_v20 = vpop.permute.xlu0 %46 }
 0x10c   :  { %v178_v21 = vpop.f32.mrb[0].mxu0 }
 0x10d   :  { %v179_v22 = vadd.f32 %v178_v21, %v47_v20  ;;  %v180_v23 = vpop.f32.mrb[1].mxu0 }
 0x10e   :  { %v181_v24 = vpop.f32.mrb[2].mxu0 }
 0x10f   :  { %v184_v25 = vmax.f32 %v179_v22, 0.0  ;;  %v182_v26 = vpop.f32.mrb[3].mxu0 }
 0x111   :  { %v185_v27 = vpack.c.bf16 %v184_v25, %v184_v25 }
 0x113   :  { %186 = vst [vmem:[%s301_s3] sm:$0xf] %v185_v27 }

// kernel: hourglassup_forward.27
= control target key start
LH: loop header
LB: loop body
LE: loop exit
PB: predicated region body
PF: predicated region fallthrough
CT: control target
= control target key end

     0   :  { %v231_v0 = vmov 0   ;;  %vm139_vm0 = vcmask 719872   ;;  %vm143_vm1 = vcmask 1043456   ;;  %s311_s1 = inlined_call_operand.vmem [shape: bf16[216,128], index: 1, kind: input, shape index: {}]   ;;  %s312_s0 = inlined_call_operand.vmem [shape: bf16[8,216], index: 0, kind: input, shape index: {}]   ;;  %s313_s2 = inlined_call_operand.vmem [shape: f32[8,1], index: 2, kind: input, shape index: {}]   ;;  %s314_s3 = inlined_call_operand.vmem [shape: bf16[8,128], index: 3, kind: input, shape index: {}]   ;;  %s315_s4 = inlined_call_operand.vmem [shape: bf16[8,128], index: 4, kind: output, shape index: {}]  }
   0x1   :  { %147 = vmatprep.subr.bf16.mxu0 %v231_v0  ;;  %v215_v1 = vld [vmem:[%s311_s1] sm:$0xff]   ;;  %214 = vset.pattern.permute.xlu0 %v231_v0  ;;  %v216_v2 = vld [vmem:[%s311_s1 + $0x8] sm:$0xff]   ;;  %v217_v3 = vld [vmem:[%s311_s1 + $0x10] sm:$0xff]  }
   0x2   :  { %148 = vmatpush1.bf16.msra.mxu0 %v215_v1  ;;  %v218_v4 = vld [vmem:[%s311_s1 + $0x18] sm:$0xff]   ;;  %v18_v5 = vld [vmem:[%s312_s0] sm:$0xff]  ;;  %v220_v9 = vld [vmem:[%s311_s1 + $0x28] sm:$0xff]  }
   0x3   :  { %149 = vmatprep.subr.bf16.mxu0 %v231_v0  ;;  %v219_v6 = vld [vmem:[%s311_s1 + $0x20] sm:$0xff]   ;;  %v197_v7 = vcombine.high %v18_v5, %v18_v5  ;;  %v221_v10 = vld [vmem:[%s311_s1 + $0x30] sm:$0xff]   ;;  %v222_v11 = vld [vmem:[%s311_s1 + $0x38] sm:$0xff]   ;;  %v196_v19 = vcombine.low %v18_v5, %v18_v5 }
   0x4   :  { %v46_v8 = vld [vmem:[%s313_s2] sm:$0xff]  ;;  %v224_v13 = vld [vmem:[%s311_s1 + $0x48] sm:$0xff]   ;;  %v225_v14 = vld [vmem:[%s311_s1 + $0x50] sm:$0xff]  }
   0x5   :  { %49 = vperm.xlu0 %214, %v46_v8   ;;  %212 = vmatprep.mubr.msk.bf16.mxu0 %vm139_vm0, %v197_v7  ;;  %v223_v12 = vld [vmem:[%s311_s1 + $0x40] sm:$0xff]   ;;  %v226_v15 = vld [vmem:[%s311_s1 + $0x58] sm:$0xff]   ;;  %v228_v17 = vld [vmem:[%s311_s1 + $0x68] ss:$0 sps:$4 sm:$0xff]  }
   0x6   :  { %150 = vmatpush1.bf16.msra.mxu0 %v216_v2  ;;  %v227_v16 = vld [vmem:[%s311_s1 + $0x60] sm:$0xff]   ;;  %v145_v18 = vsel %vm143_vm1, %v228_v17, 0 }
   0x7   :  { %151 = vmatprep.subr.bf16.mxu0 %v231_v0  ;;  %v187_v20 = vld [vmem:[%s314_s3] sm:$0xf] }
   0x8   :  { %v188_v22 = vunpack.c.l.bf16 %v187_v20 }
   0xa   :  { %152 = vmatpush1.bf16.msra.mxu0 %v217_v3 }
   0xb   :  { %153 = vmatprep.subr.bf16.mxu0 %v231_v0 }
   0xe   :  { %154 = vmatpush1.bf16.msra.mxu0 %v218_v4 }
   0xf   :  { %155 = vmatprep.subr.bf16.mxu0 %v231_v0 }
  0x12   :  { %156 = vmatpush1.bf16.msra.mxu0 %v219_v6 }
  0x13   :  { %157 = vmatprep.subr.bf16.mxu0 %v231_v0 }
  0x16   :  { %158 = vmatpush1.bf16.msra.mxu0 %v220_v9 }
  0x17   :  { %159 = vmatprep.subr.bf16.mxu0 %v231_v0 }
  0x1a   :  { %160 = vmatpush1.bf16.msra.mxu0 %v221_v10 }
  0x1b   :  { %161 = vmatprep.subr.bf16.mxu0 %v231_v0 }
  0x1e   :  { %162 = vmatpush1.bf16.msra.mxu0 %v222_v11 }
  0x1f   :  { %163 = vmatprep.subr.bf16.mxu0 %v231_v0 }
  0x22   :  { %164 = vmatpush1.bf16.msra.mxu0 %v223_v12 }
  0x23   :  { %165 = vmatprep.subr.bf16.mxu0 %v231_v0 }
  0x26   :  { %166 = vmatpush1.bf16.msra.mxu0 %v224_v13 }
  0x27   :  { %167 = vmatprep.subr.bf16.mxu0 %v231_v0 }
  0x2a   :  { %168 = vmatpush1.bf16.msra.mxu0 %v225_v14 }
  0x2b   :  { %169 = vmatprep.subr.bf16.mxu0 %v231_v0 }
  0x2e   :  { %170 = vmatpush1.bf16.msra.mxu0 %v226_v15 }
  0x2f   :  { %171 = vmatprep.subr.bf16.mxu0 %v231_v0 }
  0x32   :  { %172 = vmatpush1.bf16.msra.mxu0 %v227_v16 }
  0x33   :  { %173 = vmatprep.subr.bf16.mxu0 %v231_v0 }
  0x36   :  { %174 = vmatpush1.bf16.msra.mxu0 %v145_v18 }
  0x39   :  { %180 = vmatmul.mubr.bf16.vlgmr.msra.gmra.mrb[0].mxu0 %v196_v19 }
  0x84   :  { %v50_v21 = vpop.permute.xlu0 %49 }
 0x10c   :  { %v181_v23 = vpop.f32.mrb[0].mxu0 }
 0x10d   :  { %v182_v24 = vadd.f32 %v181_v23, %v50_v21  ;;  %v183_v25 = vpop.f32.mrb[1].mxu0 }
 0x10e   :  { %v184_v26 = vpop.f32.mrb[2].mxu0 }
 0x10f   :  { %v189_v27 = vadd.f32 %v188_v22, %v182_v24  ;;  %v185_v28 = vpop.f32.mrb[3].mxu0 }
 0x111   :  { %v190_v29 = vpack.c.bf16 %v189_v27, %v189_v27 }
 0x113   :  { %191 = vst [vmem:[%s315_s4] sm:$0xf] %v190_v29 }

// kernel: hourglassup_forward.20
= control target key start
LH: loop header
LB: loop body
LE: loop exit
PB: predicated region body
PF: predicated region fallthrough
CT: control target
= control target key end

     0   :  { %s604_s12 = smov 0   ;;  %s606_s13 = smov 0   ;;  %s662_s0 = inlined_call_operand.vmem [shape: bf16[4,108], index: 0, kind: input, shape index: {}]   ;;  %s663_s1 = inlined_call_operand.vmem [shape: bf16[108,512], index: 1, kind: input, shape index: {}]   ;;  %s664_s2 = inlined_call_operand.vmem [shape: f32[4,1], index: 2, kind: input, shape index: {}]   ;;  %s665_s3 = inlined_call_operand.vmem [shape: bf16[4,512], index: 3, kind: output, shape index: {}]  }
   0x1   :  { %s608_s14 = smov 0  }
   0x2 LB: > { %s480_s15 = sadd.s32 4294967295, %s581_s14   ;;  %s621_s16 = sadd.s32 1, %s581_s14   ;;  %s581_s14 = sphi %s608_s14, %s668_s14   ;;  %s577_s13 = sphi %s606_s13, %s667_s13   ;;  %s573_s12 = sphi %s604_s12, %s666_s12  }
   0x3   : > { %s38_s17 = ssub.s32 %s581_s14, %s621_s16  ;;  %s41_s18 = sadd.s32 1, %s577_s13 }
   0x4   : > { %p39_p0 = scmp.eq.s32.totalorder %s38_s17, 0  ;;  %p48_p1 = scmp.ne.s32.totalorder %s577_s13, %s573_s12 }
   0x5   : > { %p49_p2 = scmp.eq.s32.totalorder %s581_s14, 0  ;;  %p483_p4 = scmp.ge.s32.totalorder %s581_s14, 2 }
   0x6   : > { %s630_s19 = scalar_select %p39_p0, %s577_s13, %s41_s18  }
   0x7   : > { %p50_p3 = por %p49_p2, %p48_p1  ;;  %127 = sbr.rel (%p483_p4) target bundleno = 25 (0x19), region = 24 }
   0xe   : > { %130 = sbr.rel (!%p50_p3) target bundleno = 25 (0x19), region = 28  ;;  %s132_s20 = sand.u32 (%p50_p3), 1, %s577_s13  }
   0xf   : > { %s509_s21 = sshll.u32 (%p50_p3), %s581_s14, 3  ;;  %s510_s22 = smul.u32 (%p50_p3), 112, %s132_s20 }
  0x10   : > { %s137_s25 = scalar_lea.vmem (%p50_p3), %s663_s1, %s509_s21 }
  0x11   : > { %v191_v0 = vld [vmem:[%s137_s25] sm:$0xff] (%p50_p3)  ;;  %v193_v1 = vld [vmem:[%s137_s25 + $0x10] sm:$0xff] (%p50_p3)  ;;  %s134_s26 = scalar_lea.vmem (%p50_p3), [#allocation2], %s510_s22 }
  0x12   : > { %v195_v2 = vld [vmem:[%s137_s25 + $0x20] sm:$0xff] (%p50_p3)  ;;  %v197_v3 = vld [vmem:[%s137_s25 + $0x30] sm:$0xff] (%p50_p3)  ;;  %192 = vst [vmem:[%s134_s26] sm:$0xff] (%p50_p3), %v191_v0  ;;  %194 = vst [vmem:[%s134_s26 + $0x8] sm:$0xff] (%p50_p3), %v193_v1 }
  0x13   : > { %v199_v4 = vld [vmem:[%s137_s25 + $0x40] sm:$0xff] (%p50_p3)  ;;  %v201_v5 = vld [vmem:[%s137_s25 + $0x50] sm:$0xff] (%p50_p3)  ;;  %196 = vst [vmem:[%s134_s26 + $0x10] sm:$0xff] (%p50_p3), %v195_v2  ;;  %198 = vst [vmem:[%s134_s26 + $0x18] sm:$0xff] (%p50_p3), %v197_v3 }
  0x14   : > { %200 = vst [vmem:[%s134_s26 + $0x20] sm:$0xff] (%p50_p3), %v199_v4  ;;  %202 = vst [vmem:[%s134_s26 + $0x28] sm:$0xff] (%p50_p3), %v201_v5  ;;  %v203_v6 = vld [vmem:[%s137_s25 + $0x60] sm:$0xff] (%p50_p3)  ;;  %v205_v7 = vld [vmem:[%s137_s25 + $0x70] sm:$0xff] (%p50_p3) }
  0x15   : > { %v207_v8 = vld [vmem:[%s137_s25 + $0x80] sm:$0xff]  ;;  %204 = vst [vmem:[%s134_s26 + $0x30] sm:$0xff] %v203_v6  ;;  %206 = vst [vmem:[%s134_s26 + $0x38] sm:$0xff] %v205_v7  ;;  %v209_v9 = vld [vmem:[%s137_s25 + $0x90] sm:$0xff] }
  0x16   : > { %208 = vst [vmem:[%s134_s26 + $0x40] sm:$0xff] %v207_v8  ;;  %v211_v10 = vld [vmem:[%s137_s25 + $0xa0] sm:$0xff]  ;;  %v213_v11 = vld [vmem:[%s137_s25 + $0xb0] sm:$0xff]  ;;  %210 = vst [vmem:[%s134_s26 + $0x48] sm:$0xff] %v209_v9 }
  0x17   : > { %212 = vst [vmem:[%s134_s26 + $0x50] sm:$0xff] %v211_v10  ;;  %214 = vst [vmem:[%s134_s26 + $0x58] sm:$0xff] %v213_v11  ;;  %v215_v12 = vld [vmem:[%s137_s25 + $0xc0] sm:$0xff]  ;;  %v217_v13 = vld [vmem:[%s137_s25 + $0xd0] sm:$0xff] }
  0x18   : > { %216 = vst [vmem:[%s134_s26 + $0x60] sm:$0xff] %v215_v12  ;;  %218 = vst [vmem:[%s134_s26 + $0x68] sm:$0xff] %v217_v13 }
  0x19 PF: > { %p486_p5 = scmp.ge.s32.totalorder %s581_s14, 1  ;;  %p223_p6 = scmp.lt.s32.totalorder %s581_s14, 3 }
  0x1b   : > { %p224_p7 = pnand %p486_p5, %p223_p6 }
  0x1c   : > { %s230_s27 = sand.u32 (!%p224_p7), 1, %s573_s12   ;;  %v583_v14 = vmov (!%p224_p7), 0   ;;  %v276_v15 = vld [vmem:[%s664_s2] sm:$0xf] (!%p224_p7)  ;;  %vm354_vm0 = vcmask (!%p224_p7), 1045504   ;;  %vm350_vm1 = vcmask (!%p224_p7), 883712  }
  0x1d   : > { %227 = sbr.rel (%p224_p7) target bundleno = 282 (0x11a), region = 66  ;;  %393 = vmatprep.mubr.bf16.mxu0 (!%p224_p7), %v583_v14  ;;  %537 = vset.pattern.permute.xlu0 (!%p224_p7), %v583_v14  ;;  %v261_v31 = vld [vmem:[%s662_s0] sm:$0x3] (!%p224_p7)  ;;  %s487_s7 = sshll.u32 (!%p224_p7), %s480_s15, 1 }
  0x1e   : > { %s511_s28 = smul.u32 (!%p224_p7), 112, %s230_s27  ;;  %279 = vperm.xlu0 (!%p224_p7), %537, %v276_v15   ;;  %p255_p8 = scmp.lt.s32.totalorder (!%p224_p7), %s487_s7, 3 }
  0x20   : > { %s232_s4 = scalar_lea.vmem (!%p224_p7), [#allocation2], %s511_s28 }
  0x21   : > { %v538_v16 = vld [vmem:[%s232_s4 + $0x4] ss:$8 sps:$4 sm:$0xff] (!%p224_p7)   ;;  %v540_v17 = vld [vmem:[%s232_s4] ss:$8 sps:$4 sm:$0xff] (!%p224_p7)   ;;  %v541_v18 = vld [vmem:[%s232_s4 + $0x14] ss:$8 sps:$4 sm:$0xff] (!%p224_p7)  }
  0x22   : > { %361 = vmatprep.subr.bf16.mxu0 (!%p224_p7), %v538_v16  ;;  %v543_v19 = vld [vmem:[%s232_s4 + $0x10] ss:$8 sps:$4 sm:$0xff] (!%p224_p7)   ;;  %v544_v20 = vld [vmem:[%s232_s4 + $0x24] ss:$8 sps:$4 sm:$0xff] (!%p224_p7)   ;;  %v546_v21 = vld [vmem:[%s232_s4 + $0x20] ss:$8 sps:$4 sm:$0xff] (!%p224_p7)  }
  0x23   : > { %362 = vmatpush1.bf16.msra.mxu0 (!%p224_p7), %v540_v17  ;;  %v547_v22 = vld [vmem:[%s232_s4 + $0x34] ss:$8 sps:$4 sm:$0xff] (!%p224_p7)   ;;  %v549_v23 = vld [vmem:[%s232_s4 + $0x30] ss:$8 sps:$4 sm:$0xff] (!%p224_p7)   ;;  %v550_v24 = vld [vmem:[%s232_s4 + $0x44] ss:$8 sps:$4 sm:$0xff] (!%p224_p7)  }
  0x24   : > { %363 = vmatprep.subr.bf16.mxu0 %v541_v18  ;;  %v552_v25 = vld [vmem:[%s232_s4 + $0x40] ss:$8 sps:$4 sm:$0xff]   ;;  %v553_v26 = vld [vmem:[%s232_s4 + $0x54] ss:$8 sps:$4 sm:$0xff]   ;;  %v555_v27 = vld [vmem:[%s232_s4 + $0x50] ss:$8 sps:$4 sm:$0xff]  }
  0x25   : > { %v556_v28 = vld [vmem:[%s232_s4 + $0x64] ss:$8 sps:$4 sm:$0x3f]   ;;  %v558_v29 = vld [vmem:[%s232_s4 + $0x60] ss:$8 sps:$4 sm:$0x3f]  }
  0x26   : > { %v356_v30 = vsel %vm354_vm0, %v558_v29, 0  ;;  %s670_s7 = smov (!%p255_p8, %s487_s7), 3 }
  0x27   : > { %364 = vmatpush1.bf16.msra.mxu0 %v543_v19  ;;  %s488_s8 = sshll.u32 %s670_s7, 1 }
  0x28   : > { %365 = vmatprep.subr.bf16.mxu0 %v544_v20  ;;  %s258_s11 = scalar_lea.vmem %s665_s3, %s488_s8 }
  0x2b   : > { %366 = vmatpush1.bf16.msra.mxu0 %v546_v21 }
  0x2c   : > { %367 = vmatprep.subr.bf16.mxu0 %v547_v22 }
  0x2f   : > { %368 = vmatpush1.bf16.msra.mxu0 %v549_v23 }
  0x30   : > { %369 = vmatprep.subr.bf16.mxu0 %v550_v24 }
  0x33   : > { %370 = vmatpush1.bf16.msra.mxu0 %v552_v25 }
  0x34   : > { %371 = vmatprep.subr.bf16.mxu0 %v553_v26 }
  0x37   : > { %372 = vmatpush1.bf16.msra.mxu0 %v555_v27 }
  0x38   : > { %503 = vmatprep.subr.msk.bf16.mxu0 %vm354_vm0, %v556_v28 }
  0x3b   : > { %374 = vmatpush1.bf16.msra.mxu0 %v356_v30 }
  0x3e   : > { %504 = vmatmul.mubr.msk.bf16.vlgmr.msra.gmra.mrb[0].mxu0 %vm350_vm1, %v261_v31 }
  0x9d   : > { %v280_v32 = vpop.permute.xlu0 %279 }
 0x111   : > { %v395_v33 = vpop.f32.mrb[0].mxu0 }
 0x112   : > { %v396_v34 = vadd.f32 %v395_v33, %v280_v32  ;;  %v397_v35 = vpop.f32.mrb[1].mxu0 }
 0x113   : > { %v398_v36 = vadd.f32 %v397_v35, %v280_v32  ;;  %v399_v37 = vpop.f32.mrb[2].mxu0 }
 0x114   : > { %v402_v38 = vmax.f32 %v396_v34, 0.0  ;;  %v400_v39 = vpop.f32.mrb[3].mxu0 }
 0x115   : > { %v403_v40 = vmax.f32 %v398_v36, 0.0 }
 0x117   : > { %v505_v41 = vpack.c.bf16 %v403_v40, %v402_v38 }
 0x119   : > { %506 = vst.sshfl [vmem:[%s258_s11] sm:$0x33 pattern:$0x76325410] %v505_v41 }
 0x11a PF: > { %p10_p9 = scmp.ge.s32.totalorder %s621_s16, 4   ;;  %s666_s12 = smov %s577_s13 }
 0x11b   : > { %s667_s13 = smov %s630_s19  ;;  %s668_s14 = smov %s621_s16 }
 0x11c   :  { %12 = sbr.rel (!%p10_p9) target bundleno = 2 (0x2), region = 105 }

// kernel: hourglassup_forward.23
= control target key start
LH: loop header
LB: loop body
LE: loop exit
PB: predicated region body
PF: predicated region fallthrough
CT: control target
= control target key end

     0   :  { %s677_s15 = smov 0   ;;  %s679_s16 = smov 0   ;;  %s738_s0 = inlined_call_operand.vmem [shape: bf16[4,108], index: 0, kind: input, shape index: {}]   ;;  %s739_s1 = inlined_call_operand.vmem [shape: bf16[108,512], index: 1, kind: input, shape index: {}]   ;;  %s740_s2 = inlined_call_operand.vmem [shape: f32[4,1], index: 2, kind: input, shape index: {}]   ;;  %s741_s3 = inlined_call_operand.vmem [shape: bf16[4,512], index: 3, kind: input, shape index: {}]   ;;  %s742_s4 = inlined_call_operand.vmem [shape: bf16[4,512], index: 4, kind: output, shape index: {}]  }
   0x1   :  { %s681_s17 = smov 0  }
   0x2 LB: > { %s546_s18 = sadd.s32 4294967295, %s649_s17   ;;  %s694_s19 = sadd.s32 1, %s649_s17   ;;  %s649_s17 = sphi %s681_s17, %s745_s17   ;;  %s645_s16 = sphi %s679_s16, %s744_s16   ;;  %s641_s15 = sphi %s677_s15, %s743_s15  }
   0x3   : > { %s39_s20 = ssub.s32 %s649_s17, %s694_s19  ;;  %s42_s21 = sadd.s32 1, %s645_s16 }
   0x4   : > { %p40_p0 = scmp.eq.s32.totalorder %s39_s20, 0  ;;  %p49_p1 = scmp.ne.s32.totalorder %s645_s16, %s641_s15 }
   0x5   : > { %p50_p2 = scmp.eq.s32.totalorder %s649_s17, 0  ;;  %p549_p4 = scmp.ge.s32.totalorder %s649_s17, 2 }
   0x6   : > { %s703_s22 = scalar_select %p40_p0, %s645_s16, %s42_s21  }
   0x7   : > { %p51_p3 = por %p50_p2, %p49_p1  ;;  %154 = sbr.rel (%p549_p4) target bundleno = 25 (0x19), region = 24 }
   0xe   : > { %157 = sbr.rel (!%p51_p3) target bundleno = 25 (0x19), region = 28  ;;  %s159_s23 = sand.u32 (%p51_p3), 1, %s645_s16  }
   0xf   : > { %s577_s24 = sshll.u32 (%p51_p3), %s649_s17, 3  ;;  %s578_s25 = smul.u32 (%p51_p3), 112, %s159_s23 }
  0x10   : > { %s164_s28 = scalar_lea.vmem (%p51_p3), %s739_s1, %s577_s24 }
  0x11   : > { %v218_v0 = vld [vmem:[%s164_s28] sm:$0xff] (%p51_p3)  ;;  %v220_v1 = vld [vmem:[%s164_s28 + $0x10] sm:$0xff] (%p51_p3)  ;;  %s161_s29 = scalar_lea.vmem (%p51_p3), [#allocation2], %s578_s25 }
  0x12   : > { %v222_v2 = vld [vmem:[%s164_s28 + $0x20] sm:$0xff] (%p51_p3)  ;;  %v224_v3 = vld [vmem:[%s164_s28 + $0x30] sm:$0xff] (%p51_p3)  ;;  %219 = vst [vmem:[%s161_s29] sm:$0xff] (%p51_p3), %v218_v0  ;;  %221 = vst [vmem:[%s161_s29 + $0x8] sm:$0xff] (%p51_p3), %v220_v1 }
  0x13   : > { %v226_v4 = vld [vmem:[%s164_s28 + $0x40] sm:$0xff] (%p51_p3)  ;;  %v228_v5 = vld [vmem:[%s164_s28 + $0x50] sm:$0xff] (%p51_p3)  ;;  %223 = vst [vmem:[%s161_s29 + $0x10] sm:$0xff] (%p51_p3), %v222_v2  ;;  %225 = vst [vmem:[%s161_s29 + $0x18] sm:$0xff] (%p51_p3), %v224_v3 }
  0x14   : > { %227 = vst [vmem:[%s161_s29 + $0x20] sm:$0xff] (%p51_p3), %v226_v4  ;;  %229 = vst [vmem:[%s161_s29 + $0x28] sm:$0xff] (%p51_p3), %v228_v5  ;;  %v230_v6 = vld [vmem:[%s164_s28 + $0x60] sm:$0xff] (%p51_p3)  ;;  %v232_v7 = vld [vmem:[%s164_s28 + $0x70] sm:$0xff] (%p51_p3) }
  0x15   : > { %v234_v8 = vld [vmem:[%s164_s28 + $0x80] sm:$0xff]  ;;  %231 = vst [vmem:[%s161_s29 + $0x30] sm:$0xff] %v230_v6  ;;  %233 = vst [vmem:[%s161_s29 + $0x38] sm:$0xff] %v232_v7  ;;  %v236_v9 = vld [vmem:[%s164_s28 + $0x90] sm:$0xff] }
  0x16   : > { %235 = vst [vmem:[%s161_s29 + $0x40] sm:$0xff] %v234_v8  ;;  %v238_v10 = vld [vmem:[%s164_s28 + $0xa0] sm:$0xff]  ;;  %v240_v11 = vld [vmem:[%s164_s28 + $0xb0] sm:$0xff]  ;;  %237 = vst [vmem:[%s161_s29 + $0x48] sm:$0xff] %v236_v9 }
  0x17   : > { %239 = vst [vmem:[%s161_s29 + $0x50] sm:$0xff] %v238_v10  ;;  %241 = vst [vmem:[%s161_s29 + $0x58] sm:$0xff] %v240_v11  ;;  %v242_v12 = vld [vmem:[%s164_s28 + $0xc0] sm:$0xff]  ;;  %v244_v13 = vld [vmem:[%s164_s28 + $0xd0] sm:$0xff] }
  0x18   : > { %243 = vst [vmem:[%s161_s29 + $0x60] sm:$0xff] %v242_v12  ;;  %245 = vst [vmem:[%s161_s29 + $0x68] sm:$0xff] %v244_v13 }
  0x19 PF: > { %p552_p5 = scmp.ge.s32.totalorder %s649_s17, 1  ;;  %p259_p6 = scmp.lt.s32.totalorder %s649_s17, 3 }
  0x1b   : > { %p260_p7 = pnand %p552_p5, %p259_p6 }
  0x1c   : > { %s266_s30 = sand.u32 (!%p260_p7), 1, %s641_s15   ;;  %v651_v14 = vmov (!%p260_p7), 0   ;;  %v325_v15 = vld [vmem:[%s740_s2] sm:$0xf] (!%p260_p7)  ;;  %vm403_vm0 = vcmask (!%p260_p7), 1045504   ;;  %vm399_vm1 = vcmask (!%p260_p7), 883712  }
  0x1d   : > { %263 = sbr.rel (%p260_p7) target bundleno = 282 (0x11a), region = 70  ;;  %442 = vmatprep.mubr.bf16.mxu0 (!%p260_p7), %v651_v14  ;;  %605 = vset.pattern.permute.xlu0 (!%p260_p7), %v651_v14  ;;  %v310_v31 = vld [vmem:[%s738_s0] sm:$0x3] (!%p260_p7)  ;;  %s553_s11 = sshll.u32 (!%p260_p7), %s546_s18, 1 }
  0x1e   : > { %s579_s5 = smul.u32 (!%p260_p7), 112, %s266_s30  ;;  %328 = vperm.xlu0 (!%p260_p7), %605, %v325_v15   ;;  %p298_p8 = scmp.lt.s32.totalorder (!%p260_p7), %s553_s11, 3 }
  0x20   : > { %s268_s8 = scalar_lea.vmem (!%p260_p7), [#allocation2], %s579_s5 }
  0x21   : > { %v606_v16 = vld [vmem:[%s268_s8 + $0x4] ss:$8 sps:$4 sm:$0xff] (!%p260_p7)   ;;  %v608_v17 = vld [vmem:[%s268_s8] ss:$8 sps:$4 sm:$0xff] (!%p260_p7)   ;;  %v609_v18 = vld [vmem:[%s268_s8 + $0x14] ss:$8 sps:$4 sm:$0xff] (!%p260_p7)  }
  0x22   : > { %410 = vmatprep.subr.bf16.mxu0 (!%p260_p7), %v606_v16  ;;  %v611_v19 = vld [vmem:[%s268_s8 + $0x10] ss:$8 sps:$4 sm:$0xff] (!%p260_p7)   ;;  %v612_v20 = vld [vmem:[%s268_s8 + $0x24] ss:$8 sps:$4 sm:$0xff] (!%p260_p7)   ;;  %v614_v21 = vld [vmem:[%s268_s8 + $0x20] ss:$8 sps:$4 sm:$0xff] (!%p260_p7)  }
  0x23   : > { %411 = vmatpush1.bf16.msra.mxu0 (!%p260_p7), %v608_v17  ;;  %v615_v22 = vld [vmem:[%s268_s8 + $0x34] ss:$8 sps:$4 sm:$0xff] (!%p260_p7)   ;;  %v617_v23 = vld [vmem:[%s268_s8 + $0x30] ss:$8 sps:$4 sm:$0xff] (!%p260_p7)   ;;  %v618_v24 = vld [vmem:[%s268_s8 + $0x44] ss:$8 sps:$4 sm:$0xff] (!%p260_p7)  }
  0x24   : > { %412 = vmatprep.subr.bf16.mxu0 %v609_v18  ;;  %v620_v25 = vld [vmem:[%s268_s8 + $0x40] ss:$8 sps:$4 sm:$0xff]   ;;  %v621_v26 = vld [vmem:[%s268_s8 + $0x54] ss:$8 sps:$4 sm:$0xff]   ;;  %v623_v27 = vld [vmem:[%s268_s8 + $0x50] ss:$8 sps:$4 sm:$0xff]  }
  0x25   : > { %v624_v28 = vld [vmem:[%s268_s8 + $0x64] ss:$8 sps:$4 sm:$0x3f]   ;;  %v626_v29 = vld [vmem:[%s268_s8 + $0x60] ss:$8 sps:$4 sm:$0x3f]  }
  0x26   : > { %v405_v30 = vsel %vm403_vm0, %v626_v29, 0  ;;  %s747_s11 = smov (!%p298_p8, %s553_s11), 3 }
  0x27   : > { %413 = vmatpush1.bf16.msra.mxu0 %v611_v19  ;;  %s554_s12 = sshll.u32 %s747_s11, 1 }
  0x28   : > { %414 = vmatprep.subr.bf16.mxu0 %v612_v20  ;;  %s301_s15 = scalar_lea.vmem %s741_s3, %s554_s12  ;;  %s307_s20 = scalar_lea.vmem %s742_s4, %s554_s12 }
  0x29   : > { %v451_v32 = vld [vmem:[%s301_s15] sm:$0xf] }
  0x2a   : > { %v452_v33 = vunpack.c.l.bf16 %v451_v32 }
  0x2b   : > { %415 = vmatpush1.bf16.msra.mxu0 %v614_v21 }
  0x2c   : > { %416 = vmatprep.subr.bf16.mxu0 %v615_v22  ;;  %v454_v36 = vcombine.high %v452_v33, %v452_v33 }
  0x2f   : > { %417 = vmatpush1.bf16.msra.mxu0 %v617_v23 }
  0x30   : > { %418 = vmatprep.subr.bf16.mxu0 %v618_v24 }
  0x33   : > { %419 = vmatpush1.bf16.msra.mxu0 %v620_v25 }
  0x34   : > { %420 = vmatprep.subr.bf16.mxu0 %v621_v26 }
  0x37   : > { %421 = vmatpush1.bf16.msra.mxu0 %v623_v27 }
  0x38   : > { %571 = vmatprep.subr.msk.bf16.mxu0 %vm403_vm0, %v624_v28 }
  0x3b   : > { %423 = vmatpush1.bf16.msra.mxu0 %v405_v30 }
  0x3e   : > { %572 = vmatmul.mubr.msk.bf16.vlgmr.msra.gmra.mrb[0].mxu0 %vm399_vm1, %v310_v31 }
  0x9d   : > { %v329_v34 = vpop.permute.xlu0 %328 }
 0x111   : > { %v444_v35 = vpop.f32.mrb[0].mxu0 }
 0x112   : > { %v445_v37 = vadd.f32 %v444_v35, %v329_v34  ;;  %v446_v38 = vpop.f32.mrb[1].mxu0 }
 0x113   : > { %v447_v39 = vadd.f32 %v446_v38, %v329_v34  ;;  %v448_v40 = vpop.f32.mrb[2].mxu0 }
 0x114   : > { %v456_v41 = vadd.f32 %v452_v33, %v445_v37  ;;  %v449_v42 = vpop.f32.mrb[3].mxu0 }
 0x115   : > { %v457_v43 = vadd.f32 %v454_v36, %v447_v39 }
 0x117   : > { %v573_v44 = vpack.c.bf16 %v457_v43, %v456_v41 }
 0x119   : > { %574 = vst.sshfl [vmem:[%s307_s20] sm:$0x33 pattern:$0x76325410] %v573_v44 }
 0x11a PF: > { %p11_p9 = scmp.ge.s32.totalorder %s694_s19, 4   ;;  %s743_s15 = smov %s645_s16 }
 0x11b   : > { %s744_s16 = smov %s703_s22  ;;  %s745_s17 = smov %s694_s19 }
 0x11c   :  { %13 = sbr.rel (!%p11_p9) target bundleno = 2 (0x2), region = 112 }

// kernel: hourglassup_forward.32
= control target key start
LH: loop header
LB: loop body
LE: loop exit
PB: predicated region body
PF: predicated region fallthrough
CT: control target
= control target key end

     0   :  { %v176_v0 = vmov 0.0   ;;  %vm177_vm0 = vmmov 0   ;;  %v178_v2 = vmov 0   ;;  %vm81_vm1 = vcmask 1045504   ;;  %s229_s1 = inlined_call_operand.vmem [shape: bf16[108,128], index: 1, kind: input, shape index: {}]   ;;  %s230_s2 = inlined_call_operand.vmem [shape: f32[8,1], index: 2, kind: input, shape index: {}]   ;;  %s231_s0 = inlined_call_operand.vmem [shape: bf16[8,108], index: 0, kind: input, shape index: {}]   ;;  %s232_s3 = inlined_call_operand.vmem [shape: bf16[8,128], index: 3, kind: output, shape index: {}]  }
   0x1   :  { %147 = vmatprep.subr.bf16.mxu0 %v176_v0  ;;  %v169_v1 = vld [vmem:[%s229_s1] sm:$0xff]   ;;  %161 = vmatprep.mubr.msk.bf16.mxu0 %vm177_vm0, %v176_v0  ;;  %v170_v3 = vld [vmem:[%s229_s1 + $0x8] sm:$0xff]   ;;  %v171_v4 = vld [vmem:[%s229_s1 + $0x10] sm:$0xff]   ;;  %vm77_vm2 = vcmask 883712  }
   0x2   :  { %168 = vset.pattern.permute.xlu0 %v178_v2  ;;  %148 = vmatpush3.bf16.msra.mxu0 %v169_v1  ;;  %v30_v5 = vld [vmem:[%s230_s2] sm:$0xff]  ;;  %v172_v6 = vld [vmem:[%s229_s1 + $0x18] sm:$0xff]   ;;  %v174_v8 = vld [vmem:[%s229_s1 + $0x28] sm:$0xff]  }
   0x3   :  { %149 = vmatprep.subr.bf16.mxu0 %v176_v0  ;;  %33 = vperm.xlu0 %168, %v30_v5   ;;  %v173_v7 = vld [vmem:[%s229_s1 + $0x20] sm:$0xff]   ;;  %v175_v9 = vld [vmem:[%s229_s1 + $0x30] sm:$0x3f]  }
   0x4   :  { %v83_v10 = vsel %vm81_vm1, %v175_v9, 0  ;;  %v15_v11 = vld [vmem:[%s231_s0] sm:$0xf] }
   0x6   :  { %150 = vmatpush3.bf16.msra.mxu0 %v170_v3 }
   0x7   :  { %151 = vmatprep.subr.bf16.mxu0 %v176_v0 }
   0xa   :  { %152 = vmatpush3.bf16.msra.mxu0 %v171_v4 }
   0xb   :  { %153 = vmatprep.subr.bf16.mxu0 %v176_v0 }
   0xe   :  { %154 = vmatpush3.bf16.msra.mxu0 %v172_v6 }
   0xf   :  { %155 = vmatprep.subr.bf16.mxu0 %v176_v0 }
  0x12   :  { %156 = vmatpush3.bf16.msra.mxu0 %v173_v7 }
  0x13   :  { %157 = vmatprep.subr.bf16.mxu0 %v176_v0 }
  0x16   :  { %158 = vmatpush3.bf16.msra.mxu0 %v174_v8 }
  0x17   :  { %159 = vmatprep.subr.bf16.mxu0 %v176_v0 }
  0x1a   :  { %160 = vmatpush3.bf16.msra.mxu0 %v83_v10 }
  0x1d   :  { %162 = vmatmul.mubr.msk.bf16.vlgmr.msra.gmra.mrb[0].mxu0 %vm77_vm2, %v15_v11 }
  0x82   :  { %v34_v12 = vpop.permute.xlu0 %33 }
  0xf0   :  { %v119_v13 = vpop.f32.mrb[0].mxu0 }
  0xf1   :  { %v120_v14 = vadd.f32 %v119_v13, %v34_v12  ;;  %v163_v15 = vpop.f32.mrb[1].mxu0 }
  0xf2   :  { %v122_v16 = vpop.f32.mrb[2].mxu0 }
  0xf3   :  { %v125_v17 = vpack.c.bf16 %v120_v14, %v120_v14  ;;  %v164_v18 = vpop.f32.mrb[3].mxu0 }
  0xf5   :  { %126 = vst [vmem:[%s232_s3] sm:$0xf] %v125_v17 }

// kernel: hourglassup_forward.33
= control target key start
LH: loop header
LB: loop body
LE: loop exit
PB: predicated region body
PF: predicated region fallthrough
CT: control target
= control target key end

     0   :  { %v432_v0 = vmov 0   ;;  %vm136_vm0 = vcmask 719872   ;;  %vm140_vm1 = vcmask 1043456   ;;  %s588_s1 = inlined_call_operand.vmem [shape: bf16[216,128], index: 1, kind: input, shape index: {}]   ;;  %s589_s3 = inlined_call_operand.vmem [shape: bf16[216,128], index: 3, kind: input, shape index: {}]   ;;  %s590_s0 = inlined_call_operand.vmem [shape: bf16[8,216], index: 0, kind: input, shape index: {}]   ;;  %s591_s2 = inlined_call_operand.vmem [shape: bf16[8,216], index: 2, kind: input, shape index: {}]   ;;  %s592_s4 = inlined_call_operand.vmem [shape: f32[8,1], index: 4, kind: input, shape index: {}]   ;;  %s593_s5 = inlined_call_operand.vmem [shape: bf16[8,128], index: 5, kind: output, shape index: {}]  }
   0x1   :  { %144 = vmatprep.subr.bf16.mxu0 %v432_v0  ;;  %307 = vmatprep.subr.bf16.mxu1 %v432_v0  ;;  %v400_v1 = vld [vmem:[%s588_s1] sm:$0xff]   ;;  %v402_v3 = vld [vmem:[%s588_s1 + $0x8] sm:$0xff]   ;;  %v404_v5 = vld [vmem:[%s588_s1 + $0x10] sm:$0xff]  }
   0x2   :  { %v401_v2 = vld [vmem:[%s589_s3] sm:$0xff]   ;;  %399 = vset.pattern.permute.xlu0 %v432_v0  ;;  %145 = vmatpush1.bf16.msra.mxu0 %v400_v1  ;;  %v403_v4 = vld [vmem:[%s589_s3 + $0x8] sm:$0xff]   ;;  %v405_v6 = vld [vmem:[%s589_s3 + $0x10] sm:$0xff]  }
   0x3   :  { %308 = vmatpush1.bf16.msra.mxu1 %v401_v2  ;;  %146 = vmatprep.subr.bf16.mxu0 %v432_v0  ;;  %v406_v7 = vld [vmem:[%s588_s1 + $0x18] sm:$0xff]   ;;  %v408_v9 = vld [vmem:[%s588_s1 + $0x20] sm:$0xff]   ;;  %v410_v11 = vld [vmem:[%s588_s1 + $0x28] sm:$0xff]  }
   0x4   :  { %309 = vmatprep.subr.bf16.mxu1 %v432_v0  ;;  %v407_v8 = vld [vmem:[%s589_s3 + $0x18] sm:$0xff]   ;;  %v409_v10 = vld [vmem:[%s589_s3 + $0x20] sm:$0xff]   ;;  %v411_v12 = vld [vmem:[%s589_s3 + $0x28] sm:$0xff]  }
   0x5   :  { %v412_v13 = vld [vmem:[%s588_s1 + $0x30] sm:$0xff]   ;;  %v414_v15 = vld [vmem:[%s588_s1 + $0x38] sm:$0xff]   ;;  %v21_v17 = vld [vmem:[%s590_s0] sm:$0xff] }
   0x6   :  { %147 = vmatpush1.bf16.msra.mxu0 %v402_v3  ;;  %v413_v14 = vld [vmem:[%s589_s3 + $0x30] sm:$0xff]   ;;  %v415_v16 = vld [vmem:[%s589_s3 + $0x38] sm:$0xff]   ;;  %v186_v18 = vld [vmem:[%s591_s2] sm:$0xff]  ;;  %v365_v19 = vcombine.high %v21_v17, %v21_v17  ;;  %v364_v36 = vcombine.low %v21_v17, %v21_v17 }
   0x7   :  { %310 = vmatpush1.bf16.msra.mxu1 %v403_v4  ;;  %148 = vmatprep.subr.bf16.mxu0 %v432_v0  ;;  %v350_v20 = vld [vmem:[%s592_s4] sm:$0xff]  ;;  %v382_v21 = vcombine.high %v186_v18, %v186_v18  ;;  %v418_v24 = vld [vmem:[%s588_s1 + $0x48] sm:$0xff]   ;;  %v420_v26 = vld [vmem:[%s588_s1 + $0x50] sm:$0xff]   ;;  %v381_v37 = vcombine.low %v186_v18, %v186_v18 }
   0x8   :  { %311 = vmatprep.subr.bf16.mxu1 %v432_v0  ;;  %353 = vperm.xlu0 %399, %v350_v20   ;;  %v416_v22 = vld [vmem:[%s588_s1 + $0x40] sm:$0xff]   ;;  %v419_v25 = vld [vmem:[%s589_s3 + $0x48] sm:$0xff]   ;;  %v421_v27 = vld [vmem:[%s589_s3 + $0x50] sm:$0xff]  }
   0x9   :  { %380 = vmatprep.mubr.msk.bf16.mxu0 %vm136_vm0, %v365_v19  ;;  %v417_v23 = vld [vmem:[%s589_s3 + $0x40] sm:$0xff]   ;;  %397 = vmatprep.mubr.msk.bf16.mxu1 %vm136_vm0, %v382_v21  ;;  %v422_v28 = vld [vmem:[%s588_s1 + $0x58] sm:$0xff]   ;;  %v426_v32 = vld [vmem:[%s588_s1 + $0x68] ss:$0 sps:$4 sm:$0xff]  }
   0xa   :  { %149 = vmatpush1.bf16.msra.mxu0 %v404_v5  ;;  %v423_v29 = vld [vmem:[%s589_s3 + $0x58] sm:$0xff]   ;;  %v424_v30 = vld [vmem:[%s588_s1 + $0x60] sm:$0xff]   ;;  %v427_v33 = vld [vmem:[%s589_s3 + $0x68] ss:$0 sps:$4 sm:$0xff]   ;;  %v142_v34 = vsel %vm140_vm1, %v426_v32, 0 }
   0xb   :  { %312 = vmatpush1.bf16.msra.mxu1 %v405_v6  ;;  %150 = vmatprep.subr.bf16.mxu0 %v432_v0  ;;  %v425_v31 = vld [vmem:[%s589_s3 + $0x60] sm:$0xff]   ;;  %v305_v35 = vsel %vm140_vm1, %v427_v33, 0 }
   0xc   :  { %313 = vmatprep.subr.bf16.mxu1 %v432_v0 }
   0xe   :  { %151 = vmatpush1.bf16.msra.mxu0 %v406_v7 }
   0xf   :  { %314 = vmatpush1.bf16.msra.mxu1 %v407_v8  ;;  %152 = vmatprep.subr.bf16.mxu0 %v432_v0 }
  0x10   :  { %315 = vmatprep.subr.bf16.mxu1 %v432_v0 }
  0x12   :  { %153 = vmatpush1.bf16.msra.mxu0 %v408_v9 }
  0x13   :  { %316 = vmatpush1.bf16.msra.mxu1 %v409_v10  ;;  %154 = vmatprep.subr.bf16.mxu0 %v432_v0 }
  0x14   :  { %317 = vmatprep.subr.bf16.mxu1 %v432_v0 }
  0x16   :  { %155 = vmatpush1.bf16.msra.mxu0 %v410_v11 }
  0x17   :  { %318 = vmatpush1.bf16.msra.mxu1 %v411_v12  ;;  %156 = vmatprep.subr.bf16.mxu0 %v432_v0 }
  0x18   :  { %319 = vmatprep.subr.bf16.mxu1 %v432_v0 }
  0x1a   :  { %157 = vmatpush1.bf16.msra.mxu0 %v412_v13 }
  0x1b   :  { %320 = vmatpush1.bf16.msra.mxu1 %v413_v14  ;;  %158 = vmatprep.subr.bf16.mxu0 %v432_v0 }
  0x1c   :  { %321 = vmatprep.subr.bf16.mxu1 %v432_v0 }
  0x1e   :  { %159 = vmatpush1.bf16.msra.mxu0 %v414_v15 }
  0x1f   :  { %322 = vmatpush1.bf16.msra.mxu1 %v415_v16  ;;  %160 = vmatprep.subr.bf16.mxu0 %v432_v0 }
  0x20   :  { %323 = vmatprep.subr.bf16.mxu1 %v432_v0 }
  0x22   :  { %161 = vmatpush1.bf16.msra.mxu0 %v416_v22 }
  0x23   :  { %324 = vmatpush1.bf16.msra.mxu1 %v417_v23  ;;  %162 = vmatprep.subr.bf16.mxu0 %v432_v0 }
  0x24   :  { %325 = vmatprep.subr.bf16.mxu1 %v432_v0 }
  0x26   :  { %163 = vmatpush1.bf16.msra.mxu0 %v418_v24 }
  0x27   :  { %326 = vmatpush1.bf16.msra.mxu1 %v419_v25  ;;  %164 = vmatprep.subr.bf16.mxu0 %v432_v0 }
  0x28   :  { %327 = vmatprep.subr.bf16.mxu1 %v432_v0 }
  0x2a   :  { %165 = vmatpush1.bf16.msra.mxu0 %v420_v26 }
  0x2b   :  { %328 = vmatpush1.bf16.msra.mxu1 %v421_v27  ;;  %166 = vmatprep.subr.bf16.mxu0 %v432_v0 }
  0x2c   :  { %329 = vmatprep.subr.bf16.mxu1 %v432_v0 }
  0x2e   :  { %167 = vmatpush1.bf16.msra.mxu0 %v422_v28 }
  0x2f   :  { %330 = vmatpush1.bf16.msra.mxu1 %v423_v29  ;;  %168 = vmatprep.subr.bf16.mxu0 %v432_v0 }
  0x30   :  { %331 = vmatprep.subr.bf16.mxu1 %v432_v0 }
  0x32   :  { %169 = vmatpush1.bf16.msra.mxu0 %v424_v30 }
  0x33   :  { %332 = vmatpush1.bf16.msra.mxu1 %v425_v31  ;;  %170 = vmatprep.subr.bf16.mxu0 %v432_v0 }
  0x34   :  { %333 = vmatprep.subr.bf16.mxu1 %v432_v0 }
  0x36   :  { %171 = vmatpush1.bf16.msra.mxu0 %v142_v34 }
  0x37   :  { %334 = vmatpush1.bf16.msra.mxu1 %v305_v35 }
  0x39   :  { %177 = vmatmul.mubr.bf16.vlgmr.msra.gmra.mrb[0].mxu0 %v364_v36 }
  0x3a   :  { %340 = vmatmul.mubr.bf16.vlgmr.msra.gmra.mrb[0].mxu1 %v381_v37 }
  0x87   :  { %v354_v39 = vpop.permute.xlu0 %353 }
 0x10c   :  { %v178_v38 = vpop.f32.mrb[0].mxu0 }
 0x10d   :  { %v341_v40 = vpop.f32.mrb[0].mxu1  ;;  %v180_v41 = vpop.f32.mrb[1].mxu0 }
 0x10e   :  { %v347_v42 = vadd.f32 %v341_v40, %v178_v38  ;;  %v343_v43 = vpop.f32.mrb[1].mxu1  ;;  %v181_v44 = vpop.f32.mrb[2].mxu0 }
 0x10f   :  { %v344_v45 = vpop.f32.mrb[2].mxu1  ;;  %v182_v46 = vpop.f32.mrb[3].mxu0 }
 0x110   :  { %v356_v47 = vadd.f32 %v354_v39, %v347_v42  ;;  %v345_v48 = vpop.f32.mrb[3].mxu1 }
 0x112   :  { %v357_v49 = vmax.f32 %v356_v47, 0.0 }
 0x114   :  { %v358_v50 = vpack.c.bf16 %v357_v49, %v357_v49 }
 0x116   :  { %359 = vst [vmem:[%s593_s5] sm:$0xf] %v358_v50 }

// kernel: hourglassup_forward.35
= control target key start
LH: loop header
LB: loop body
LE: loop exit
PB: predicated region body
PF: predicated region fallthrough
CT: control target
= control target key end

     0   :  { %v250_v0 = vmov 0   ;;  %vm146_vm0 = vcmask 719872   ;;  %vm150_vm1 = vcmask 1043456   ;;  %vm203_vm2 = vcmask 257024   ;;  %s331_s1 = inlined_call_operand.vmem [shape: bf16[216,32], index: 1, kind: input, shape index: {}]   ;;  %s332_s0 = inlined_call_operand.vmem [shape: bf16[16,216], index: 0, kind: input, shape index: {}]   ;;  %s333_s2 = inlined_call_operand.vmem [shape: f32[16,1], index: 2, kind: input, shape index: {}]   ;;  %s334_s3 = inlined_call_operand.vmem [shape: bf16[16,32], index: 3, kind: output, shape index: {}]  }
   0x1   :  { %154 = vmatprep.subr.bf16.mxu0 %v250_v0  ;;  %v233_v1 = vld [vmem:[%s331_s1] sm:$0xff]   ;;  %232 = vset.pattern.permute.xlu0 %v250_v0  ;;  %v234_v2 = vld [vmem:[%s331_s1 + $0x8] sm:$0xff]   ;;  %v235_v3 = vld [vmem:[%s331_s1 + $0x10] sm:$0xff]  }
   0x2   :  { %155 = vmatpush1.bf16.msra.mxu0 %v233_v1  ;;  %v236_v4 = vld [vmem:[%s331_s1 + $0x18] sm:$0xff]   ;;  %v237_v5 = vld [vmem:[%s331_s1 + $0x20] sm:$0xff]   ;;  %v45_v8 = vld [vmem:[%s333_s2 + $0x8] sm:$0xff] }
   0x3   :  { %156 = vmatprep.subr.bf16.mxu0 %v250_v0  ;;  %v249_v6 = vld [vmem:[%s332_s0 + $0x4] ss:$8 sps:$4 sm:$0xff]   ;;  %v239_v10 = vld [vmem:[%s331_s1 + $0x30] sm:$0xff]   ;;  %v240_v11 = vld [vmem:[%s331_s1 + $0x38] sm:$0xff]  }
   0x4   :  { %v44_v7 = vld [vmem:[%s333_s2] sm:$0xff]  ;;  %226 = vmatprep.mubr.msk.bf16.mxu0 %vm146_vm0, %v249_v6  ;;  %v238_v9 = vld [vmem:[%s331_s1 + $0x28] sm:$0xff]   ;;  %v243_v14 = vld [vmem:[%s331_s1 + $0x50] sm:$0xff]  }
   0x5   :  { %48 = vperm.xlu0 %232, %v44_v7   ;;  %v241_v12 = vld [vmem:[%s331_s1 + $0x40] sm:$0xff]   ;;  %v242_v13 = vld [vmem:[%s331_s1 + $0x48] sm:$0xff]   ;;  %v244_v15 = vld [vmem:[%s331_s1 + $0x58] sm:$0xff]  }
   0x6   :  { %157 = vmatpush1.bf16.msra.mxu0 %v234_v2  ;;  %v245_v16 = vld [vmem:[%s331_s1 + $0x60] sm:$0xff]   ;;  %v246_v17 = vld [vmem:[%s331_s1 + $0x68] ss:$0 sps:$4 sm:$0xff]  }
   0x7   :  { %158 = vmatprep.subr.bf16.mxu0 %v250_v0  ;;  %v152_v18 = vsel %vm150_vm1, %v246_v17, 0  ;;  %v247_v19 = vld [vmem:[%s332_s0] ss:$8 sps:$4 sm:$0xff]  }
   0x9   :  { %53 = vperm.xlu0 %232, %v45_v8  }
   0xa   :  { %159 = vmatpush1.bf16.msra.mxu0 %v235_v3 }
   0xb   :  { %160 = vmatprep.subr.bf16.mxu0 %v250_v0 }
   0xe   :  { %161 = vmatpush1.bf16.msra.mxu0 %v236_v4 }
   0xf   :  { %162 = vmatprep.subr.bf16.mxu0 %v250_v0 }
  0x12   :  { %163 = vmatpush1.bf16.msra.mxu0 %v237_v5 }
  0x13   :  { %164 = vmatprep.subr.bf16.mxu0 %v250_v0 }
  0x16   :  { %165 = vmatpush1.bf16.msra.mxu0 %v238_v9 }
  0x17   :  { %166 = vmatprep.subr.bf16.mxu0 %v250_v0 }
  0x1a   :  { %167 = vmatpush1.bf16.msra.mxu0 %v239_v10 }
  0x1b   :  { %168 = vmatprep.subr.bf16.mxu0 %v250_v0 }
  0x1e   :  { %169 = vmatpush1.bf16.msra.mxu0 %v240_v11 }
  0x1f   :  { %170 = vmatprep.subr.bf16.mxu0 %v250_v0 }
  0x22   :  { %171 = vmatpush1.bf16.msra.mxu0 %v241_v12 }
  0x23   :  { %172 = vmatprep.subr.bf16.mxu0 %v250_v0 }
  0x26   :  { %173 = vmatpush1.bf16.msra.mxu0 %v242_v13 }
  0x27   :  { %174 = vmatprep.subr.bf16.mxu0 %v250_v0 }
  0x2a   :  { %175 = vmatpush1.bf16.msra.mxu0 %v243_v14 }
  0x2b   :  { %176 = vmatprep.subr.bf16.mxu0 %v250_v0 }
  0x2e   :  { %177 = vmatpush1.bf16.msra.mxu0 %v244_v15 }
  0x2f   :  { %178 = vmatprep.subr.bf16.mxu0 %v250_v0 }
  0x32   :  { %179 = vmatpush1.bf16.msra.mxu0 %v245_v16 }
  0x33   :  { %180 = vmatprep.subr.bf16.mxu0 %v250_v0 }
  0x36   :  { %181 = vmatpush1.bf16.msra.mxu0 %v152_v18 }
  0x39   :  { %187 = vmatmul.mubr.bf16.vlgmr.msra.gmra.mrb[0].mxu0 %v247_v19 }
  0x84   :  { %v49_v20 = vpop.permute.xlu0 %48 }
  0x88   :  { %v54_v24 = vpop.permute.xlu0 %53 }
 0x10c   :  { %v188_v21 = vpop.f32.mrb[0].mxu0 }
 0x10d   :  { %v189_v22 = vadd.f32 %v188_v21, %v49_v20  ;;  %v190_v23 = vpop.f32.mrb[1].mxu0 }
 0x10e   :  { %v191_v25 = vpop.f32.mrb[2].mxu0 }
 0x10f   :  { %v229_v26 = vpack.c.bf16 %v189_v22, %v189_v22  ;;  %v192_v27 = vadd.f32 %v191_v25, %v54_v24  ;;  %v193_v28 = vpop.f32.mrb[3].mxu0 }
 0x111   :  { %204 = vst.msk [vmem:[%s334_s3] sm:$0xf] %vm203_vm2, %v229_v26  ;;  %v230_v29 = vpack.c.bf16 %v192_v27, %v192_v27 }
 0x113   :  { %205 = vst.msk [vmem:[%s334_s3 + $0x4] sm:$0xf] %vm203_vm2, %v230_v29 }

// kernel: hourglassup_forward.37
= control target key start
LH: loop header
LB: loop body
LE: loop exit
PB: predicated region body
PF: predicated region fallthrough
CT: control target
= control target key end

     0   :  { %v462_v0 = vmov 0   ;;  %vm266_vm0 = vcmask 392192   ;;  %vm362_vm1 = vcmask 257024   ;;  %s600_s1 = inlined_call_operand.vmem [shape: bf16[432,32], index: 1, kind: input, shape index: {}]   ;;  %s601_s0 = inlined_call_operand.vmem [shape: bf16[16,432], index: 0, kind: input, shape index: {}]   ;;  %s602_s2 = inlined_call_operand.vmem [shape: f32[16,1], index: 2, kind: input, shape index: {}]   ;;  %s603_s3 = inlined_call_operand.vmem [shape: bf16[16,32], index: 3, kind: output, shape index: {}]  }
   0x1   :  { %311 = vmatprep.subr.bf16.mxu1 %v462_v0  ;;  %v429_v1 = vld [vmem:[%s600_s1 + $0x80] sm:$0xff]   ;;  %428 = vset.pattern.permute.xlu0 %v462_v0  ;;  %v432_v4 = vld [vmem:[%s600_s1 + $0x88] sm:$0xff]   ;;  %v435_v7 = vld [vmem:[%s600_s1 + $0x90] sm:$0xff]  }
   0x2   :  { %v430_v2 = vld [vmem:[%s600_s1 + $0x40] sm:$0xff]   ;;  %312 = vmatpush1.bf16.msra.mxu1 %v429_v1  ;;  %v433_v5 = vld [vmem:[%s600_s1 + $0x48] sm:$0xff]   ;;  %v436_v8 = vld [vmem:[%s600_s1 + $0x50] sm:$0xff]  }
   0x3   :  { %v431_v3 = vld [vmem:[%s600_s1] sm:$0xff]   ;;  %405 = vmatprep.subr.bf16.mxu0 %v430_v2  ;;  %313 = vmatprep.subr.bf16.mxu1 %v462_v0  ;;  %v434_v6 = vld [vmem:[%s600_s1 + $0x8] sm:$0xff]   ;;  %v437_v9 = vld [vmem:[%s600_s1 + $0x10] sm:$0xff]  }
   0x4   :  { %406 = vmatpush3.bf16.msra.mxu0 %v431_v3  ;;  %v438_v10 = vld [vmem:[%s600_s1 + $0x98] sm:$0xff]   ;;  %v442_v13 = vld [vmem:[%s600_s1 + $0x60] sm:$0xff]   ;;  %v445_v16 = vld [vmem:[%s600_s1 + $0x68] sm:$0xff]  }
   0x5   :  { %407 = vmatprep.subr.bf16.mxu0 %v433_v5  ;;  %v439_v11 = vld [vmem:[%s600_s1 + $0x58] sm:$0xff]   ;;  %v441_v14 = vld [vmem:[%s600_s1 + $0xa0] sm:$0xff]   ;;  %v444_v17 = vld [vmem:[%s600_s1 + $0xa8] sm:$0xff]  }
   0x6   :  { %314 = vmatpush1.bf16.msra.mxu1 %v432_v4  ;;  %v440_v12 = vld [vmem:[%s600_s1 + $0x18] sm:$0xff]   ;;  %v443_v15 = vld [vmem:[%s600_s1 + $0x20] sm:$0xff]   ;;  %v446_v18 = vld [vmem:[%s600_s1 + $0x28] sm:$0xff]  }
   0x7   :  { %315 = vmatprep.subr.bf16.mxu1 %v462_v0  ;;  %v448_v19 = vld [vmem:[%s600_s1 + $0x70] sm:$0xff]   ;;  %v450_v22 = vld [vmem:[%s600_s1 + $0xb8] sm:$0xff]   ;;  %v73_v27 = vld [vmem:[%s602_s2] sm:$0xff] }
   0x8   :  { %408 = vmatpush3.bf16.msra.mxu0 %v434_v6  ;;  %v447_v20 = vld [vmem:[%s600_s1 + $0xb0] sm:$0xff]   ;;  %v451_v23 = vld [vmem:[%s600_s1 + $0x78] sm:$0xff]   ;;  %v453_v28 = vld [vmem:[%s600_s1 + $0xc0] sm:$0xff]   ;;  %77 = vperm.xlu0 %428, %v73_v27  }
   0x9   :  { %409 = vmatprep.subr.bf16.mxu0 %v436_v8  ;;  %v449_v21 = vld [vmem:[%s600_s1 + $0x30] sm:$0xff]   ;;  %v452_v25 = vld [vmem:[%s600_s1 + $0x38] sm:$0xff]   ;;  %v74_v30 = vld [vmem:[%s602_s2 + $0x8] sm:$0xff] }
   0xa   :  { %316 = vmatpush1.bf16.msra.mxu1 %v435_v7  ;;  %v456_v24 = vld [vmem:[%s601_s0 + $0x4] ss:$16 sps:$4 sm:$0xff]   ;;  %v461_v26 = vld [vmem:[%s601_s0 + $0xc] ss:$16 sps:$4 sm:$0xff]   ;;  %v454_v29 = vld [vmem:[%s601_s0] ss:$16 sps:$4 sm:$0xff]  }
   0xb   :  { %317 = vmatprep.subr.bf16.mxu1 %v462_v0  ;;  %302 = vmatprep.mubr.bf16.mxu0 %v456_v24  ;;  %v457_v31 = vld [vmem:[%s600_s1 + $0xc8] sm:$0xff]   ;;  %v458_v32 = vld [vmem:[%s600_s1 + $0xd0] sm:$0xff]  }
   0xc   :  { %410 = vmatpush3.bf16.msra.mxu0 %v437_v9  ;;  %400 = vmatprep.mubr.msk.bf16.mxu1 %vm266_vm0, %v461_v26  ;;  %v459_v33 = vld [vmem:[%s601_s0 + $0x8] ss:$16 sps:$4 sm:$0xff]  }
   0xd   :  { %411 = vmatprep.subr.bf16.mxu0 %v439_v11  ;;  %82 = vperm.xlu0 %428, %v74_v30  }
   0xe   :  { %318 = vmatpush1.bf16.msra.mxu1 %v438_v10 }
   0xf   :  { %319 = vmatprep.subr.bf16.mxu1 %v462_v0 }
  0x10   :  { %412 = vmatpush3.bf16.msra.mxu0 %v440_v12 }
  0x11   :  { %413 = vmatprep.subr.bf16.mxu0 %v442_v13 }
  0x12   :  { %320 = vmatpush1.bf16.msra.mxu1 %v441_v14 }
  0x13   :  { %321 = vmatprep.subr.bf16.mxu1 %v462_v0 }
  0x14   :  { %414 = vmatpush3.bf16.msra.mxu0 %v443_v15 }
  0x15   :  { %415 = vmatprep.subr.bf16.mxu0 %v445_v16 }
  0x16   :  { %322 = vmatpush1.bf16.msra.mxu1 %v444_v17 }
  0x17   :  { %323 = vmatprep.subr.bf16.mxu1 %v462_v0 }
  0x18   :  { %416 = vmatpush3.bf16.msra.mxu0 %v446_v18 }
  0x19   :  { %417 = vmatprep.subr.bf16.mxu0 %v448_v19 }
  0x1a   :  { %324 = vmatpush1.bf16.msra.mxu1 %v447_v20 }
  0x1b   :  { %325 = vmatprep.subr.bf16.mxu1 %v462_v0 }
  0x1c   :  { %418 = vmatpush3.bf16.msra.mxu0 %v449_v21 }
  0x1d   :  { %419 = vmatprep.subr.bf16.mxu0 %v451_v23 }
  0x1e   :  { %326 = vmatpush1.bf16.msra.mxu1 %v450_v22 }
  0x1f   :  { %327 = vmatprep.subr.bf16.mxu1 %v462_v0 }
  0x20   :  { %420 = vmatpush3.bf16.msra.mxu0 %v452_v25 }
  0x22   :  { %328 = vmatpush1.bf16.msra.mxu1 %v453_v28 }
  0x23   :  { %303 = vmatmul.mubr.bf16.vlgmr.msra.gmra.mrb[0].mxu0 %v454_v29  ;;  %329 = vmatprep.subr.bf16.mxu1 %v462_v0 }
  0x26   :  { %330 = vmatpush1.bf16.msra.mxu1 %v457_v31 }
  0x27   :  { %331 = vmatprep.subr.bf16.mxu1 %v462_v0 }
  0x2a   :  { %332 = vmatpush1.bf16.msra.mxu1 %v458_v32 }
  0x2d   :  { %344 = vmatmul.mubr.bf16.vlgmr.msra.gmra.mrb[0].mxu1 %v459_v33 }
  0x87   :  { %v78_v36 = vpop.permute.xlu0 %77 }
  0x8c   :  { %v83_v41 = vpop.permute.xlu0 %82 }
  0xf6   :  { %v421_v34 = vpop.f32.mrb[0].mxu0 }
  0xf7   :  { %v422_v35 = vpop.f32.mrb[1].mxu0 }
  0xf8   :  { %v423_v37 = vadd.f32 %v422_v35, %v421_v34  ;;  %v424_v38 = vpop.f32.mrb[2].mxu0 }
  0xf9   :  { %v425_v39 = vpop.f32.mrb[3].mxu0 }
  0xfa   :  { %v426_v40 = vadd.f32 %v425_v39, %v424_v38  ;;  %v305_v42 = vadd.f32 %v423_v37, %v78_v36 }
  0xfc   :  { %v308_v44 = vadd.f32 %v426_v40, %v83_v41 }
 0x100   :  { %v345_v43 = vpop.f32.mrb[0].mxu1 }
 0x101   :  { %v346_v45 = vadd.f32 %v345_v43, %v305_v42  ;;  %v347_v46 = vpop.f32.mrb[1].mxu1 }
 0x102   :  { %v348_v47 = vpop.f32.mrb[2].mxu1 }
 0x103   :  { %v352_v48 = vmax.f32 %v346_v45, 0.0  ;;  %v349_v49 = vadd.f32 %v348_v47, %v308_v44  ;;  %v350_v50 = vpop.f32.mrb[3].mxu1 }
 0x105   :  { %v403_v51 = vpack.c.bf16 %v352_v48, %v352_v48  ;;  %v353_v52 = vmax.f32 %v349_v49, 0.0 }
 0x107   :  { %363 = vst.msk [vmem:[%s603_s3] sm:$0xf] %vm362_vm1, %v403_v51  ;;  %v404_v53 = vpack.c.bf16 %v353_v52, %v353_v52 }
 0x109   :  { %364 = vst.msk [vmem:[%s603_s3 + $0x4] sm:$0xf] %vm362_vm1, %v404_v53 }

// kernel: hourglassup_forward.36
= control target key start
LH: loop header
LB: loop body
LE: loop exit
PB: predicated region body
PF: predicated region fallthrough
CT: control target
= control target key end

     0   :  { %v683_v1 = vmov 0   ;;  %vm260_vm0 = vcmask 392192   ;;  %vm470_vm1 = vcmask 719872   ;;  %vm474_vm2 = vcmask 1043456   ;;  %s893_s1 = inlined_call_operand.vmem [shape: bf16[432,32], index: 1, kind: input, shape index: {}]   ;;  %s894_s3 = inlined_call_operand.vmem [shape: bf16[216,32], index: 3, kind: input, shape index: {}]   ;;  %s895_s0 = inlined_call_operand.vmem [shape: bf16[16,432], index: 0, kind: input, shape index: {}]   ;;  %s896_s2 = inlined_call_operand.vmem [shape: bf16[16,216], index: 2, kind: input, shape index: {}]   ;;  %s897_s4 = inlined_call_operand.vmem [shape: f32[16,1], index: 4, kind: input, shape index: {}]   ;;  %s898_s5 = inlined_call_operand.vmem [shape: bf16[16,32], index: 5, kind: output, shape index: {}]  }
   0x1   :  { %v633_v0 = vld [vmem:[%s893_s1 + $0x40] sm:$0xff]   ;;  %478 = vmatprep.subr.bf16.mxu0 %v683_v1  ;;  %632 = vset.pattern.permute.xlu0 %v683_v1  ;;  %v635_v3 = vld [vmem:[%s893_s1 + $0x48] sm:$0xff]   ;;  %v637_v5 = vld [vmem:[%s893_s1 + $0x50] sm:$0xff]   ;;  %vm346_vm3 = vcmask 261120   ;;  %vm549_vm4 = vcmask 257024  }
   0x2   :  { %v634_v2 = vld [vmem:[%s893_s1] sm:$0xff]   ;;  %609 = vmatprep.subr.bf16.mxu1 %v633_v0  ;;  %v636_v4 = vld [vmem:[%s893_s1 + $0x8] sm:$0xff]   ;;  %v638_v6 = vld [vmem:[%s893_s1 + $0x10] sm:$0xff]  }
   0x3   :  { %610 = vmatpush3.bf16.msra.mxu1 %v634_v2  ;;  %v639_v7 = vld [vmem:[%s893_s1 + $0x58] sm:$0xff]   ;;  %v641_v9 = vld [vmem:[%s893_s1 + $0x60] sm:$0xff]   ;;  %v643_v12 = vld [vmem:[%s893_s1 + $0x68] sm:$0xff]  }
   0x4   :  { %611 = vmatprep.subr.bf16.mxu1 %v635_v3  ;;  %v640_v8 = vld [vmem:[%s893_s1 + $0x18] sm:$0xff]   ;;  %v642_v10 = vld [vmem:[%s893_s1 + $0x20] sm:$0xff]   ;;  %v644_v13 = vld [vmem:[%s893_s1 + $0x28] sm:$0xff]  }
   0x5   :  { %v648_v11 = vld [vmem:[%s894_s3] sm:$0xff]   ;;  %v653_v15 = vld [vmem:[%s894_s3 + $0x8] sm:$0xff]   ;;  %v645_v16 = vld [vmem:[%s893_s1 + $0x70] sm:$0xff]  }
   0x6   :  { %479 = vmatpush1.bf16.msra.mxu0 %v648_v11  ;;  %v652_v14 = vld [vmem:[%s895_s0 + $0x4] ss:$16 sps:$4 sm:$0xff]   ;;  %v647_v19 = vld [vmem:[%s893_s1 + $0x78] sm:$0xff]   ;;  %v650_v23 = vld [vmem:[%s895_s0] ss:$16 sps:$4 sm:$0xff]  }
   0x7   :  { %612 = vmatpush3.bf16.msra.mxu1 %v636_v4  ;;  %480 = vmatprep.subr.bf16.mxu0 %v683_v1  ;;  %v655_v17 = vld [vmem:[%s894_s3 + $0x10] sm:$0xff]   ;;  %v657_v20 = vld [vmem:[%s894_s3 + $0x18] sm:$0xff]   ;;  %v659_v22 = vld [vmem:[%s894_s3 + $0x20] sm:$0xff]  }
   0x8   :  { %613 = vmatprep.subr.bf16.mxu1 %v637_v5  ;;  %296 = vmatprep.mubr.bf16.mxu1 %v652_v14  ;;  %v646_v18 = vld [vmem:[%s893_s1 + $0x30] sm:$0xff]   ;;  %v649_v21 = vld [vmem:[%s893_s1 + $0x38] sm:$0xff]   ;;  %v654_v24 = vld [vmem:[%s893_s1 + $0x80] sm:$0xff]  }
   0x9   :  { %v661_v25 = vld [vmem:[%s894_s3 + $0x28] sm:$0xff]   ;;  %v663_v27 = vld [vmem:[%s894_s3 + $0x30] sm:$0xff]   ;;  %v665_v29 = vld [vmem:[%s894_s3 + $0x38] sm:$0xff]  }
   0xa   :  { %481 = vmatpush1.bf16.msra.mxu0 %v653_v15  ;;  %v656_v26 = vld [vmem:[%s893_s1 + $0x88] sm:$0xff]   ;;  %v658_v28 = vld [vmem:[%s893_s1 + $0x90] sm:$0xff]   ;;  %v660_v31 = vld [vmem:[%s893_s1 + $0x98] sm:$0xff]  }
   0xb   :  { %614 = vmatpush3.bf16.msra.mxu1 %v638_v6  ;;  %482 = vmatprep.subr.bf16.mxu0 %v683_v1  ;;  %v675_v30 = vld [vmem:[%s895_s0 + $0xc] ss:$16 sps:$4 sm:$0xff]   ;;  %v525_v33 = vld [vmem:[%s897_s4] sm:$0xff]  ;;  %v671_v39 = vld [vmem:[%s894_s3 + $0x50] sm:$0xff]  }
   0xc   :  { %615 = vmatprep.subr.bf16.mxu1 %v639_v7  ;;  %v682_v32 = vld [vmem:[%s896_s2 + $0x4] ss:$8 sps:$4 sm:$0xff]   ;;  %529 = vperm.xlu0 %632, %v525_v33   ;;  %v666_v40 = vld [vmem:[%s893_s1 + $0xb0] sm:$0xff]   ;;  %v673_v41 = vld [vmem:[%s894_s3 + $0x58] sm:$0xff]  }
   0xd   :  { %v667_v34 = vld [vmem:[%s894_s3 + $0x40] sm:$0xff]   ;;  %604 = vmatprep.mubr.msk.bf16.mxu0 %vm470_vm1, %v682_v32  ;;  %v526_v35 = vld [vmem:[%s897_s4 + $0x8] sm:$0xff]  ;;  %v668_v42 = vld [vmem:[%s893_s1 + $0xb8] sm:$0xff]  }
   0xe   :  { %483 = vmatpush1.bf16.msra.mxu0 %v655_v17  ;;  %v662_v36 = vld [vmem:[%s893_s1 + $0xa0] sm:$0xff]   ;;  %v669_v37 = vld [vmem:[%s894_s3 + $0x48] sm:$0xff]   ;;  %v674_v49 = vld [vmem:[%s893_s1 + $0xd0] sm:$0xff]  }
   0xf   :  { %616 = vmatpush3.bf16.msra.mxu1 %v640_v8  ;;  %484 = vmatprep.subr.bf16.mxu0 %v683_v1  ;;  %v664_v38 = vld [vmem:[%s893_s1 + $0xa8] sm:$0xff]   ;;  %v678_v43 = vld [vmem:[%s894_s3 + $0x60] sm:$0xff]  }
  0x10   :  { %617 = vmatprep.subr.bf16.mxu1 %v641_v9  ;;  %534 = vperm.xlu0 %632, %v526_v35   ;;  %v679_v44 = vld [vmem:[%s894_s3 + $0x68] ss:$0 sps:$4 sm:$0xff]   ;;  %v670_v45 = vld [vmem:[%s893_s1 + $0xc0] sm:$0xff]  }
  0x11   :  { %v476_v46 = vsel %vm474_vm2, %v679_v44, 0  ;;  %v672_v47 = vld [vmem:[%s893_s1 + $0xc8] sm:$0xff]  }
  0x12   :  { %485 = vmatpush1.bf16.msra.mxu0 %v657_v20  ;;  %v680_v48 = vld [vmem:[%s896_s2] ss:$8 sps:$4 sm:$0xff]  }
  0x13   :  { %618 = vmatpush3.bf16.msra.mxu1 %v642_v10  ;;  %486 = vmatprep.subr.bf16.mxu0 %v683_v1  ;;  %v677_v50 = vld [vmem:[%s895_s0 + $0x8] ss:$16 sps:$4 sm:$0xff]  }
  0x14   :  { %619 = vmatprep.subr.bf16.mxu1 %v643_v12 }
  0x16   :  { %487 = vmatpush1.bf16.msra.mxu0 %v659_v22 }
  0x17   :  { %620 = vmatpush3.bf16.msra.mxu1 %v644_v13  ;;  %488 = vmatprep.subr.bf16.mxu0 %v683_v1 }
  0x18   :  { %621 = vmatprep.subr.bf16.mxu1 %v645_v16 }
  0x1a   :  { %489 = vmatpush1.bf16.msra.mxu0 %v661_v25 }
  0x1b   :  { %622 = vmatpush3.bf16.msra.mxu1 %v646_v18  ;;  %490 = vmatprep.subr.bf16.mxu0 %v683_v1 }
  0x1c   :  { %623 = vmatprep.subr.bf16.mxu1 %v647_v19 }
  0x1e   :  { %491 = vmatpush1.bf16.msra.mxu0 %v663_v27 }
  0x1f   :  { %624 = vmatpush3.bf16.msra.mxu1 %v649_v21  ;;  %492 = vmatprep.subr.bf16.mxu0 %v683_v1 }
  0x20   :  { %305 = vmatprep.subr.bf16.mxu1 %v683_v1 }
  0x22   :  { %297 = vmatmul.mubr.bf16.vlgmr.msra.gmra.mrb[0].mxu1 %v650_v23  ;;  %493 = vmatpush1.bf16.msra.mxu0 %v665_v29 }
  0x23   :  { %306 = vmatpush1.bf16.msra.mxu1 %v654_v24  ;;  %587 = vmatprep.mubr.msk.bf16.mxu1 %vm260_vm0, %v675_v30 }
  0x24   :  { %307 = vmatprep.subr.bf16.mxu1 %v683_v1  ;;  %494 = vmatprep.subr.bf16.mxu0 %v683_v1 }
  0x26   :  { %495 = vmatpush1.bf16.msra.mxu0 %v667_v34 }
  0x27   :  { %308 = vmatpush1.bf16.msra.mxu1 %v656_v26  ;;  %496 = vmatprep.subr.bf16.mxu0 %v683_v1 }
  0x28   :  { %309 = vmatprep.subr.bf16.mxu1 %v683_v1 }
  0x2a   :  { %497 = vmatpush1.bf16.msra.mxu0 %v669_v37 }
  0x2b   :  { %310 = vmatpush1.bf16.msra.mxu1 %v658_v28  ;;  %498 = vmatprep.subr.bf16.mxu0 %v683_v1 }
  0x2c   :  { %311 = vmatprep.subr.bf16.mxu1 %v683_v1 }
  0x2e   :  { %499 = vmatpush1.bf16.msra.mxu0 %v671_v39 }
  0x2f   :  { %312 = vmatpush1.bf16.msra.mxu1 %v660_v31  ;;  %500 = vmatprep.subr.bf16.mxu0 %v683_v1 }
  0x30   :  { %313 = vmatprep.subr.bf16.mxu1 %v683_v1 }
  0x32   :  { %501 = vmatpush1.bf16.msra.mxu0 %v673_v41 }
  0x33   :  { %314 = vmatpush1.bf16.msra.mxu1 %v662_v36  ;;  %502 = vmatprep.subr.bf16.mxu0 %v683_v1 }
  0x34   :  { %315 = vmatprep.subr.bf16.mxu1 %v683_v1 }
  0x36   :  { %503 = vmatpush1.bf16.msra.mxu0 %v678_v43 }
  0x37   :  { %316 = vmatpush1.bf16.msra.mxu1 %v664_v38  ;;  %504 = vmatprep.subr.bf16.mxu0 %v683_v1 }
  0x38   :  { %317 = vmatprep.subr.bf16.mxu1 %v683_v1 }
  0x3a   :  { %505 = vmatpush1.bf16.msra.mxu0 %v476_v46 }
  0x3b   :  { %318 = vmatpush1.bf16.msra.mxu1 %v666_v40 }
  0x3c   :  { %319 = vmatprep.subr.bf16.mxu1 %v683_v1 }
  0x3d   :  { %511 = vmatmul.mubr.bf16.vlgmr.msra.gmra.mrb[0].mxu0 %v680_v48 }
  0x3f   :  { %320 = vmatpush1.bf16.msra.mxu1 %v668_v42 }
  0x40   :  { %321 = vmatprep.subr.bf16.mxu1 %v683_v1 }
  0x43   :  { %322 = vmatpush1.bf16.msra.mxu1 %v670_v45 }
  0x44   :  { %323 = vmatprep.subr.bf16.mxu1 %v683_v1 }
  0x47   :  { %324 = vmatpush1.bf16.msra.mxu1 %v672_v47 }
  0x48   :  { %325 = vmatprep.subr.bf16.mxu1 %v683_v1 }
  0x4b   :  { %326 = vmatpush1.bf16.msra.mxu1 %v674_v49 }
  0x4e   :  { %338 = vmatmul.mubr.bf16.vlgmr.msra.gmra.mrb[4].mxu1 %v677_v50 }
  0x8b   :  { %v530_v7 = vpop.permute.xlu0 %529 }
  0x8f   :  { %v535_v10 = vpop.permute.xlu0 %534 }
  0xf5   :  { %v625_v51 = vpop.f32.mrb[0].mxu1 }
  0xf6   :  { %v626_v52 = vpop.f32.mrb[1].mxu1 }
  0xf7   :  { %v627_v53 = vadd.f32 %v626_v52, %v625_v51  ;;  %v628_v54 = vpop.f32.mrb[2].mxu1 }
  0xf8   :  { %v629_v55 = vpop.f32.mrb[3].mxu1 }
  0xf9   :  { %v630_v56 = vadd.f32 %v629_v55, %v628_v54 }
 0x110   :  { %v512_v57 = vpop.f32.mrb[0].mxu0 }
 0x111   :  { %v514_v58 = vpop.f32.mrb[1].mxu0 }
 0x112   :  { %v515_v59 = vpop.f32.mrb[2].mxu0 }
 0x113   :  { %v517_v60 = vpop.f32.mrb[3].mxu0 }
 0x121   :  { %v339_v61 = vpop.f32.mrb[4].mxu1 }
 0x122   :  { %v340_v62 = vadd.f32 %v627_v53, %v339_v61  ;;  %v341_v63 = vpop.f32.mrb[5].mxu1 }
 0x123   :  { %v342_v0 = vpop.f32.mrb[6].mxu1 }
 0x124   :  { %347 = vst.msk [vmem:[#allocation2] sm:$0xff] %vm346_vm3, %v340_v62  ;;  %v343_v1 = vadd.f32 %v630_v56, %v342_v0  ;;  %v344_v2 = vpop.f32.mrb[7].mxu1 }
 0x126   :  { %348 = vst.msk [vmem:[#allocation2 + $0x8] sm:$0xff] %vm346_vm3, %v343_v1 }
 0x12b   :  { %v349_v3 = vld [vmem:[#allocation2] sm:$0xff] }
 0x12c   :  { %v519_v4 = vadd.f32 %v512_v57, %v349_v3 }
 0x12d   :  { %v350_v5 = vld [vmem:[#allocation2 + $0x8] sm:$0xff] }
 0x12e   :  { %521 = vst.msk [vmem:[#allocation2] sm:$0xff] %vm346_vm3, %v519_v4  ;;  %v520_v6 = vadd.f32 %v515_v59, %v350_v5 }
 0x130   :  { %522 = vst.msk [vmem:[#allocation2 + $0x8] sm:$0xff] %vm346_vm3, %v520_v6 }
 0x135   :  { %v523_v8 = vld [vmem:[#allocation2] sm:$0xff] }
 0x136   :  { %v537_v9 = vadd.f32 %v530_v7, %v523_v8 }
 0x137   :  { %v524_v11 = vld [vmem:[#allocation2 + $0x8] sm:$0xff] }
 0x138   :  { %v539_v12 = vmax.f32 %v537_v9, 0.0  ;;  %v538_v13 = vadd.f32 %v535_v10, %v524_v11 }
 0x13a   :  { %v607_v14 = vpack.c.bf16 %v539_v12, %v539_v12  ;;  %v540_v15 = vmax.f32 %v538_v13, 0.0 }
 0x13c   :  { %550 = vst.msk [vmem:[%s898_s5] sm:$0xf] %vm549_vm4, %v607_v14  ;;  %v608_v16 = vpack.c.bf16 %v540_v15, %v540_v15 }
 0x13e   :  { %551 = vst.msk [vmem:[%s898_s5 + $0x4] sm:$0xf] %vm549_vm4, %v608_v16 }

// kernel: hourglassup_forward.38
= control target key start
LH: loop header
LB: loop body
LE: loop exit
PB: predicated region body
PF: predicated region fallthrough
CT: control target
= control target key end

     0   :  { %v427_v0 = vmov 0   ;;  %vm139_vm0 = vcmask 523264   ;;  %vm195_vm1 = vcmask 261120   ;;  %vm349_vm2 = vcmask 257024   ;;  %s558_s1 = inlined_call_operand.vmem [shape: bf16[192,32], index: 1, kind: input, shape index: {}]   ;;  %s559_s0 = inlined_call_operand.vmem [shape: bf16[32,192], index: 0, kind: input, shape index: {}]   ;;  %s560_s3 = inlined_call_operand.vmem [shape: bf16[32,32], index: 3, kind: input, shape index: {}]   ;;  %s561_s2 = inlined_call_operand.vmem [shape: bf16[32,32], index: 2, kind: input, shape index: {}]   ;;  %s562_s4 = inlined_call_operand.vmem [shape: f32[32,1], index: 4, kind: input, shape index: {}]   ;;  %s563_s5 = inlined_call_operand.vmem [shape: bf16[32,32], index: 5, kind: output, shape index: {}]  }
   0x1   :  { %146 = vmatprep.subr.bf16.mxu0 %v427_v0  ;;  %v405_v1 = vld [vmem:[%s558_s1] sm:$0xff]   ;;  %403 = vset.pattern.permute.xlu0 %v427_v0  ;;  %v406_v2 = vld [vmem:[%s558_s1 + $0x8] sm:$0xff]   ;;  %v407_v3 = vld [vmem:[%s558_s1 + $0x10] sm:$0xff]  }
   0x2   :  { %404 = vset.pattern.permute.xlu1 %v427_v0  ;;  %147 = vmatpush1.bf16.msra.mxu0 %v405_v1  ;;  %v408_v4 = vld [vmem:[%s558_s1 + $0x18] sm:$0xff]   ;;  %v409_v5 = vld [vmem:[%s558_s1 + $0x20] sm:$0xff]   ;;  %v421_v8 = vld [vmem:[%s560_s3 + $0x8] sm:$0xff]  }
   0x3   :  { %148 = vmatprep.subr.bf16.mxu0 %v427_v0  ;;  %v419_v6 = vld [vmem:[%s559_s0 + $0x4] ss:$8 sps:$4 sm:$0xff]   ;;  %v303_v12 = vld [vmem:[%s562_s4 + $0x10] sm:$0xff]  ;;  %v304_v16 = vld [vmem:[%s562_s4 + $0x18] sm:$0xff] }
   0x4   :  { %v420_v7 = vld [vmem:[%s560_s3] sm:$0xff]   ;;  %374 = vmatprep.mubr.msk.bf16.mxu0 %vm139_vm0, %v419_v6  ;;  %v410_v10 = vld [vmem:[%s558_s1 + $0x28] sm:$0xff]   ;;  %317 = vperm.xlu1 %404, %v303_v12   ;;  %v411_v15 = vld [vmem:[%s558_s1 + $0x30] sm:$0xff]  }
   0x5   :  { %394 = vmatprep.subr.bf16.mxu1 %v420_v7  ;;  %v422_v9 = vld [vmem:[%s561_s2] sm:$0xff]   ;;  %v425_v13 = vld [vmem:[%s561_s2 + $0x8] sm:$0xff]   ;;  %v412_v17 = vld [vmem:[%s558_s1 + $0x38] sm:$0xff]  }
   0x6   :  { %149 = vmatpush1.bf16.msra.mxu0 %v406_v2  ;;  %395 = vmatpush3.bf16.msra.mxu1 %v420_v7  ;;  %v301_v11 = vld [vmem:[%s562_s4] sm:$0xff]  ;;  %v302_v14 = vld [vmem:[%s562_s4 + $0x8] sm:$0xff]  ;;  %v415_v20 = vld [vmem:[%s558_s1 + $0x50] sm:$0xff]  }
   0x7   :  { %150 = vmatprep.subr.bf16.mxu0 %v427_v0  ;;  %396 = vmatprep.subr.bf16.mxu1 %v421_v8  ;;  %v413_v18 = vld [vmem:[%s558_s1 + $0x40] sm:$0xff]   ;;  %v414_v19 = vld [vmem:[%s558_s1 + $0x48] sm:$0xff]   ;;  %v416_v21 = vld [vmem:[%s558_s1 + $0x58] sm:$0xff]  }
   0x8   :  { %398 = vmatprep.mubr.msk.bf16.mxu1 %vm195_vm1, %v422_v9  ;;  %307 = vperm.xlu0 %403, %v301_v11   ;;  %v417_v22 = vld [vmem:[%s559_s0] ss:$8 sps:$4 sm:$0xff]   ;;  %v423_v23 = vld [vmem:[%s559_s0 + $0x14] ss:$8 sps:$4 sm:$0xff]   ;;  %v426_v24 = vld [vmem:[%s559_s0 + $0x10] ss:$8 sps:$4 sm:$0xff]  }
   0x9   :  { %322 = vperm.xlu1 %404, %v304_v16  }
   0xa   :  { %151 = vmatpush1.bf16.msra.mxu0 %v407_v3  ;;  %397 = vmatpush3.bf16.msra.mxu1 %v421_v8 }
   0xb   :  { %152 = vmatprep.subr.bf16.mxu0 %v427_v0 }
   0xc   :  { %312 = vperm.xlu0 %403, %v302_v14  }
   0xd   :  { %399 = vmatmul.mubr.msk.bf16.vlgmr.msra.gmra.mrb[0].mxu1 %vm195_vm1, %v425_v13 }
   0xe   :  { %153 = vmatpush1.bf16.msra.mxu0 %v408_v4 }
   0xf   :  { %154 = vmatprep.subr.bf16.mxu0 %v427_v0 }
  0x12   :  { %155 = vmatpush1.bf16.msra.mxu0 %v409_v5 }
  0x13   :  { %156 = vmatprep.subr.bf16.mxu0 %v427_v0 }
  0x16   :  { %157 = vmatpush1.bf16.msra.mxu0 %v410_v10 }
  0x17   :  { %158 = vmatprep.subr.bf16.mxu0 %v427_v0 }
  0x1a   :  { %159 = vmatpush1.bf16.msra.mxu0 %v411_v15 }
  0x1b   :  { %160 = vmatprep.subr.bf16.mxu0 %v427_v0 }
  0x1e   :  { %161 = vmatpush1.bf16.msra.mxu0 %v412_v17 }
  0x1f   :  { %162 = vmatprep.subr.bf16.mxu0 %v427_v0 }
  0x22   :  { %163 = vmatpush1.bf16.msra.mxu0 %v413_v18 }
  0x23   :  { %164 = vmatprep.subr.bf16.mxu0 %v427_v0 }
  0x26   :  { %165 = vmatpush1.bf16.msra.mxu0 %v414_v19 }
  0x27   :  { %166 = vmatprep.subr.bf16.mxu0 %v427_v0 }
  0x2a   :  { %167 = vmatpush1.bf16.msra.mxu0 %v415_v20 }
  0x2b   :  { %168 = vmatprep.subr.bf16.mxu0 %v427_v0 }
  0x2e   :  { %169 = vmatpush1.bf16.msra.mxu0 %v416_v21 }
  0x31   :  { %179 = vmatmul.mubr.bf16.vlgmr.msra.gmra.mrb[0].mxu0 %v417_v22 }
  0x32   :  { %375 = vmatprep.mubr.msk.bf16.mxu0 %vm139_vm0, %v423_v23 }
  0x39   :  { %187 = vmatmul.mubr.bf16.gmra.mrb[4].mxu0 %v426_v24 }
  0x83   :  { %v318_v52 = vpop.permute.xlu1 %317 }
  0x87   :  { %v308_v41 = vpop.permute.xlu0 %307 }
  0x88   :  { %v323_v58 = vpop.permute.xlu1 %322 }
  0x8b   :  { %v313_v46 = vpop.permute.xlu0 %312 }
  0xe0   :  { %v400_v25 = vpop.f32.mrb[0].mxu1 }
  0xe1   :  { %v274_v26 = vpop.f32.mrb[1].mxu1 }
  0xe2   :  { %v401_v27 = vpop.f32.mrb[2].mxu1 }
  0xe3   :  { %v277_v28 = vpop.f32.mrb[3].mxu1 }
 0x104   :  { %v180_v29 = vpop.f32.mrb[0].mxu0 }
 0x105   :  { %196 = vst.msk [vmem:[#allocation2] sm:$0xff] %vm195_vm1, %v180_v29  ;;  %v182_v30 = vpop.f32.mrb[1].mxu0 }
 0x106   :  { %v183_v31 = vpop.f32.mrb[2].mxu0 }
 0x107   :  { %197 = vst.msk [vmem:[#allocation2 + $0x8] sm:$0xff] %vm195_vm1, %v183_v31  ;;  %v185_v32 = vpop.f32.mrb[3].mxu0 }
 0x10c   :  { %v188_v33 = vpop.f32.mrb[4].mxu0  ;;  %v200_v34 = vld [vmem:[#allocation2] sm:$0xff] }
 0x10d   :  { %198 = vst.msk [vmem:[#allocation2 + $0x10] sm:$0xff] %vm195_vm1, %v188_v33  ;;  %v289_v35 = vadd.f32 %v274_v26, %v200_v34  ;;  %v190_v36 = vpop.f32.mrb[5].mxu0 }
 0x10e   :  { %v191_v37 = vpop.f32.mrb[6].mxu0  ;;  %v201_v38 = vld [vmem:[#allocation2 + $0x8] sm:$0xff] }
 0x10f   :  { %293 = vst.msk [vmem:[#allocation2] sm:$0xff] %vm195_vm1, %v289_v35  ;;  %199 = vst.msk [vmem:[#allocation2 + $0x18] sm:$0xff] %vm195_vm1, %v191_v37  ;;  %v290_v39 = vadd.f32 %v277_v28, %v201_v38  ;;  %v193_v40 = vpop.f32.mrb[7].mxu0 }
 0x111   :  { %294 = vst.msk [vmem:[#allocation2 + $0x8] sm:$0xff] %vm195_vm1, %v290_v39 }
 0x114   :  { %v202_v42 = vld [vmem:[#allocation2 + $0x10] sm:$0xff] }
 0x115   :  { %v291_v43 = vadd.f32 %v400_v25, %v202_v42 }
 0x116   :  { %v203_v44 = vld [vmem:[#allocation2 + $0x18] sm:$0xff]  ;;  %v297_v45 = vld [vmem:[#allocation2] sm:$0xff] }
 0x117   :  { %295 = vst.msk [vmem:[#allocation2 + $0x10] sm:$0xff] %vm195_vm1, %v291_v43  ;;  %v292_v47 = vadd.f32 %v401_v27, %v203_v44  ;;  %v325_v48 = vadd.f32 %v308_v41, %v297_v45 }
 0x118   :  { %v298_v49 = vld [vmem:[#allocation2 + $0x8] sm:$0xff] }
 0x119   :  { %296 = vst.msk [vmem:[#allocation2 + $0x18] sm:$0xff] %vm195_vm1, %v292_v47  ;;  %v329_v50 = vmax.f32 %v325_v48, 0.0  ;;  %v326_v51 = vadd.f32 %v313_v46, %v298_v49 }
 0x11b   :  { %v386_v53 = vpack.c.bf16 %v329_v50, %v329_v50  ;;  %v330_v54 = vmax.f32 %v326_v51, 0.0 }
 0x11d   :  { %350 = vst.msk [vmem:[%s563_s5] sm:$0xf] %vm349_vm2, %v386_v53  ;;  %v387_v55 = vpack.c.bf16 %v330_v54, %v330_v54 }
 0x11e   :  { %v299_v56 = vld [vmem:[#allocation2 + $0x10] sm:$0xff] }
 0x11f   :  { %v327_v57 = vadd.f32 %v318_v52, %v299_v56  ;;  %351 = vst.msk [vmem:[%s563_s5 + $0x4] sm:$0xf] %vm349_vm2, %v387_v55 }
 0x120   :  { %v300_v59 = vld [vmem:[#allocation2 + $0x18] sm:$0xff] }
 0x121   :  { %v331_v60 = vmax.f32 %v327_v57, 0.0  ;;  %v328_v61 = vadd.f32 %v323_v58, %v300_v59 }
 0x123   :  { %v388_v62 = vpack.c.bf16 %v331_v60, %v331_v60  ;;  %v332_v63 = vmax.f32 %v328_v61, 0.0 }
 0x125   :  { %352 = vst.msk [vmem:[%s563_s5 + $0x8] sm:$0xf] %vm349_vm2, %v388_v62  ;;  %v389_v0 = vpack.c.bf16 %v332_v63, %v332_v63 }
 0x127   :  { %353 = vst.msk [vmem:[%s563_s5 + $0xc] sm:$0xf] %vm349_vm2, %v389_v0 }

// kernel: hourglassup_forward.39
= control target key start
LH: loop header
LB: loop body
LE: loop exit
PB: predicated region body
PF: predicated region fallthrough
CT: control target
= control target key end

     0   :  { %v285_v0 = vmov 0.0   ;;  %vm286_vm0 = vmmov 0   ;;  %v287_v3 = vmov 0   ;;  %vm140_vm1 = vcmask 130048   ;;  %s354_s1 = inlined_call_operand.vmem [shape: bf16[96,128], index: 1, kind: input, shape index: {}]   ;;  %s355_s3 = inlined_call_operand.vmem [shape: bf16[16,128], index: 3, kind: input, shape index: {}]   ;;  %s356_s2 = inlined_call_operand.vmem [shape: bf16[16,16], index: 2, kind: input, shape index: {}]   ;;  %s357_s4 = inlined_call_operand.vmem [shape: f32[16,1], index: 4, kind: input, shape index: {}]   ;;  %s358_s0 = inlined_call_operand.vmem [shape: bf16[16,96], index: 0, kind: input, shape index: {}]   ;;  %s359_s5 = inlined_call_operand.vmem [shape: bf16[16,128], index: 5, kind: output, shape index: {}]  }
   0x1   :  { %250 = vmatprep.subr.bf16.mxu0 %v285_v0  ;;  %v276_v1 = vld [vmem:[%s354_s1] sm:$0xff]   ;;  %266 = vmatprep.subr.bf16.mxu1 %v285_v0  ;;  %v277_v2 = vld [vmem:[%s354_s1 + $0x8] sm:$0xff]   ;;  %v278_v5 = vld [vmem:[%s354_s1 + $0x10] sm:$0xff]   ;;  %vm76_vm2 = vcmask 785408  }
   0x2   :  { %268 = vmatprep.mubr.msk.bf16.mxu1 %vm286_vm0, %v285_v0  ;;  %262 = vmatprep.mubr.msk.bf16.mxu0 %vm286_vm0, %v285_v0  ;;  %v281_v4 = vld [vmem:[%s355_s3] sm:$0xff]   ;;  %v279_v8 = vld [vmem:[%s354_s1 + $0x18] sm:$0xff]   ;;  %v192_v9 = vld [vmem:[%s357_s4 + $0x8] sm:$0xff] }
   0x3   :  { %251 = vmatpush3.bf16.msra.mxu0 %v276_v1  ;;  %275 = vset.pattern.permute.xlu0 %v287_v3  ;;  %v283_v6 = vld [vmem:[%s356_s2] sm:$0xff]   ;;  %v282_v11 = vld [vmem:[%s354_s1 + $0x28] sm:$0xff]  }
   0x4   :  { %252 = vmatprep.subr.bf16.mxu0 %v285_v0  ;;  %267 = vmatpush3.bf16.msra.mxu1 %v281_v4  ;;  %v191_v7 = vld [vmem:[%s357_s4] sm:$0xff] }
   0x5   :  { %195 = vperm.xlu0 %275, %v191_v7   ;;  %v280_v10 = vld [vmem:[%s354_s1 + $0x20] sm:$0xff]  }
   0x6   :  { %v284_v12 = vld [vmem:[%s358_s0] sm:$0xff]  }
   0x7   :  { %253 = vmatpush3.bf16.msra.mxu0 %v277_v2  ;;  %269 = vmatmul.mubr.msk.bf16.vlgmr.msra.gmra.mrb[0].mxu1 %vm140_vm1, %v283_v6 }
   0x8   :  { %254 = vmatprep.subr.bf16.mxu0 %v285_v0 }
   0x9   :  { %200 = vperm.xlu0 %275, %v192_v9  }
   0xb   :  { %255 = vmatpush3.bf16.msra.mxu0 %v278_v5 }
   0xc   :  { %256 = vmatprep.subr.bf16.mxu0 %v285_v0 }
   0xf   :  { %257 = vmatpush3.bf16.msra.mxu0 %v279_v8 }
  0x10   :  { %258 = vmatprep.subr.bf16.mxu0 %v285_v0 }
  0x13   :  { %259 = vmatpush3.bf16.msra.mxu0 %v280_v10 }
  0x14   :  { %260 = vmatprep.subr.bf16.mxu0 %v285_v0 }
  0x17   :  { %261 = vmatpush3.bf16.msra.mxu0 %v282_v11 }
  0x1a   :  { %263 = vmatmul.mubr.msk.bf16.vlgmr.msra.gmra.mrb[0].mxu0 %vm76_vm2, %v284_v12 }
  0x84   :  { %v196_v17 = vpop.permute.xlu0 %195 }
  0x88   :  { %v201_v25 = vpop.permute.xlu0 %200 }
  0xda   :  { %v178_v13 = vpop.f32.mrb[0].mxu1 }
  0xdb   :  { %v270_v14 = vpop.f32.mrb[1].mxu1 }
  0xdc   :  { %v181_v15 = vpop.f32.mrb[2].mxu1 }
  0xdd   :  { %v271_v16 = vpop.f32.mrb[3].mxu1 }
  0xed   :  { %v114_v18 = vpop.f32.mrb[0].mxu0 }
  0xee   :  { %v185_v19 = vadd.f32 %v178_v13, %v114_v18  ;;  %v264_v20 = vpop.f32.mrb[1].mxu0 }
  0xef   :  { %v117_v21 = vpop.f32.mrb[2].mxu0 }
  0xf0   :  { %v203_v22 = vadd.f32 %v196_v17, %v185_v19  ;;  %v186_v23 = vadd.f32 %v181_v15, %v117_v21  ;;  %v265_v24 = vpop.f32.mrb[3].mxu0 }
  0xf2   :  { %v204_v26 = vadd.f32 %v201_v25, %v186_v23  ;;  %v205_v27 = vmax.f32 %v203_v22, 0.0 }
  0xf4   :  { %v206_v28 = vmax.f32 %v204_v26, 0.0 }
  0xf6   :  { %v239_v29 = vpack.c.bf16 %v206_v28, %v205_v27 }
  0xf8   :  { %240 = vst [vmem:[%s359_s5] sm:$0xff] %v239_v29  }

</bundles_post_ra>
